<compile_context>
chip_gen: v6e
topology: v6e:2x2x1
jax: 0.10.0
libtpu: 0.0.40
codegen_flags: <defaults>
</compile_context>

<pallas_src>
import functools

import jax
import jax.numpy as jnp
from jax.experimental import pallas as pl
from jax.experimental.pallas import tpu as pltpu


# --------------------------------------------------------------------------- #
# Kernels
# --------------------------------------------------------------------------- #
def _rn_kernel_packed(n_g, inject, d, p, gw, bb, compute_dtype, *refs):
    """Lane-packed path: p pair-activations of width gw share one 128-lane row."""
    x_ref, xf_ref, q_ref = refs[0], refs[1], refs[2]
    out_ref = refs[-1]
    params = refs[3:-1]
    d2 = d * d
    L = p * gw                                   # packed lane width (== 128)

    x = x_ref[0]                                 # (bb*d, k)      object features
    xf = xf_ref[0]                               # (bb*d/p, p*k)  p objects folded into lanes
    q = q_ref[0]                                 # (bb, qst_size)

    w0a = params[0][...]                         # blockdiag([W0[:k]]*p)   : (p*k, L)
    w0b = params[1][...]                         # [W0[k:2k]|...|W0[k:2k]] : (k, L)
    wq = params[2][...]                          # lane-tiled question weight
    binj = params[3][...]                        # (1, L)
    pi = 4

    # per-sample question bias, already tiled over the p lane groups
    qb = jnp.dot(q, wq, preferred_element_type=jnp.float32) + binj          # (bb, L)

    # layer 0, pair-free: pair(a, c) = x[c]@W0a + x[a]@W0b (+bias); c packed in lanes
    xa = jnp.dot(xf, w0a, preferred_element_type=jnp.float32)               # (bb*d/p, L)
    xb = jnp.dot(x, w0b, preferred_element_type=jnp.float32)                # (bb*d, L)
    if inject == 0:
        bias0 = qb.reshape(bb, 1, 1, L)
    else:
        bias0 = params[pi][...].reshape(1, 1, 1, L)
        pi += 1
    h = jax.nn.relu(xa.reshape(bb, 1, d // p, L) + xb.reshape(bb, d, 1, L) + bias0)
    h = h.reshape(bb * d2 // p, L)                                           # lane-dense rows

    # remaining g layers: block-diagonal weights keep the p groups independent
    for idx in range(1, n_g):
        w = params[pi][...]
        pi += 1
        z = jnp.dot(h.astype(compute_dtype), w, preferred_element_type=jnp.float32)
        if idx == inject:
            z = z.reshape(bb, d2 // p, L) + qb.reshape(bb, 1, L)
            h = jax.nn.relu(z).reshape(bb * d2 // p, L)
        else:
            h = jax.nn.relu(z + params[pi][...])
            pi += 1

    # pair-sum: sum rows per sample, then fold the p lane groups back to width gw (f32)
    rs = jnp.sum(h.reshape(bb, d2 // p, L), axis=1)                          # (bb, L)
    g = rs[:, 0:gw]
    for t in range(1, p):
        g = g + rs[:, t * gw:(t + 1) * gw]

    # f network, batched over the whole block
    wf1, bf1, wf2, bf2, wf3, bf3 = (params[pi + j][...] for j in range(6))
    f = jax.nn.relu(
        jnp.dot(g.astype(compute_dtype), wf1, preferred_element_type=jnp.float32) + bf1)
    # TODO(synk): nn.Dropout is identity in eval mode; training-time dropout masks not implemented.
    f = jax.nn.relu(
        jnp.dot(f.astype(compute_dtype), wf2, preferred_element_type=jnp.float32) + bf2)
    out_ref[0] = (
        jnp.dot(f.astype(compute_dtype), wf3, preferred_element_type=jnp.float32) + bf3)


def _rn_kernel_plain(n_g, inject, d, bb, compute_dtype, *refs):
    """Fallback path (arbitrary g widths / d): pair-free layer 0 fused into one matmul."""
    x_ref, q_ref = refs[0], refs[1]
    out_ref = refs[-1]
    params = refs[2:-1]
    d2 = d * d

    x = x_ref[0]                                 # (bb*d, k)
    q = q_ref[0]                                 # (bb, qst_size)
    w0 = params[0][...]                          # (k, 2*g0) fused [W0_a | W0_b]
    wq = params[1][...]
    binj = params[2][...]
    pi = 3

    qb = jnp.dot(q, wq, preferred_element_type=jnp.float32) + binj          # (bb, g_inject)

    xab = jnp.dot(x, w0, preferred_element_type=jnp.float32)                # (bb*d, 2*g0)
    g0 = xab.shape[-1] // 2
    xa = xab[:, 0:g0]                            # contribution of the fast pair index
    xb = xab[:, g0:2 * g0]                       # contribution of the slow pair index
    if inject == 0:
        bias0 = qb.reshape(bb, 1, 1, g0)
    else:
        bias0 = params[pi][...].reshape(1, 1, 1, g0)
        pi += 1
    h = jax.nn.relu(xa.reshape(bb, 1, d, g0) + xb.reshape(bb, d, 1, g0) + bias0)
    h = h.reshape(bb * d2, g0)

    for idx in range(1, n_g):
        w = params[pi][...]
        pi += 1
        z = jnp.dot(h.astype(compute_dtype), w, preferred_element_type=jnp.float32)
        if idx == inject:
            gsz = z.shape[-1]
            z = z.reshape(bb, d2, gsz) + qb.reshape(bb, 1, gsz)
            h = jax.nn.relu(z).reshape(bb * d2, gsz)
        else:
            h = jax.nn.relu(z + params[pi][...])
            pi += 1

    g = jnp.sum(h.reshape(bb, d2, h.shape[-1]), axis=1)                     # (bb, g_last)

    wf1, bf1, wf2, bf2, wf3, bf3 = (params[pi + j][...] for j in range(6))
    f = jax.nn.relu(
        jnp.dot(g.astype(compute_dtype), wf1, preferred_element_type=jnp.float32) + bf1)
    # TODO(synk): nn.Dropout is identity in eval mode; training-time dropout masks not implemented.
    f = jax.nn.relu(
        jnp.dot(f.astype(compute_dtype), wf2, preferred_element_type=jnp.float32) + bf2)
    out_ref[0] = (
        jnp.dot(f.astype(compute_dtype), wf3, preferred_element_type=jnp.float32) + bf3)


# --------------------------------------------------------------------------- #
# Parameter preparation (wrapper side, traced by XLA once)
# --------------------------------------------------------------------------- #
def _prep_f_tail(params, pidx, out_size, out_pad, compute_dtype):
    wf1, bf1, wf2, bf2, wf3, bf3 = params[pidx:pidx + 6]
    # pad the last f layer to 128 lanes -> unmasked, lane-dense output stores
    wf3p = jnp.zeros((wf3.shape[0], out_pad), wf3.dtype).at[:, :out_size].set(wf3)
    bf3p = jnp.zeros((1, out_pad), jnp.float32).at[:, :out_size].set(
        bf3.reshape(1, -1).astype(jnp.float32))
    return [wf1.astype(compute_dtype), bf1.reshape(1, -1).astype(jnp.float32),
            wf2.astype(compute_dtype), bf2.reshape(1, -1).astype(jnp.float32),
            wf3p.astype(compute_dtype), bf3p]


def _prepare_params_packed(params, hyp, k, p, out_size, out_pad, compute_dtype):
    g_layers = hyp["g_layers"]
    n_g = len(g_layers)
    inject = hyp["question_injection_position"]

    def bd(w):        # block-diagonal([w] * p): p independent gw-wide MLPs in 128 lanes
        return jnp.kron(jnp.eye(p, dtype=w.dtype), w)

    def tile_c(w):    # [w | w | ... | w] along lanes
        w2 = w.reshape(1, -1) if w.ndim == 1 else w
        return jnp.concatenate([w2] * p, axis=1)

    w0, b0 = params[0], params[1].reshape(1, -1)
    kp = [bd(w0[:k]).astype(compute_dtype),            # fast-pair-index half, packed over lanes
          tile_c(w0[k:2 * k]).astype(compute_dtype)]   # slow-pair-index half, broadcast over groups
    bias0 = None
    if inject == 0:
        wq, binj = w0[2 * k:], b0
    else:
        bias0 = tile_c(b0).astype(jnp.float32)
        wq = binj = None

    mid = []
    pidx = 2
    for idx in range(1, n_g):
        w, bvec = params[pidx], params[pidx + 1].reshape(1, -1)
        pidx += 2
        if idx == inject:
            prev = g_layers[idx - 1]
            mid.append(bd(w[:prev]).astype(compute_dtype))
            wq, binj = w[prev:], bvec
        else:
            mid.append(bd(w).astype(compute_dtype))
            mid.append(tile_c(bvec).astype(jnp.float32))

    kp += [tile_c(wq).astype(compute_dtype), tile_c(binj).astype(jnp.float32)]
    if bias0 is not None:
        kp.append(bias0)
    kp += mid
    kp += _prep_f_tail(params, pidx, out_size, out_pad, compute_dtype)
    return kp


def _prepare_params_plain(params, hyp, k, out_size, out_pad, compute_dtype):
    g_layers = hyp["g_layers"]
    n_g = len(g_layers)
    inject = hyp["question_injection_position"]

    w0, b0 = params[0], params[1].reshape(1, -1)
    # single fused layer-0 matmul: concat(x_i, x_j)@W0 = x @ [W0[:k] | W0[k:2k]]
    kp = [jnp.concatenate([w0[:k], w0[k:2 * k]], axis=1).astype(compute_dtype)]
    bias0 = None
    if inject == 0:
        wq, binj = w0[2 * k:], b0
    else:
        bias0 = b0.astype(jnp.float32)
        wq = binj = None

    mid = []
    pidx = 2
    for idx in range(1, n_g):
        w, bvec = params[pidx], params[pidx + 1].reshape(1, -1)
        pidx += 2
        if idx == inject:
            prev = g_layers[idx - 1]
            mid.append(w[:prev].astype(compute_dtype))
            wq, binj = w[prev:], bvec
        else:
            mid.append(w.astype(compute_dtype))
            mid.append(bvec.astype(jnp.float32))

    kp += [wq.astype(compute_dtype), binj.astype(jnp.float32)]
    if bias0 is not None:
        kp.append(bias0)
    kp += mid
    kp += _prep_f_tail(params, pidx, out_size, out_pad, compute_dtype)
    return kp


# --------------------------------------------------------------------------- #
# Generation-aware sizing helpers
# --------------------------------------------------------------------------- #
def _target_grid_steps():
    # v5e/v6e: 1 TensorCore -> the grid is a serial loop, minimize step count.
    # v7x: 2 TensorCores -> keep 2 "parallel" steps for megacore sharding.
    try:
        kind = jax.devices()[0].device_kind.lower()
    except Exception:
        return 1
    return 2 if ("v7" in kind or "7x" in kind) else 1


def _vmem_capacity_bytes():
    try:
        info = pltpu.get_tpu_info()
        cap = getattr(info, "vmem_capacity_bytes", None)
        if cap:
            return int(cap)
    except Exception:
        pass
    return 64 << 20          # conservative (v7x per-TC VMEM)


# --------------------------------------------------------------------------- #
# Public wrapper
# --------------------------------------------------------------------------- #
def relational_layer_forward(x, qst, params, hyp, out_size, *, batch_block=None,
                             compute_dtype=jnp.bfloat16):
    b, d, k = x.shape
    qst_size = qst.shape[1]
    g_layers = list(hyp["g_layers"])
    n_g = len(g_layers)
    inject = hyp["question_injection_position"]
    d2 = d * d
    out_pad = max(128, ((out_size + 127) // 128) * 128)

    # ---- lane-packing decision: pack p activations of width gw into 128 lanes ----
    gw = g_layers[0]
    p = 128 // gw if (gw > 0 and 128 % gw == 0) else 1
    packed = (p > 1 and all(gz == gw for gz in g_layers) and d % p == 0)
    if not packed:
        p = 1

    if packed:
        kparams = _prepare_params_packed(params, hyp, k, p, out_size, out_pad, compute_dtype)
    else:
        kparams = _prepare_params_plain(params, hyp, k, out_size, out_pad, compute_dtype)

    # ---- generation-aware batch blocking, capped by a VMEM budget ----
    vmem_cap = _vmem_capacity_bytes()
    weight_bytes = 2 * sum(int(w.size) * w.dtype.itemsize for w in kparams)
    widest = max(max(g_layers), 2 * g_layers[0], hyp["f_fc1"], hyp["f_fc2"], out_pad)
    stream_bytes = (d * k * (2 if packed else 1) + qst_size) * 2 + out_pad * 4
    per_sample = 2 * stream_bytes + 4 * d2 * widest * 4     # ~4 live f32 activation copies
    budget = int(0.6 * vmem_cap)
    max_bb = max(1, (budget - weight_bytes) // max(per_sample, 1))
    if batch_block is None:
        batch_block = int(max(1, min(pl.cdiv(b, _target_grid_steps()), max_bb)))
    nb = pl.cdiv(b, batch_block)
    b_pad = nb * batch_block
    if b_pad != b:
        x = jnp.pad(x, ((0, b_pad - b), (0, 0), (0, 0)))
        qst = jnp.pad(qst, ((0, b_pad - b), (0, 0)))

    est_bytes = weight_bytes + batch_block * per_sample
    vmem_limit = None
    if est_bytes > (24 << 20):       # only raise the scoped limit when it matters
        vmem_limit = max(32 << 20, min(int(0.9 * vmem_cap), est_bytes + (8 << 20)))

    # ---- blocked operands (pair construction & question bias stay in-kernel) ----
    xc = x.astype(compute_dtype)
    x_blk = xc.reshape(nb, batch_block * d, k)
    q_blk = qst.astype(compute_dtype).reshape(nb, batch_block, qst_size)

    def _full_spec(arr):
        nd = arr.ndim
        return pl.BlockSpec(arr.shape, lambda i, _nd=nd: (0,) * _nd)

    in_specs = [pl.BlockSpec((1, batch_block * d, k), lambda i: (i, 0, 0))]
    inputs = [x_blk]
    if packed:
        xf_blk = xc.reshape(nb, batch_block * (d // p), p * k)   # p objects folded into lanes
        in_specs.append(pl.BlockSpec((1, batch_block * (d // p), p * k), lambda i: (i, 0, 0)))
        inputs.append(xf_blk)
    in_specs.append(pl.BlockSpec((1, batch_block, qst_size), lambda i: (i, 0, 0)))
    inputs.append(q_blk)
    in_specs += [_full_spec(w) for w in kparams]     # weights: constant index map -> VMEM-resident
    inputs += list(kparams)

    if packed:
        kernel = functools.partial(_rn_kernel_packed, n_g, inject, d, p, gw,
                                   batch_block, compute_dtype)
    else:
        kernel = functools.partial(_rn_kernel_plain, n_g, inject, d,
                                   batch_block, compute_dtype)

    out = pl.pallas_call(
        kernel,
        out_shape=jax.ShapeDtypeStruct((nb, batch_block, out_pad), jnp.float32),
        grid_spec=pltpu.PrefetchScalarGridSpec(
            num_scalar_prefetch=0,
            grid=(nb,),
            in_specs=in_specs,
            out_specs=pl.BlockSpec((1, batch_block, out_pad), lambda i: (i, 0, 0)),
        ),
        compiler_params=pltpu.CompilerParams(
            dimension_semantics=("parallel",),
            vmem_limit_bytes=vmem_limit),
    )(*inputs)
    return out.reshape(b_pad, out_pad)[:b, :out_size]


# --------------------------------------------------------------------------- #
# Pure-JAX reference (mirrors the PyTorch forward, eval mode)
# --------------------------------------------------------------------------- #
def reference_forward(x, qst, params, hyp, out_size, compute_dtype=jnp.float32):
    b, d, k = x.shape
    qst_size = qst.shape[1]

    def mm(a, w):
        return jnp.dot(a.astype(compute_dtype), w.astype(compute_dtype),
                       preferred_element_type=jnp.float32)

    x_i = jnp.broadcast_to(x[:, None, :, :], (b, d, d, k))   # x_i[b,a,c] = x[b,c]
    x_j = jnp.broadcast_to(x[:, :, None, :], (b, d, d, k))   # x_j[b,a,c] = x[b,a]
    h = jnp.concatenate([x_i, x_j], axis=-1).reshape(b, d * d, 2 * k)
    q = jnp.broadcast_to(qst[:, None, :], (b, d * d, qst_size))
    pi = 0
    for idx in range(len(hyp["g_layers"])):
        if idx == hyp["question_injection_position"]:
            h = jnp.concatenate([h, q], axis=-1)
        w, bv = params[pi], params[pi + 1]
        pi += 2
        h = jax.nn.relu(mm(h, w) + bv)
    g = h.sum(axis=1)
    wf1, bf1, wf2, bf2, wf3, bf3 = params[pi:pi + 6]
    f = jax.nn.relu(mm(g, wf1) + bf1)
    f = jax.nn.relu(mm(f, wf2) + bf2)   # dropout == identity in eval
    return mm(f, wf3) + bf3


def init_linear(key, in_dim, out_dim):
    kw, kb = jax.random.split(key)
    bound = 1.0 / (in_dim ** 0.5)
    w = jax.random.uniform(kw, (in_dim, out_dim), jnp.float32, -bound, bound)
    bvec = jax.random.uniform(kb, (1, out_dim), jnp.float32, -bound, bound)
    return w, bvec


def build_params(key, hyp, in_size, qst_size, out_size):
    n_g = len(hyp["g_layers"])
    pkeys = jax.random.split(key, n_g + 3)
    params = []
    prev = in_size
    for idx, gsz in enumerate(hyp["g_layers"]):
        in_dim = prev + (qst_size if idx == hyp["question_injection_position"] else 0)
        w, bv = init_linear(pkeys[idx], in_dim, gsz)
        params += [w, bv]
        prev = gsz
    f_dims = [(prev, hyp["f_fc1"]), (hyp["f_fc1"], hyp["f_fc2"]), (hyp["f_fc2"], out_size)]
    for j, (di, do) in enumerate(f_dims):
        w, bv = init_linear(pkeys[n_g + j], di, do)
        params += [w, bv]
    return params


if __name__ == "__main__":
    qst_size = 16
    out_size = 10
    base_hyp = {
        "g_layers": [32, 32, 32],
        "f_fc1": 64,
        "f_fc2": 64,
        "dropout": 0.0,
        "question_injection_position": 0,
    }
    key = jax.random.PRNGKey(0)

    # (hyp, batch, n_objects, feat_per_object)
    configs = [
        (dict(base_hyp), 16, 8, 16),                                          # packed path, inject@0
        (dict(base_hyp, question_injection_position=1), 6, 8, 16),            # packed path, inject@1
        (dict(base_hyp, g_layers=[32, 48, 32],
              question_injection_position=1), 5, 8, 16),                      # plain fallback path
    ]

    for cfg_i, (hyp, b, d, k) in enumerate(configs):
        in_size = 2 * k
        kx, kq, kparam, key = jax.random.split(key, 4)
        x = jax.random.normal(kx, (b, d, k), jnp.float32)
        qst = jax.random.normal(kq, (b, qst_size), jnp.float32)
        params = build_params(kparam, hyp, in_size, qst_size, out_size)

        out = relational_layer_forward(x, qst, params, hyp, out_size)
        out = jax.block_until_ready(out)
        assert out.shape == (b, out_size)

        # Precision-matched reference (bf16 MXU inputs, f32 accumulation) validates the
        # algebraic folding, lane packing, blocking and padding.
        ref = reference_forward(x, qst, params, hyp, out_size, compute_dtype=jnp.bfloat16)
        assert jnp.allclose(out, ref, rtol=1e-2, atol=1e-2), (cfg_i, out, ref)

    print("KERNEL_OK")
</pallas_src>

<mosaic_0001>
module attributes {stable_mosaic.version = 11 : i64} {
  func.func @_rn_kernel_packed(%arg0: i32, %arg1: memref<1x128x16xbf16, #tpu.memory_space<vmem>>, %arg2: memref<1x32x64xbf16, #tpu.memory_space<vmem>>, %arg3: memref<1x16x16xbf16, #tpu.memory_space<vmem>>, %arg4: memref<64x128xbf16, #tpu.memory_space<vmem>>, %arg5: memref<16x128xbf16, #tpu.memory_space<vmem>>, %arg6: memref<16x128xbf16, #tpu.memory_space<vmem>>, %arg7: memref<1x128xf32, #tpu.memory_space<vmem>>, %arg8: memref<128x128xbf16, #tpu.memory_space<vmem>>, %arg9: memref<1x128xf32, #tpu.memory_space<vmem>>, %arg10: memref<128x128xbf16, #tpu.memory_space<vmem>>, %arg11: memref<1x128xf32, #tpu.memory_space<vmem>>, %arg12: memref<32x64xbf16, #tpu.memory_space<vmem>>, %arg13: memref<1x64xf32, #tpu.memory_space<vmem>>, %arg14: memref<64x64xbf16, #tpu.memory_space<vmem>>, %arg15: memref<1x64xf32, #tpu.memory_space<vmem>>, %arg16: memref<64x128xbf16, #tpu.memory_space<vmem>>, %arg17: memref<1x128xf32, #tpu.memory_space<vmem>>, %arg18: memref<1x16x128xf32, #tpu.memory_space<vmem>>) attributes {dimension_semantics = [#tpu.dimension_semantics<parallel>], iteration_bounds = array<i64: 1>, scalar_prefetch = 0 : i64, scratch_operands = 0 : i64, tpu.core_type = #tpu.core_type<tc>, window_params = [{transform_indices = @transform_0, window_bounds = array<i64: 1, 128, 16>}, {transform_indices = @transform_1, window_bounds = array<i64: 1, 32, 64>}, {transform_indices = @transform_2, window_bounds = array<i64: 1, 16, 16>}, {pipeline_mode = #tpu.pipeline_mode<synchronous>, transform_indices = @transform_3, window_bounds = array<i64: 64, 128>}, {pipeline_mode = #tpu.pipeline_mode<synchronous>, transform_indices = @transform_4, window_bounds = array<i64: 16, 128>}, {pipeline_mode = #tpu.pipeline_mode<synchronous>, transform_indices = @transform_5, window_bounds = array<i64: 16, 128>}, {pipeline_mode = #tpu.pipeline_mode<synchronous>, transform_indices = @transform_6, window_bounds = array<i64: 1, 128>}, {pipeline_mode = #tpu.pipeline_mode<synchronous>, transform_indices = @transform_7, window_bounds = array<i64: 128, 128>}, {pipeline_mode = #tpu.pipeline_mode<synchronous>, transform_indices = @transform_8, window_bounds = array<i64: 1, 128>}, {pipeline_mode = #tpu.pipeline_mode<synchronous>, transform_indices = @transform_9, window_bounds = array<i64: 128, 128>}, {pipeline_mode = #tpu.pipeline_mode<synchronous>, transform_indices = @transform_10, window_bounds = array<i64: 1, 128>}, {pipeline_mode = #tpu.pipeline_mode<synchronous>, transform_indices = @transform_11, window_bounds = array<i64: 32, 64>}, {pipeline_mode = #tpu.pipeline_mode<synchronous>, transform_indices = @transform_12, window_bounds = array<i64: 1, 64>}, {pipeline_mode = #tpu.pipeline_mode<synchronous>, transform_indices = @transform_13, window_bounds = array<i64: 64, 64>}, {pipeline_mode = #tpu.pipeline_mode<synchronous>, transform_indices = @transform_14, window_bounds = array<i64: 1, 64>}, {pipeline_mode = #tpu.pipeline_mode<synchronous>, transform_indices = @transform_15, window_bounds = array<i64: 64, 128>}, {pipeline_mode = #tpu.pipeline_mode<synchronous>, transform_indices = @transform_16, window_bounds = array<i64: 1, 128>}, {transform_indices = @transform_17, window_bounds = array<i64: 1, 16, 128>}]} {
    %c0 = arith.constant 0 : index
    %c0_0 = arith.constant 0 : index
    %c0_1 = arith.constant 0 : index
    %0 = vector.load %arg1[%c0, %c0_0, %c0_1] : memref<1x128x16xbf16, #tpu.memory_space<vmem>>, vector<1x128x16xbf16>
    %1 = vector.shape_cast %0 : vector<1x128x16xbf16> to vector<128x16xbf16>
    %c0_2 = arith.constant 0 : index
    %c0_3 = arith.constant 0 : index
    %c0_4 = arith.constant 0 : index
    %2 = vector.load %arg2[%c0_2, %c0_3, %c0_4] : memref<1x32x64xbf16, #tpu.memory_space<vmem>>, vector<1x32x64xbf16>
    %3 = vector.shape_cast %2 : vector<1x32x64xbf16> to vector<32x64xbf16>
    %c0_5 = arith.constant 0 : index
    %c0_6 = arith.constant 0 : index
    %c0_7 = arith.constant 0 : index
    %4 = vector.load %arg3[%c0_5, %c0_6, %c0_7] : memref<1x16x16xbf16, #tpu.memory_space<vmem>>, vector<1x16x16xbf16>
    %5 = vector.shape_cast %4 : vector<1x16x16xbf16> to vector<16x16xbf16>
    %c0_8 = arith.constant 0 : index
    %c0_9 = arith.constant 0 : index
    %6 = vector.load %arg4[%c0_8, %c0_9] : memref<64x128xbf16, #tpu.memory_space<vmem>>, vector<64x128xbf16>
    %c0_10 = arith.constant 0 : index
    %c0_11 = arith.constant 0 : index
    %7 = vector.load %arg5[%c0_10, %c0_11] : memref<16x128xbf16, #tpu.memory_space<vmem>>, vector<16x128xbf16>
    %c0_12 = arith.constant 0 : index
    %c0_13 = arith.constant 0 : index
    %8 = vector.load %arg6[%c0_12, %c0_13] : memref<16x128xbf16, #tpu.memory_space<vmem>>, vector<16x128xbf16>
    %c0_14 = arith.constant 0 : index
    %c0_15 = arith.constant 0 : index
    %9 = vector.load %arg7[%c0_14, %c0_15] : memref<1x128xf32, #tpu.memory_space<vmem>>, vector<1x128xf32>
    %cst = arith.constant dense<0.000000e+00> : vector<16x128xf32>
    %10 = tpu.matmul %5, %8, %cst {dimension_numbers = #tpu.dot_dimension_numbers<[1], [0], [0], [1], [0, 0, 1, 1], [], []>} : vector<16x16xbf16>, vector<16x128xbf16>, vector<16x128xf32> -> vector<16x128xf32>
    %11 = vector.broadcast %9 : vector<1x128xf32> to vector<16x128xf32>
    %12 = arith.addf %10, %11 : vector<16x128xf32>
    %cst_16 = arith.constant dense<0.000000e+00> : vector<32x128xf32>
    %13 = tpu.matmul %3, %6, %cst_16 {dimension_numbers = #tpu.dot_dimension_numbers<[1], [0], [0], [1], [0, 0, 1, 1], [], []>} : vector<32x64xbf16>, vector<64x128xbf16>, vector<32x128xf32> -> vector<32x128xf32>
    %cst_17 = arith.constant dense<0.000000e+00> : vector<128x128xf32>
    %14 = tpu.matmul %1, %7, %cst_17 {dimension_numbers = #tpu.dot_dimension_numbers<[1], [0], [0], [1], [0, 0, 1, 1], [], []>} : vector<128x16xbf16>, vector<16x128xbf16>, vector<128x128xf32> -> vector<128x128xf32>
    %15 = vector.shape_cast %12 : vector<16x128xf32> to vector<16x1x1x128xf32>
    %16 = vector.shape_cast %13 : vector<32x128xf32> to vector<16x1x2x128xf32>
    %17 = vector.shape_cast %14 : vector<128x128xf32> to vector<16x8x1x128xf32>
    %18 = vector.broadcast %16 : vector<16x1x2x128xf32> to vector<16x8x2x128xf32>
    %19 = vector.broadcast %17 : vector<16x8x1x128xf32> to vector<16x8x2x128xf32>
    %20 = arith.addf %18, %19 : vector<16x8x2x128xf32>
    %21 = vector.broadcast %15 : vector<16x1x1x128xf32> to vector<16x8x2x128xf32>
    %22 = arith.addf %20, %21 : vector<16x8x2x128xf32>
    %cst_18 = arith.constant 0.000000e+00 : f32
    %23 = vector.broadcast %cst_18 : f32 to vector<16x8x2x128xf32>
    %24 = arith.maximumf %22, %23 : vector<16x8x2x128xf32>
    %25 = vector.shape_cast %24 : vector<16x8x2x128xf32> to vector<256x128xf32>
    %c0_19 = arith.constant 0 : index
    %c0_20 = arith.constant 0 : index
    %26 = vector.load %arg8[%c0_19, %c0_20] : memref<128x128xbf16, #tpu.memory_space<vmem>>, vector<128x128xbf16>
    %27 = arith.truncf %25 : vector<256x128xf32> to vector<256x128xbf16>
    %cst_21 = arith.constant dense<0.000000e+00> : vector<256x128xf32>
    %28 = tpu.matmul %27, %26, %cst_21 {dimension_numbers = #tpu.dot_dimension_numbers<[1], [0], [0], [1], [0, 0, 1, 1], [], []>} : vector<256x128xbf16>, vector<128x128xbf16>, vector<256x128xf32> -> vector<256x128xf32>
    %c0_22 = arith.constant 0 : index
    %c0_23 = arith.constant 0 : index
    %29 = vector.load %arg9[%c0_22, %c0_23] : memref<1x128xf32, #tpu.memory_space<vmem>>, vector<1x128xf32>
    %30 = vector.broadcast %29 : vector<1x128xf32> to vector<256x128xf32>
    %31 = arith.addf %28, %30 : vector<256x128xf32>
    %cst_24 = arith.constant 0.000000e+00 : f32
    %32 = vector.broadcast %cst_24 : f32 to vector<256x128xf32>
    %33 = arith.maximumf %31, %32 : vector<256x128xf32>
    %c0_25 = arith.constant 0 : index
    %c0_26 = arith.constant 0 : index
    %34 = vector.load %arg10[%c0_25, %c0_26] : memref<128x128xbf16, #tpu.memory_space<vmem>>, vector<128x128xbf16>
    %35 = arith.truncf %33 : vector<256x128xf32> to vector<256x128xbf16>
    %cst_27 = arith.constant dense<0.000000e+00> : vector<256x128xf32>
    %36 = tpu.matmul %35, %34, %cst_27 {dimension_numbers = #tpu.dot_dimension_numbers<[1], [0], [0], [1], [0, 0, 1, 1], [], []>} : vector<256x128xbf16>, vector<128x128xbf16>, vector<256x128xf32> -> vector<256x128xf32>
    %c0_28 = arith.constant 0 : index
    %c0_29 = arith.constant 0 : index
    %37 = vector.load %arg11[%c0_28, %c0_29] : memref<1x128xf32, #tpu.memory_space<vmem>>, vector<1x128xf32>
    %38 = vector.broadcast %37 : vector<1x128xf32> to vector<256x128xf32>
    %39 = arith.addf %36, %38 : vector<256x128xf32>
    %cst_30 = arith.constant 0.000000e+00 : f32
    %40 = vector.broadcast %cst_30 : f32 to vector<256x128xf32>
    %41 = arith.maximumf %39, %40 : vector<256x128xf32>
    %42 = vector.shape_cast %41 : vector<256x128xf32> to vector<16x16x128xf32>
    %cst_31 = arith.constant dense<0.000000e+00> : vector<16x128xf32>
    %43 = vector.multi_reduction <add>, %42, %cst_31 [1] : vector<16x16x128xf32> to vector<16x128xf32>
    %44 = vector.extract_strided_slice %43 {offsets = [0, 0], sizes = [16, 32], strides = [1, 1]} : vector<16x128xf32> to vector<16x32xf32>
    %45 = vector.extract_strided_slice %43 {offsets = [0, 32], sizes = [16, 32], strides = [1, 1]} : vector<16x128xf32> to vector<16x32xf32>
    %46 = arith.addf %44, %45 : vector<16x32xf32>
    %47 = vector.extract_strided_slice %43 {offsets = [0, 64], sizes = [16, 32], strides = [1, 1]} : vector<16x128xf32> to vector<16x32xf32>
    %48 = arith.addf %46, %47 : vector<16x32xf32>
    %49 = vector.extract_strided_slice %43 {offsets = [0, 96], sizes = [16, 32], strides = [1, 1]} : vector<16x128xf32> to vector<16x32xf32>
    %50 = arith.addf %48, %49 : vector<16x32xf32>
    %c0_32 = arith.constant 0 : index
    %c0_33 = arith.constant 0 : index
    %51 = vector.load %arg12[%c0_32, %c0_33] : memref<32x64xbf16, #tpu.memory_space<vmem>>, vector<32x64xbf16>
    %c0_34 = arith.constant 0 : index
    %c0_35 = arith.constant 0 : index
    %52 = vector.load %arg13[%c0_34, %c0_35] : memref<1x64xf32, #tpu.memory_space<vmem>>, vector<1x64xf32>
    %c0_36 = arith.constant 0 : index
    %c0_37 = arith.constant 0 : index
    %53 = vector.load %arg14[%c0_36, %c0_37] : memref<64x64xbf16, #tpu.memory_space<vmem>>, vector<64x64xbf16>
    %c0_38 = arith.constant 0 : index
    %c0_39 = arith.constant 0 : index
    %54 = vector.load %arg15[%c0_38, %c0_39] : memref<1x64xf32, #tpu.memory_space<vmem>>, vector<1x64xf32>
    %c0_40 = arith.constant 0 : index
    %c0_41 = arith.constant 0 : index
    %55 = vector.load %arg16[%c0_40, %c0_41] : memref<64x128xbf16, #tpu.memory_space<vmem>>, vector<64x128xbf16>
    %c0_42 = arith.constant 0 : index
    %c0_43 = arith.constant 0 : index
    %56 = vector.load %arg17[%c0_42, %c0_43] : memref<1x128xf32, #tpu.memory_space<vmem>>, vector<1x128xf32>
    %57 = arith.truncf %50 : vector<16x32xf32> to vector<16x32xbf16>
    %cst_44 = arith.constant dense<0.000000e+00> : vector<16x64xf32>
    %58 = tpu.matmul %57, %51, %cst_44 {dimension_numbers = #tpu.dot_dimension_numbers<[1], [0], [0], [1], [0, 0, 1, 1], [], []>} : vector<16x32xbf16>, vector<32x64xbf16>, vector<16x64xf32> -> vector<16x64xf32>
    %59 = vector.broadcast %52 : vector<1x64xf32> to vector<16x64xf32>
    %60 = arith.addf %58, %59 : vector<16x64xf32>
    %cst_45 = arith.constant 0.000000e+00 : f32
    %61 = vector.broadcast %cst_45 : f32 to vector<16x64xf32>
    %62 = arith.maximumf %60, %61 : vector<16x64xf32>
    %63 = arith.truncf %62 : vector<16x64xf32> to vector<16x64xbf16>
    %cst_46 = arith.constant dense<0.000000e+00> : vector<16x64xf32>
    %64 = tpu.matmul %63, %53, %cst_46 {dimension_numbers = #tpu.dot_dimension_numbers<[1], [0], [0], [1], [0, 0, 1, 1], [], []>} : vector<16x64xbf16>, vector<64x64xbf16>, vector<16x64xf32> -> vector<16x64xf32>
    %65 = vector.broadcast %54 : vector<1x64xf32> to vector<16x64xf32>
    %66 = arith.addf %64, %65 : vector<16x64xf32>
    %cst_47 = arith.constant 0.000000e+00 : f32
    %67 = vector.broadcast %cst_47 : f32 to vector<16x64xf32>
    %68 = arith.maximumf %66, %67 : vector<16x64xf32>
    %69 = arith.truncf %68 : vector<16x64xf32> to vector<16x64xbf16>
    %cst_48 = arith.constant dense<0.000000e+00> : vector<16x128xf32>
    %70 = tpu.matmul %69, %55, %cst_48 {dimension_numbers = #tpu.dot_dimension_numbers<[1], [0], [0], [1], [0, 0, 1, 1], [], []>} : vector<16x64xbf16>, vector<64x128xbf16>, vector<16x128xf32> -> vector<16x128xf32>
    %71 = vector.broadcast %56 : vector<1x128xf32> to vector<16x128xf32>
    %72 = arith.addf %70, %71 : vector<16x128xf32>
    %c0_49 = arith.constant 0 : index
    %c0_50 = arith.constant 0 : index
    %c0_51 = arith.constant 0 : index
    %73 = vector.load %arg18[%c0_49, %c0_50, %c0_51] : memref<1x16x128xf32, #tpu.memory_space<vmem>>, vector<1x16x128xf32>
    %74 = vector.shape_cast %73 : vector<1x16x128xf32> to vector<16x128xf32>
    %75 = vector.shape_cast %72 : vector<16x128xf32> to vector<1x16x128xf32>
    tpu.vector_store %arg18[%c0_49, %c0_50, %c0_51], %75 {strides = array<i32>} : memref<1x16x128xf32, #tpu.memory_space<vmem>>, vector<1x16x128xf32>,
    return
  }
  func.func @transform_0(%arg0: i32) -> (i32, i32, i32) {
    %c0_i32 = arith.constant 0 : i32
    %c0_i32_0 = arith.constant 0 : i32
    %c0_i32_1 = arith.constant 0 : i32
    return %arg0, %c0_i32, %c0_i32_0 : i32, i32, i32
  }
  func.func @transform_1(%arg0: i32) -> (i32, i32, i32) {
    %c0_i32 = arith.constant 0 : i32
    %c0_i32_0 = arith.constant 0 : i32
    %c0_i32_1 = arith.constant 0 : i32
    return %arg0, %c0_i32, %c0_i32_0 : i32, i32, i32
  }
  func.func @transform_2(%arg0: i32) -> (i32, i32, i32) {
    %c0_i32 = arith.constant 0 : i32
    %c0_i32_0 = arith.constant 0 : i32
    %c0_i32_1 = arith.constant 0 : i32
    return %arg0, %c0_i32, %c0_i32_0 : i32, i32, i32
  }
  func.func @transform_3(%arg0: i32) -> (i32, i32) {
    %c0_i32 = arith.constant 0 : i32
    %c0_i32_0 = arith.constant 0 : i32
    %c0_i32_1 = arith.constant 0 : i32
    return %c0_i32, %c0_i32_0 : i32, i32
  }
  func.func @transform_4(%arg0: i32) -> (i32, i32) {
    %c0_i32 = arith.constant 0 : i32
    %c0_i32_0 = arith.constant 0 : i32
    %c0_i32_1 = arith.constant 0 : i32
    return %c0_i32, %c0_i32_0 : i32, i32
  }
  func.func @transform_5(%arg0: i32) -> (i32, i32) {
    %c0_i32 = arith.constant 0 : i32
    %c0_i32_0 = arith.constant 0 : i32
    %c0_i32_1 = arith.constant 0 : i32
    return %c0_i32, %c0_i32_0 : i32, i32
  }
  func.func @transform_6(%arg0: i32) -> (i32, i32) {
    %c0_i32 = arith.constant 0 : i32
    %c0_i32_0 = arith.constant 0 : i32
    %c0_i32_1 = arith.constant 0 : i32
    return %c0_i32, %c0_i32_0 : i32, i32
  }
  func.func @transform_7(%arg0: i32) -> (i32, i32) {
    %c0_i32 = arith.constant 0 : i32
    %c0_i32_0 = arith.constant 0 : i32
    %c0_i32_1 = arith.constant 0 : i32
    return %c0_i32, %c0_i32_0 : i32, i32
  }
  func.func @transform_8(%arg0: i32) -> (i32, i32) {
    %c0_i32 = arith.constant 0 : i32
    %c0_i32_0 = arith.constant 0 : i32
    %c0_i32_1 = arith.constant 0 : i32
    return %c0_i32, %c0_i32_0 : i32, i32
  }
  func.func @transform_9(%arg0: i32) -> (i32, i32) {
    %c0_i32 = arith.constant 0 : i32
    %c0_i32_0 = arith.constant 0 : i32
    %c0_i32_1 = arith.constant 0 : i32
    return %c0_i32, %c0_i32_0 : i32, i32
  }
  func.func @transform_10(%arg0: i32) -> (i32, i32) {
    %c0_i32 = arith.constant 0 : i32
    %c0_i32_0 = arith.constant 0 : i32
    %c0_i32_1 = arith.constant 0 : i32
    return %c0_i32, %c0_i32_0 : i32, i32
  }
  func.func @transform_11(%arg0: i32) -> (i32, i32) {
    %c0_i32 = arith.constant 0 : i32
    %c0_i32_0 = arith.constant 0 : i32
    %c0_i32_1 = arith.constant 0 : i32
    return %c0_i32, %c0_i32_0 : i32, i32
  }
  func.func @transform_12(%arg0: i32) -> (i32, i32) {
    %c0_i32 = arith.constant 0 : i32
    %c0_i32_0 = arith.constant 0 : i32
    %c0_i32_1 = arith.constant 0 : i32
    return %c0_i32, %c0_i32_0 : i32, i32
  }
  func.func @transform_13(%arg0: i32) -> (i32, i32) {
    %c0_i32 = arith.constant 0 : i32
    %c0_i32_0 = arith.constant 0 : i32
    %c0_i32_1 = arith.constant 0 : i32
    return %c0_i32, %c0_i32_0 : i32, i32
  }
  func.func @transform_14(%arg0: i32) -> (i32, i32) {
    %c0_i32 = arith.constant 0 : i32
    %c0_i32_0 = arith.constant 0 : i32
    %c0_i32_1 = arith.constant 0 : i32
    return %c0_i32, %c0_i32_0 : i32, i32
  }
  func.func @transform_15(%arg0: i32) -> (i32, i32) {
    %c0_i32 = arith.constant 0 : i32
    %c0_i32_0 = arith.constant 0 : i32
    %c0_i32_1 = arith.constant 0 : i32
    return %c0_i32, %c0_i32_0 : i32, i32
  }
  func.func @transform_16(%arg0: i32) -> (i32, i32) {
    %c0_i32 = arith.constant 0 : i32
    %c0_i32_0 = arith.constant 0 : i32
    %c0_i32_1 = arith.constant 0 : i32
    return %c0_i32, %c0_i32_0 : i32, i32
  }
  func.func @transform_17(%arg0: i32) -> (i32, i32, i32) {
    %c0_i32 = arith.constant 0 : i32
    %c0_i32_0 = arith.constant 0 : i32
    %c0_i32_1 = arith.constant 0 : i32
    return %arg0, %c0_i32, %c0_i32_0 : i32, i32, i32
  }
}

</mosaic_0001>

<bundles_post_ra>
// kernel: tpu_custom_call.1
= control target key start
LH: loop header
LB: loop body
LE: loop exit
PB: predicated region body
PF: predicated region fallthrough
CT: control target
= control target key end

     0   :  { %s6978_s0 = inlined_call_operand.vmem [shape: bf16[1,128,16], index: 0, kind: input, shape index: {}]   ;;  %s6979_s1 = inlined_call_operand.hbm [shape: bf16[1,32,64], index: 1, kind: input, shape index: {}]   ;;  %s6980_s2 = inlined_call_operand.hbm [shape: bf16[1,16,16], index: 2, kind: input, shape index: {}]   ;;  %s6981_s3 = inlined_call_operand.hbm [shape: bf16[64,128], index: 3, kind: input, shape index: {}]   ;;  %s6982_s4 = inlined_call_operand.hbm [shape: bf16[16,128], index: 4, kind: input, shape index: {}]   ;;  %s6983_s5 = inlined_call_operand.hbm [shape: bf16[16,128], index: 5, kind: input, shape index: {}]   ;;  %s6984_s6 = inlined_call_operand.vmem [shape: f32[1,128], index: 6, kind: input, shape index: {}]   ;;  %s6985_s7 = inlined_call_operand.vmem [shape: bf16[128,128], index: 7, kind: input, shape index: {}]   ;;  %s6986_s8 = inlined_call_operand.hbm [shape: f32[1,128], index: 8, kind: input, shape index: {}]   ;;  %s6987_s9 = inlined_call_operand.hbm [shape: bf16[128,128], index: 9, kind: input, shape index: {}]   ;;  %s6988_s10 = inlined_call_operand.hbm [shape: f32[1,128], index: 10, kind: input, shape index: {}]   ;;  %s6989_s11 = inlined_call_operand.hbm [shape: bf16[32,64], index: 11, kind: input, shape index: {}]   ;;  %s6990_s12 = inlined_call_operand.hbm [shape: f32[1,64], index: 12, kind: input, shape index: {}]   ;;  %s6991_s13 = inlined_call_operand.hbm [shape: bf16[64,64], index: 13, kind: input, shape index: {}]   ;;  %s6992_s14 = inlined_call_operand.hbm [shape: f32[1,64], index: 14, kind: input, shape index: {}]   ;;  %s6993_s15 = inlined_call_operand.vmem [shape: bf16[64,128], index: 15, kind: input, shape index: {}]   ;;  %s6994_s16 = inlined_call_operand.vmem [shape: f32[1,128], index: 16, kind: input, shape index: {}]   ;;  %s6995_s17 = inlined_call_operand.hbm [shape: f32[1,16,128], index: 17, kind: output, shape index: {}]  }
   0x1   :  { %7048 = sst [smem:[#allocation136_spill]] %s6978_s0 }
   0x2   :  { %7049 = sst [smem:[#allocation137_spill]] %s6979_s1 }
   0x3   :  { %22 = vsyncpa [#allocation3], 0 }
   0x4   :  { %23 = vsyncpa [#allocation6], 0 }
   0x5   :  { %24 = vsyncpa [#allocation9], 0 }
   0x6   :  { %25 = vsyncpa [#allocation12], 0 }
   0x7   :  { %26 = vsyncpa [#allocation15], 0 }
   0x8   :  { %27 = vsyncpa [#allocation18], 0 }
   0x9   :  { %28 = vsyncpa [#allocation21], 0 }
   0xa   :  { %29 = vsyncpa [#allocation4], 0  ;;  %s5239_s24 = smov [#allocation5]   ;;  %s5240_s26 = smov [#allocation8]  }
   0xb   :  { %s49_s25 = sshll.u32 %s5239_s24, 4  ;;  %s73_s27 = sshll.u32 %s5240_s26, 4  ;;  %s50_s25 = int_to_ptr.vmem [resolvable:$true] %s49_s25  ;;  %s74_s27 = int_to_ptr.vmem [resolvable:$true] %s73_s27 }
   0xc   :  { %s4971_s28 = scalar_lea.vmem %s50_s25, 128  ;;  %p4976_p1 = scmp.lt.s32.totalorder %s50_s25, %s50_s25 }
   0xd   :  { %p4972_p0 = scmp.ne.s32.totalorder %s50_s25, %s4971_s28  ;;  %p4977_p2 = scmp.lt.s32.totalorder %s4971_s28, %s4971_s28 }
   0xf   :  { %p4978_p3 = por %p4977_p2, %p4976_p1 }
  0x11   :  { %p4979_p4 = pnand %p4978_p3, %p4972_p0 }
  0x13   :  { %4982 = shalt.err (!%p4979_p4)
}
  0x14   :  { %s5241_s29 = smov 64   ;;  %s5242_s0 = smov 4  }
  0x15   :  { %55 = dma.hbm_to_vmem [thread:$0]  %s6980_s2, 128, %s50_s25, [#allocation6], %s5241_s29, %s5241_s29, %s5242_s0  }
  0x16   :  { %s4991_s19 = scalar_lea.vmem %s74_s27, 128  ;;  %p4996_p6 = scmp.lt.s32.totalorder %s74_s27, %s74_s27 }
  0x17   :  { %p4992_p5 = scmp.ne.s32.totalorder %s74_s27, %s4991_s19  ;;  %p4997_p7 = scmp.lt.s32.totalorder %s4991_s19, %s4991_s19 }
  0x19   :  { %p4998_p8 = por %p4997_p7, %p4996_p6 }
  0x1b   :  { %p4999_p9 = pnand %p4998_p8, %p4992_p5 }
  0x1d   :  { %5002 = shalt.err (!%p4999_p9)
}
  0x1e   :  { %79 = dma.hbm_to_vmem [thread:$0]  %s6982_s4, 128, %s74_s27, [#allocation9], %s5241_s29, %s5241_s29, %s5242_s0  }
  0x1f   :  { %s5243_s21 = smov [#allocation11]   ;;  %s5244_s23 = smov [#allocation14]  }
  0x20   :  { %s102_s22 = sshll.u32 %s5243_s21, 4  ;;  %s124_s24 = sshll.u32 %s5244_s23, 4  ;;  %s103_s22 = int_to_ptr.vmem [resolvable:$true] %s102_s22  ;;  %s125_s24 = int_to_ptr.vmem [resolvable:$true] %s124_s24 }
  0x21   :  { %s5011_s2 = scalar_lea.vmem %s103_s22, 16  ;;  %s5015_s25 = scalar_lea.vmem %s103_s22, 32 }
  0x22   :  { %p5012_p10 = scmp.ne.s32.totalorder %s103_s22, %s5011_s2  ;;  %p5016_p11 = scmp.lt.s32.totalorder %s103_s22, %s103_s22 }
  0x23   :  { %p5017_p12 = scmp.lt.s32.totalorder %s5015_s25, %s5011_s2 }
  0x25   :  { %p5018_p13 = por %p5017_p12, %p5016_p11 }
  0x27   :  { %p5019_p0 = pnand %p5018_p13, %p5012_p10 }
  0x29   :  { %5022 = shalt.err (!%p5019_p0)
}
  0x2a   :  { %105 = dma.hbm_to_vmem [thread:$0]  %s6986_s8, 16, %s103_s22, [#allocation12]  }
  0x2b   :  { %s5031_s30 = scalar_lea.vmem %s125_s24, 16  ;;  %s5035_s4 = scalar_lea.vmem %s125_s24, 32 }
  0x2c   :  { %p5032_p1 = scmp.ne.s32.totalorder %s125_s24, %s5031_s30  ;;  %p5036_p2 = scmp.lt.s32.totalorder %s125_s24, %s125_s24 }
  0x2d   :  { %p5037_p3 = scmp.lt.s32.totalorder %s5035_s4, %s5031_s30 }
  0x2f   :  { %p5038_p4 = por %p5037_p3, %p5036_p2 }
  0x31   :  { %p5039_p5 = pnand %p5038_p4, %p5032_p1 }
  0x33   :  { %5042 = shalt.err (!%p5039_p5)
}
  0x34   :  { %127 = dma.hbm_to_vmem [thread:$0]  %s6988_s10, 16, %s125_s24, [#allocation15]  }
  0x35   :  { %s5245_s19 = smov [#allocation17]   ;;  %s5246_s20 = smov [#allocation2]  }
  0x36   :  { %s146_s1 = sshll.u32 %s5245_s19, 4  ;;  %s37_s21 = sshll.u32 %s5246_s20, 4  ;;  %s147_s1 = int_to_ptr.vmem [resolvable:$true] %s146_s1  ;;  %s38_s21 = int_to_ptr.vmem [resolvable:$true] %s37_s21 }
  0x37   :  { %s5051_s23 = scalar_lea.vmem %s147_s1, 16  ;;  %s5055_s8 = scalar_lea.vmem %s147_s1, 32 }
  0x38   :  { %p5052_p6 = scmp.ne.s32.totalorder %s147_s1, %s5051_s23  ;;  %p5056_p7 = scmp.lt.s32.totalorder %s147_s1, %s147_s1 }
  0x39   :  { %p5057_p8 = scmp.lt.s32.totalorder %s5055_s8, %s5051_s23 }
  0x3b   :  { %p5058_p9 = por %p5057_p8, %p5056_p7 }
  0x3d   :  { %p5059_p10 = pnand %p5058_p9, %p5052_p6 }
  0x3f   :  { %5062 = shalt.err (!%p5059_p10)
}
  0x40   :  { %149 = dma.hbm_to_vmem [thread:$0]  %s6990_s12, 16, %s147_s1, [#allocation18]  }
  0x41   :  { %s5071_s25 = scalar_lea.vmem %s38_s21, 256  ;;  %p5076_p12 = scmp.lt.s32.totalorder %s38_s21, %s38_s21 }
  0x42   :  { %p5072_p11 = scmp.ne.s32.totalorder %s38_s21, %s5071_s25  ;;  %p5077_p13 = scmp.lt.s32.totalorder %s5071_s25, %s5071_s25 }
  0x44   :  { %p5078_p0 = por %p5077_p13, %p5076_p12 }
  0x46   :  { %p5079_p1 = pnand %p5078_p0, %p5072_p11 }
  0x48   :  { %5082 = shalt.err (!%p5079_p1)
}
  0x49   :  { %s7050_s26 = sld [smem:[#allocation137_spill]]  ;;  %s5247_s28 = smov [#allocation7]  }
  0x4a   :  { %s61_s30 = sshll.u32 %s5247_s28, 4  ;;  %s5248_s4 = smov [#allocation10]   ;;  %s62_s30 = int_to_ptr.vmem [resolvable:$true] %s61_s30 }
  0x4b   :  { %s85_s27 = sshll.u32 %s5248_s4, 4  ;;  %s5091_s12 = scalar_lea.vmem %s62_s30, 512  ;;  %s86_s27 = int_to_ptr.vmem [resolvable:$true] %s85_s27 }
  0x4c   :  { %p5092_p2 = scmp.ne.s32.totalorder %s62_s30, %s5091_s12  ;;  %p5096_p3 = scmp.lt.s32.totalorder %s62_s30, %s62_s30 }
  0x4d   :  { %p5097_p4 = scmp.lt.s32.totalorder %s5091_s12, %s5091_s12 }
  0x4f   :  { %43 = dma.hbm_to_vmem [thread:$0]  %s7050_s26, 256, %s38_s21, [#allocation3], %s5241_s29, %s5241_s29, %s5242_s0  }
  0x50   :  { %p5098_p5 = por %p5097_p4, %p5096_p3 }
  0x52   :  { %p5099_p6 = pnand %p5098_p5, %p5092_p2 }
  0x54   :  { %5102 = shalt.err (!%p5099_p6)
}
  0x55   :  { %67 = dma.hbm_to_vmem [thread:$0]  %s6981_s3, 512, %s62_s30, [#allocation6], %s5241_s29, %s5241_s29, %s5242_s0  }
  0x56   :  { %s5111_s1 = scalar_lea.vmem %s86_s27, 128  ;;  %p5116_p8 = scmp.lt.s32.totalorder %s86_s27, %s86_s27 }
  0x57   :  { %p5112_p7 = scmp.ne.s32.totalorder %s86_s27, %s5111_s1  ;;  %p5117_p9 = scmp.lt.s32.totalorder %s5111_s1, %s5111_s1 }
  0x59   :  { %p5118_p10 = por %p5117_p9, %p5116_p8 }
  0x5b   :  { %p5119_p11 = pnand %p5118_p10, %p5112_p7 }
  0x5d   :  { %5122 = shalt.err (!%p5119_p11)
}
  0x5e   :  { %91 = dma.hbm_to_vmem [thread:$0]  %s6983_s5, 128, %s86_s27, [#allocation9], %s5241_s29, %s5241_s29, %s5242_s0  }
  0x5f   :  { %s5249_s23 = smov [#allocation13]   ;;  %s5250_s22 = smov [#allocation16]  }
  0x60   :  { %s111_s8 = sshll.u32 %s5249_s23, 4  ;;  %s133_s2 = sshll.u32 %s5250_s22, 4  ;;  %s112_s8 = int_to_ptr.vmem [resolvable:$true] %s111_s8  ;;  %s134_s2 = int_to_ptr.vmem [resolvable:$true] %s133_s2 }
  0x61   :  { %s5131_s3 = scalar_lea.vmem %s112_s8, 1024  ;;  %p5136_p13 = scmp.lt.s32.totalorder %s112_s8, %s112_s8 }
  0x62   :  { %p5132_p12 = scmp.ne.s32.totalorder %s112_s8, %s5131_s3  ;;  %p5137_p0 = scmp.lt.s32.totalorder %s5131_s3, %s5131_s3 }
  0x64   :  { %p5138_p1 = por %p5137_p0, %p5136_p13 }
  0x66   :  { %p5139_p2 = pnand %p5138_p1, %p5132_p12 }
  0x68   :  { %5142 = shalt.err (!%p5139_p2)
}
  0x69   :  { %117 = dma.hbm_to_vmem [thread:$0]  %s6987_s9, 1024, %s112_s8, [#allocation12], %s5241_s29, %s5241_s29, %s5242_s0  }
  0x6a   :  { %s5151_s5 = scalar_lea.vmem %s134_s2, 256  ;;  %p5156_p4 = scmp.lt.s32.totalorder %s134_s2, %s134_s2 }
  0x6b   :  { %p5152_p3 = scmp.ne.s32.totalorder %s134_s2, %s5151_s5  ;;  %p5157_p5 = scmp.lt.s32.totalorder %s5151_s5, %s5151_s5 }
  0x6d   :  { %p5158_p6 = por %p5157_p5, %p5156_p4 }
  0x6f   :  { %p5159_p7 = pnand %p5158_p6, %p5152_p3 }
  0x71   :  { %5162 = shalt.err (!%p5159_p7)
}
  0x72   :  { %139 = dma.hbm_to_vmem [thread:$0]  %s6989_s11, 256, %s134_s2, [#allocation15], %s5241_s29, %s5241_s29, %s5242_s0  }
  0x73   :  { %s5251_s28 = smov [#allocation19]   ;;  %s5252_s4 = smov [#allocation20]  }
  0x74   :  { %s155_s30 = sshll.u32 %s5251_s28, 4  ;;  %s168_s27 = sshll.u32 %s5252_s4, 4  ;;  %s156_s30 = int_to_ptr.vmem [resolvable:$true] %s155_s30  ;;  %s169_s27 = int_to_ptr.vmem [resolvable:$true] %s168_s27 }
  0x75   :  { %s5171_s9 = scalar_lea.vmem %s156_s30, 512  ;;  %p5176_p9 = scmp.lt.s32.totalorder %s156_s30, %s156_s30 }
  0x76   :  { %p5172_p8 = scmp.ne.s32.totalorder %s156_s30, %s5171_s9  ;;  %p5177_p10 = scmp.lt.s32.totalorder %s5171_s9, %s5171_s9 }
  0x78   :  { %p5178_p11 = por %p5177_p10, %p5176_p9 }
  0x7a   :  { %p5179_p12 = pnand %p5178_p11, %p5172_p8 }
  0x7c   :  { %5182 = shalt.err (!%p5179_p12)
}
  0x7d   :  { %161 = dma.hbm_to_vmem [thread:$0]  %s6991_s13, 512, %s156_s30, [#allocation18], %s5241_s29, %s5241_s29, %s5242_s0  }
  0x7e   :  { %s5191_s11 = scalar_lea.vmem %s169_s27, 16  ;;  %s5195_s19 = scalar_lea.vmem %s169_s27, 32 }
  0x7f   :  { %p5192_p13 = scmp.ne.s32.totalorder %s169_s27, %s5191_s11  ;;  %p5196_p0 = scmp.lt.s32.totalorder %s169_s27, %s169_s27 }
  0x80   :  { %p5197_p1 = scmp.lt.s32.totalorder %s5195_s19, %s5191_s11 }
  0x82   :  { %p5198_p2 = por %p5197_p1, %p5196_p0 }
  0x84   :  { %p5199_p3 = pnand %p5198_p2, %p5192_p13 }
  0x86   :  { %5202 = shalt.err (!%p5199_p3)
}
  0x87   :  { %171 = dma.hbm_to_vmem [thread:$0]  %s6992_s14, 16, %s169_s27, [#allocation21]  }
  0x88   :  { %5223 = dma.done.wait [#allocation3], 256  }
  0x89   :  { %5224 = vsyncadd [#allocation3], 4294967040 }
  0x8a   :  { %5225 = dma.done.wait [#allocation6], 640  }
  0x8b   :  { %5226 = vsyncadd [#allocation6], 4294966656 }
  0x8c   :  { %5227 = dma.done.wait [#allocation9], 256  }
  0x8d   :  { %5228 = vsyncadd [#allocation9], 4294967040 }
  0x8e   :  { %5229 = dma.done.wait [#allocation12], 1040  }
  0x8f   :  { %5230 = vsyncadd [#allocation12], 4294966256 }
  0x90   :  { %5231 = dma.done.wait [#allocation15], 272  }
  0x91   :  { %5232 = vsyncadd [#allocation15], 4294967024 }
  0x92   :  { %5233 = dma.done.wait [#allocation18], 528  }
  0x93   :  { %5234 = vsyncadd [#allocation18], 4294966768 }
  0x94   :  { %5235 = dma.done.wait [#allocation21], 16  }
  0x95   :  { %5236 = vsyncadd [#allocation21], 4294967280  ;;  %v6997_v0 = vmov 0.0   ;;  %vm5254_vm0 = vmmov 0   ;;  %v4920_v1 = vld [vmem:[#allocation10] sm:$0xff]   ;;  %v4921_v2 = vld [vmem:[#allocation8] sm:$0xff]   ;;  %v573_v27 = vlaneseq }
  0x96   :  { %4733 = vmatprep.subr.bf16.mxu1 %v6997_v0  ;;  %4735 = vmatprep.mubr.msk.bf16.mxu1 %vm5254_vm0, %v6997_v0  ;;  %v4922_v3 = vld [vmem:[#allocation5] sm:$0xff]   ;;  %vm265_vm1 = vcmask 130048   ;;  %s7051_s0 = sld [smem:[#allocation136_spill]]  ;;  %v4926_v7 = vld [vmem:[#allocation7 + $0x10] sm:$0xff]   ;;  %v4927_v8 = vld [vmem:[#allocation7 + $0x8] sm:$0xff]   ;;  %vm344_vm2 = vcmask 523264  }
  0x97   :  { %4734 = vmatpush3.bf16.msra.mxu1 %v4920_v1  ;;  %4751 = vmatprep.subr.bf16.mxu0 %v4921_v2  ;;  %v4923_v4 = vld [vmem:[#allocation7 + $0x18] sm:$0xff]   ;;  %v4930_v11 = vld [vmem:[#allocation7] sm:$0xff]   ;;  %v4931_v12 = vld [vmem:[#allocation2] sm:$0xff]   ;;  %v5255_v25 = vmov 1966171168   ;;  %v574_v30 = vshrl.u32 %v573_v27, 7 }
  0x98   :  { %4752 = vmatpush3.bf16.msra.mxu0 %v4921_v2  ;;  %4739 = vmatprep.subr.bf16.mxu1 %v4923_v4  ;;  %v4932_v14 = vld [vmem:[#allocation2 + $0x8] sm:$0xff]   ;;  %v4937_v18 = vld [vmem:[%s6985_s7 + $0x38] sm:$0xff]   ;;  %v4938_v19 = vld [vmem:[%s6985_s7 + $0x30] sm:$0xff]   ;;  %v571_v26 = vunpack.c.l.s4 %v5255_v25  ;;  %v5256_v31 = vmov 1983009808   ;;  %vm4321_vm3 = vcmask 1041409  }
  0x99   :  { %4769 = vmatprep.subr.bf16.mxu0 %v4937_v18  ;;  %v4939_v20 = vld [vmem:[%s6985_s7 + $0x28] sm:$0xff]   ;;  %v4940_v21 = vld [vmem:[%s6985_s7 + $0x20] sm:$0xff]   ;;  %v4941_v22 = vld [vmem:[%s6985_s7 + $0x18] sm:$0xff]   ;;  %v673_v32 = vunpack.c.l.s4 %v5256_v31  ;;  %v5482_v44 = vsub.s32 0, %v574_v30  ;;  %vm4324_vm4 = vcmask 1042434   ;;  %vm4327_vm5 = vcmask 1043459  }
  0x9a   :  { %4736 = vmatmul.mubr.msk.bf16.vlgmr.msra.gmra.mxu1 %vm265_vm1, %v4922_v3  ;;  %v4942_v23 = vld [vmem:[%s6985_s7 + $0x10] sm:$0xff]   ;;  %v4943_v24 = vld [vmem:[%s6985_s7 + $0x8] sm:$0xff]   ;;  %v4944_v28 = vld [vmem:[%s6985_s7] sm:$0xff]   ;;  %v572_v29 = vunpack.c.0.s8 %v571_v26  ;;  %s5258_s7 = smov 32   ;;  %vm4330_vm6 = vcmask 1044484   ;;  %vm4333_vm7 = vcmask 1045509  }
  0x9b   :  { %4740 = vmatpush3.bf16.msra.mxu1 %v4923_v4  ;;  %4747 = vmatprep.mubr.msk.bf16.mxu1 %vm344_vm2, %v4931_v12  ;;  %v4592_v33 = vld [vmem:[%s6984_s6] ss:$0 sm:$0xff]  ;;  %v674_v36 = vunpack.c.0.s8 %v673_v32  ;;  %s5257_s6 = smov 96   ;;  %vm4336_vm8 = vcmask 1046534   ;;  %vm4339_vm9 = vcmask 1047559   ;;  %vm4368_vm10 = vcmask 261120  }
  0x9c   :  { %v4924_v5 = vld [vmem:[%s7051_s0] sm:$0xff]   ;;  %v4925_v6 = vld [vmem:[%s7051_s0 + $0x8] sm:$0xff]   ;;  %4741 = vmatprep.subr.bf16.mxu1 %v4926_v7  ;;  %v4928_v9 = vld [vmem:[%s7051_s0 + $0x10] sm:$0xff]   ;;  %v5478_v34 = vsub.s32 %v572_v29, %v574_v30 }
  0x9d   :  { %4753 = vmatprep.mubr.msk.bf16.mxu0 %vm265_vm1, %v4924_v5  ;;  %v4929_v10 = vld [vmem:[%s7051_s0 + $0x18] sm:$0xff]   ;;  %v4933_v13 = vld [vmem:[%s7051_s0 + $0x20] sm:$0xff]   ;;  %v4934_v15 = vld [vmem:[%s7051_s0 + $0x28] sm:$0xff]   ;;  %v5484_v47 = vsub.s32 %v674_v36, %v574_v30 }
  0x9e   :  { %4754 = vmatmul.mubr.msk.bf16.vlgmr.msra.gmra.mxu0 %vm265_vm1, %v4925_v6  ;;  %v4935_v16 = vld [vmem:[%s7051_s0 + $0x30] sm:$0xff]   ;;  %v4936_v17 = vld [vmem:[%s7051_s0 + $0x38] sm:$0xff]  }
  0x9f   :  { %4742 = vmatpush3.bf16.msra.mxu1 %v4926_v7  ;;  %4757 = vmatprep.mubr.msk.bf16.mxu0 %vm265_vm1, %v4928_v9 }
  0xa0   :  { %4743 = vmatprep.subr.bf16.mxu1 %v4927_v8  ;;  %4770 = vmatpush3.bf16.msra.mxu0 %v4937_v18 }
  0xa1   :  { %4771 = vmatprep.subr.bf16.mxu0 %v4938_v19 }
  0xa3   :  { %4744 = vmatpush3.bf16.msra.mxu1 %v4927_v8 }
  0xa4   :  { %4745 = vmatprep.subr.bf16.mxu1 %v4930_v11  ;;  %4772 = vmatpush3.bf16.msra.mxu0 %v4938_v19 }
  0xa5   :  { %4773 = vmatprep.subr.bf16.mxu0 %v4939_v20 }
  0xa6   :  { %4758 = vmatmul.mubr.msk.bf16.gmra.mxu0 %vm265_vm1, %v4929_v10 }
  0xa7   :  { %4761 = vmatprep.mubr.msk.bf16.mxu0 %vm265_vm1, %v4933_v13  ;;  %4746 = vmatpush3.bf16.msra.mxu1 %v4930_v11 }
  0xa8   :  { %4774 = vmatpush3.bf16.msra.mxu0 %v4939_v20 }
  0xa9   :  { %4775 = vmatprep.subr.bf16.mxu0 %v4940_v21 }
  0xaa   :  { %4748 = vmatmul.mubr.msk.bf16.vlgmr.msra.gmra.mxu1 %vm344_vm2, %v4932_v14 }
  0xac   :  { %4776 = vmatpush3.bf16.msra.mxu0 %v4940_v21 }
  0xad   :  { %4777 = vmatprep.subr.bf16.mxu0 %v4941_v22 }
  0xae   :  { %4762 = vmatmul.mubr.msk.bf16.gmra.mxu0 %vm265_vm1, %v4934_v15 }
  0xaf   :  { %4765 = vmatprep.mubr.msk.bf16.mxu0 %vm265_vm1, %v4935_v16 }
  0xb0   :  { %4778 = vmatpush3.bf16.msra.mxu0 %v4941_v22 }
  0xb1   :  { %4779 = vmatprep.subr.bf16.mxu0 %v4942_v23 }
  0xb4   :  { %4780 = vmatpush3.bf16.msra.mxu0 %v4942_v23 }
  0xb5   :  { %4781 = vmatprep.subr.bf16.mxu0 %v4943_v24 }
  0xb6   :  { %4766 = vmatmul.mubr.msk.bf16.gmra.mxu0 %vm265_vm1, %v4936_v17 }
  0xb8   :  { %4782 = vmatpush3.bf16.msra.mxu0 %v4943_v24 }
  0xb9   :  { %4783 = vmatprep.subr.bf16.mxu0 %v4944_v28 }
  0xbc   :  { %4784 = vmatpush3.bf16.msra.mxu0 %v4944_v28 }
  0xbd   :  { %4865 = vmatprep.subr.bf16.mxu0 %v6997_v0 }
 0x15a   :  { %v303_v35 = vpop.f32.mrf.mxu1 }
 0x15b   :  { %v304_v37 = vadd.f32 %v4592_v33, %v303_v35 }
 0x15c   :  { %v4737_v39 = vpop.f32.mrf.mxu1 }
 0x15d   :  { %v569_v40 = vcombine.high %v304_v37, %v304_v37  ;;  %v576_v41 = vrot.slane %v304_v37, %v5478_v34 }
 0x15e   :  { %v4755_v38 = vpop.f32.mrf.mxu0  ;;  %v306_v46 = vpop.f32.mrf.mxu1 }
 0x15f   :  { %v869_v42 = vcombine.high %v4755_v38, %v4755_v38  ;;  %v876_v43 = vrot.slane %v4755_v38, %v5478_v34  ;;  %v583_v48 = vrot.slane %v569_v40, %v5478_v34  ;;  %v584_v49 = vcombine.high %v576_v41, %v576_v41 }
 0x160   :  { %v504_v45 = vpop.f32.mrf.mxu0  ;;  %v592_v50 = vrot.slane %v576_v41, %v5478_v34  ;;  %v4738_v56 = vpop.f32.mrf.mxu1  ;;  %v307_v31 = vadd.f32 %v4592_v33, %v306_v46 }
 0x161   :  { %v883_v51 = vrot.slane %v869_v42, %v5478_v34  ;;  %v884_v52 = vcombine.high %v876_v43, %v876_v43  ;;  %v5490_v53 = vrot.slane %v876_v43, %v5478_v34  ;;  %v771_v54 = vcombine.high %v504_v45, %v504_v45 }
 0x162   :  { %v778_v55 = vrot.slane %v504_v45, %v5478_v34  ;;  %v585_v57 = vcombine.high %v583_v48, %v583_v48  ;;  %v599_v58 = vrot.slane %v583_v48, %v5478_v34  ;;  %v606_v59 = vrot.slane %v584_v49, %v5478_v34  ;;  %v4756_v6 = vpop.f32.mrf.mxu0 }
 0x163   :  { %v614_v60 = vcombine.high %v592_v50, %v592_v50  ;;  %v5496_v61 = vrot.slane %v592_v50, %v5482_v44  ;;  %v885_v62 = vcombine.high %v883_v51, %v883_v51  ;;  %v5499_v63 = vrot.slane %v883_v51, %v5478_v34 }
 0x164   :  { %v5502_v1 = vrot.slane %v884_v52, %v5478_v34  ;;  %v613_v2 = vrot.slane %v585_v57, %v5478_v34  ;;  %v615_v3 = vcombine.high %v599_v58, %v599_v58  ;;  %v616_v4 = vcombine.high %v606_v59, %v606_v59  ;;  %v5546_v23 = vpop.f32.mrf.mxu0 }
 0x165   :  { %7052 = vst [vmem:[#allocation31_spill] sm:$0xff] %v5499_v63  ;;  %v5506_v5 = vrot.slane %v606_v59, %v5482_v44  ;;  %v5509_v7 = vrot.slane %v614_v60, %v5482_v44  ;;  %v5512_v8 = vrot.slane %v599_v58, %v5482_v44  ;;  %v5515_v9 = vrot.slane %v885_v62, %v5478_v34 }
 0x166   :  { %v914_v10 = vcombine.high %v5490_v53, %v5490_v53  ;;  %v617_v11 = vcombine.high %v613_v2, %v613_v2  ;;  %v5520_v12 = vrot.slane %v616_v4, %v5482_v44  ;;  %v5523_v13 = vrot.slane %v613_v2, %v5482_v44 }
 0x167   :  { %7053 = vst [vmem:[#allocation32_spill] sm:$0xff] %v5509_v7  ;;  %7054 = vst [vmem:[#allocation33_spill] sm:$0xff] %v5512_v8  ;;  %v5526_v14 = vrot.slane %v615_v3, %v5482_v44  ;;  %v915_v15 = vcombine.high %v5499_v63, %v5499_v63  ;;  %v916_v16 = vcombine.high %v5502_v1, %v5502_v1 }
 0x168   :  { %7055 = vst [vmem:[#allocation34_spill] sm:$0xff] %v5515_v9  ;;  %7056 = vst [vmem:[#allocation35_spill] sm:$0xff] %v5520_v12  ;;  %v917_v17 = vcombine.high %v5515_v9, %v5515_v9  ;;  %v5537_v19 = vrot.slane %v617_v11, %v5482_v44  ;;  %v5542_v21 = vrot.slane %v914_v10, %v5482_v44 }
 0x169   :  { %7057 = vst [vmem:[#allocation36_spill] sm:$0xff] %v5523_v13  ;;  %7058 = vst [vmem:[#allocation37_spill] sm:$0xff] %v5526_v14  ;;  %v5549_v24 = vrot.slane %v916_v16, %v5482_v44  ;;  %v5554_v26 = vrot.slane %v915_v15, %v5482_v44  ;;  %v785_v28 = vrot.slane %v771_v54, %v5478_v34 }
 0x16a   :  { %7059 = vst [vmem:[#allocation38_spill] sm:$0xff] %v5537_v19  ;;  %v5557_v27 = vrot.slane %v917_v17, %v5482_v44  ;;  %v786_v29 = vcombine.high %v778_v55, %v778_v55  ;;  %v5561_v30 = vrot.slane %v778_v55, %v5478_v34  ;;  %v918_v32 = vcombine.high %v4756_v6, %v4756_v6 }
 0x16b   :  { %7060 = vst [vmem:[#allocation39_spill] sm:$0xff] %v5554_v26  ;;  %v925_v35 = vrot.slane %v4756_v6, %v5478_v34  ;;  %v820_v36 = vcombine.high %v5546_v23, %v5546_v23  ;;  %v5568_v37 = vrot.slane %v5546_v23, %v5478_v34  ;;  %v787_v38 = vcombine.high %v785_v28, %v785_v28 }
 0x16c   :  { %7061 = vst [vmem:[#allocation40_spill] sm:$0xff] %v5557_v27  ;;  %v5571_v39 = vrot.slane %v785_v28, %v5478_v34  ;;  %v5574_v40 = vrot.slane %v786_v29, %v5478_v34  ;;  %v816_v33 = vcombine.high %v5561_v30, %v5561_v30  ;;  %v618_v42 = vcombine.high %v307_v31, %v307_v31 }
 0x16d   :  { %v625_v43 = vrot.slane %v307_v31, %v5478_v34  ;;  %v932_v45 = vrot.slane %v918_v32, %v5478_v34  ;;  %v5583_v46 = vrot.slane %v787_v38, %v5478_v34  ;;  %v933_v6 = vcombine.high %v925_v35, %v925_v35 }
 0x16e   :  { %v817_v48 = vcombine.high %v5571_v39, %v5571_v39  ;;  %v818_v49 = vcombine.high %v5574_v40, %v5574_v40  ;;  %v5592_v51 = vrot.slane %v816_v33, %v5482_v44  ;;  %v632_v54 = vrot.slane %v618_v42, %v5478_v34 }
 0x16f   :  { %v633_v55 = vcombine.high %v625_v43, %v625_v43  ;;  %v819_v56 = vcombine.high %v5583_v46, %v5583_v46  ;;  %v641_v62 = vrot.slane %v625_v43, %v5478_v34  ;;  %v934_v10 = vcombine.high %v932_v45, %v932_v45  ;;  %v4759_v43 = vpop.f32.mrf.mxu0 }
 0x170   :  { %v5600_v57 = vrot.slane %v818_v49, %v5482_v44  ;;  %v5605_v59 = vrot.slane %v817_v48, %v5482_v44  ;;  %v634_v60 = vcombine.high %v632_v54, %v632_v54  ;;  %v648_v2 = vrot.slane %v632_v54, %v5478_v34 }
 0x171   :  { %v655_v3 = vrot.slane %v633_v55, %v5478_v34  ;;  %v5611_v4 = vrot.slane %v819_v56, %v5482_v44  ;;  %v5614_v11 = vrot.slane %v925_v35, %v5478_v34  ;;  %v663_v16 = vcombine.high %v641_v62, %v641_v62 }
 0x172   :  { %v662_v15 = vrot.slane %v634_v60, %v5478_v34  ;;  %v664_v17 = vcombine.high %v648_v2, %v648_v2  ;;  %v5618_v28 = vrot.slane %v641_v62, %v5482_v44  ;;  %v5624_v31 = vrot.slane %v648_v2, %v5482_v44 }
 0x173   :  { %7062 = vst [vmem:[#allocation41_spill] sm:$0xff] %v5614_v11  ;;  %v665_v23 = vcombine.high %v655_v3, %v655_v3  ;;  %v5621_v29 = vrot.slane %v655_v3, %v5482_v44  ;;  %v5627_v32 = vrot.slane %v932_v45, %v5478_v34  ;;  %v5630_v35 = vrot.slane %v663_v16, %v5482_v44 }
 0x174   :  { %7063 = vst [vmem:[#allocation42_spill] sm:$0xff] %v5618_v28  ;;  %v666_v38 = vcombine.high %v662_v15, %v662_v15  ;;  %v5636_v42 = vrot.slane %v662_v15, %v5482_v44  ;;  %v5639_v48 = vrot.slane %v664_v17, %v5482_v44  ;;  %v5642_v49 = vrot.slane %v933_v6, %v5478_v34 }
 0x175   :  { %7064 = vst [vmem:[#allocation43_spill] sm:$0xff] %v5627_v32  ;;  %7065 = vst [vmem:[#allocation44_spill] sm:$0xff] %v5630_v35  ;;  %v5633_v33 = vrot.slane %v665_v23, %v5482_v44  ;;  %v5645_v45 = vrot.slane %v934_v10, %v5478_v34  ;;  %v963_v54 = vcombine.high %v5614_v11, %v5614_v11 }
 0x176   :  { %7067 = vst [vmem:[#allocation46_spill] sm:$0xff] %v5639_v48  ;;  %7068 = vst [vmem:[#allocation47_spill] sm:$0xff] %v5642_v49  ;;  %v5650_v55 = vrot.slane %v666_v38, %v5482_v44  ;;  %v964_v56 = vcombine.high %v5627_v32, %v5627_v32  ;;  %v965_v2 = vcombine.high %v5642_v49, %v5642_v49  ;;  %v520_v38 = vpop.f32.mrf.mxu0 }
 0x177   :  { %7066 = vst [vmem:[#allocation45_spill] sm:$0xff] %v5633_v33  ;;  %7069 = vst [vmem:[#allocation48_spill] sm:$0xff] %v5645_v45  ;;  %v966_v3 = vcombine.high %v5645_v45, %v5645_v45  ;;  %v5665_v10 = vrot.slane %v963_v54, %v5482_v44  ;;  %v834_v17 = vrot.slane %v820_v36, %v5478_v34 }
 0x178   :  { %7070 = vst [vmem:[#allocation49_spill] sm:$0xff] %v5650_v55  ;;  %v5670_v16 = vrot.slane %v964_v56, %v5482_v44  ;;  %v835_v23 = vcombine.high %v5568_v37, %v5568_v37  ;;  %v5676_v0 = vrot.slane %v965_v2, %v5482_v44  ;;  %v5683_v54 = vrot.slane %v5568_v37, %v5478_v34 }
 0x179   :  { %7071 = vst [vmem:[#allocation50_spill] sm:$0xff] %v5665_v10  ;;  %v5679_v62 = vrot.slane %v966_v3, %v5482_v44  ;;  %v1065_v15 = vcombine.high %v4759_v43, %v4759_v43  ;;  %v836_v6 = vcombine.high %v834_v17, %v834_v17  ;;  %v5686_v56 = vrot.slane %v834_v17, %v5478_v34 }
 0x17a   :  { %7072 = vst [vmem:[#allocation51_spill] sm:$0xff] %v5670_v16  ;;  %7073 = vst [vmem:[#allocation52_spill] sm:$0xff] %v5676_v0  ;;  %v5689_v36 = vrot.slane %v835_v23, %v5478_v34  ;;  %v1072_v60 = vrot.slane %v4759_v43, %v5478_v34  ;;  %v865_v2 = vcombine.high %v5683_v54, %v5683_v54  ;;  %v4760_v43 = vpop.f32.mrf.mxu0 }
 0x17b   :  { %7074 = vst [vmem:[#allocation53_spill] sm:$0xff] %v5679_v62  ;;  %v1079_v25 = vrot.slane %v1065_v15, %v5478_v34  ;;  %v967_v37 = vcombine.high %v520_v38, %v520_v38  ;;  %v5698_v22 = vrot.slane %v836_v6, %v5478_v34  ;;  %v866_v17 = vcombine.high %v5686_v56, %v5686_v56 }
 0x17c   :  { %v867_v23 = vcombine.high %v5689_v36, %v5689_v36  ;;  %v5707_v20 = vrot.slane %v865_v2, %v5482_v44  ;;  %v1080_v15 = vcombine.high %v1072_v60, %v1072_v60  ;;  %v5722_v2 = vrot.slane %v1072_v60, %v5478_v34  ;;  %v523_v8 = vpop.f32.mrf.mxu0 }
 0x17d   :  { %v1081_v3 = vcombine.high %v1079_v25, %v1079_v25  ;;  %v868_v6 = vcombine.high %v5698_v22, %v5698_v22  ;;  %v5719_v50 = vrot.slane %v866_v17, %v5482_v44  ;;  %v5725_v18 = vrot.slane %v1079_v25, %v5478_v34 }
 0x17e   :  { %v5714_v58 = vrot.slane %v867_v23, %v5482_v44  ;;  %7075 = vst [vmem:[#allocation54_spill] sm:$0xff] %v5722_v2  ;;  %v5728_v41 = vrot.slane %v1080_v15, %v5478_v34  ;;  %v974_v52 = vrot.slane %v520_v38, %v5478_v34  ;;  %v981_v17 = vrot.slane %v967_v37, %v5478_v34 }
 0x17f   :  { %7076 = vst [vmem:[#allocation55_spill] sm:$0xff] %v5725_v18  ;;  %v5731_v19 = vrot.slane %v1081_v3, %v5478_v34  ;;  %v5734_v23 = vrot.slane %v868_v6, %v5482_v44  ;;  %v1114_v14 = vcombine.high %v4760_v43, %v4760_v43  ;;  %v1110_v60 = vcombine.high %v5722_v2, %v5722_v2 }
 0x180   :  { %7077 = vst [vmem:[#allocation56_spill] sm:$0xff] %v5728_v41  ;;  %v1111_v25 = vcombine.high %v5725_v18, %v5725_v18  ;;  %v1112_v15 = vcombine.high %v5728_v41, %v5728_v41  ;;  %v982_v38 = vcombine.high %v974_v52, %v974_v52  ;;  %v983_v41 = vcombine.high %v981_v17, %v981_v17 }
 0x181   :  { %7078 = vst [vmem:[#allocation57_spill] sm:$0xff] %v5731_v19  ;;  %v1113_v3 = vcombine.high %v5731_v19, %v5731_v19  ;;  %v5755_v12 = vrot.slane %v1110_v60, %v5482_v44  ;;  %v5767_v37 = vrot.slane %v974_v52, %v5478_v34  ;;  %v5770_v13 = vrot.slane %v981_v17, %v5478_v34 }
 0x182   :  { %v5758_v62 = vrot.slane %v1112_v15, %v5482_v44  ;;  %v5761_v16 = vrot.slane %v1111_v25, %v5482_v44  ;;  %v1121_v60 = vrot.slane %v4760_v43, %v5478_v34  ;;  %v1128_v19 = vrot.slane %v1114_v14, %v5478_v34 }
 0x183   :  { %7079 = vst [vmem:[#allocation58_spill] sm:$0xff] %v5755_v12  ;;  %v5764_v6 = vrot.slane %v1113_v3, %v5482_v44  ;;  %7083 = vst [vmem:[#allocation62_spill] sm:$0xff] %v5767_v37  ;;  %v1016_v15 = vcombine.high %v523_v8, %v523_v8  ;;  %v1023_v18 = vrot.slane %v523_v8, %v5478_v34 }
 0x184   :  { %7080 = vst [vmem:[#allocation59_spill] sm:$0xff] %v5758_v62  ;;  %7081 = vst [vmem:[#allocation60_spill] sm:$0xff] %v5761_v16  ;;  %v5776_v25 = vrot.slane %v982_v38, %v5478_v34  ;;  %v5779_v3 = vrot.slane %v983_v41, %v5478_v34  ;;  %v1012_v52 = vcombine.high %v5767_v37, %v5767_v37 }
 0x185   :  { %7082 = vst [vmem:[#allocation61_spill] sm:$0xff] %v5764_v6  ;;  %7084 = vst [vmem:[#allocation63_spill] sm:$0xff] %v5770_v13  ;;  %v1013_v17 = vcombine.high %v5770_v13, %v5770_v13  ;;  %v1129_v6 = vcombine.high %v1121_v60, %v1121_v60  ;;  %v1130_v8 = vcombine.high %v1128_v19, %v1128_v19 }
 0x186   :  { %7085 = vst [vmem:[#allocation64_spill] sm:$0xff] %v5776_v25  ;;  %7086 = vst [vmem:[#allocation65_spill] sm:$0xff] %v5779_v3  ;;  %v1014_v38 = vcombine.high %v5776_v25, %v5776_v25  ;;  %v1015_v41 = vcombine.high %v5779_v3, %v5779_v3  ;;  %v5796_v62 = vrot.slane %v1012_v52, %v5482_v44 }
 0x187   :  { %v5801_v12 = vrot.slane %v1013_v17, %v5482_v44  ;;  %v5804_v14 = vrot.slane %v1121_v60, %v5478_v34  ;;  %v5807_v2 = vrot.slane %v1128_v19, %v5478_v34  ;;  %v5816_v52 = vrot.slane %v1129_v6, %v5478_v34 }
 0x188   :  { %7087 = vst [vmem:[#allocation66_spill] sm:$0xff] %v5796_v62  ;;  %v5810_v13 = vrot.slane %v1014_v38, %v5482_v44  ;;  %v5813_v16 = vrot.slane %v1015_v41, %v5482_v44  ;;  %v5819_v43 = vrot.slane %v1130_v8, %v5478_v34  ;;  %v4749_v41 = vpop.f32.mrf.mxu1  ;;  %v1030_v38 = vrot.slane %v1016_v15, %v5478_v34 }
 0x189   :  { %7088 = vst [vmem:[#allocation67_spill] sm:$0xff] %v5801_v12  ;;  %7089 = vst [vmem:[#allocation68_spill] sm:$0xff] %v5804_v14  ;;  %v1159_v17 = vcombine.high %v5804_v14, %v5804_v14  ;;  %v1160_v60 = vcombine.high %v5807_v2, %v5807_v2  ;;  %v1161_v6 = vcombine.high %v5816_v52, %v5816_v52  ;;  %v4763_v14 = vpop.f32.mrf.mxu0 }
 0x18a   :  { %7090 = vst [vmem:[#allocation69_spill] sm:$0xff] %v5807_v2  ;;  %7091 = vst [vmem:[#allocation70_spill] sm:$0xff] %v5810_v13  ;;  %v1162_v8 = vcombine.high %v5819_v43, %v5819_v43  ;;  %v1031_v2 = vcombine.high %v1023_v18, %v1023_v18  ;;  %v705_v12 = vcombine.high %v4749_v41, %v4749_v41 }
 0x18b   :  { %7092 = vst [vmem:[#allocation71_spill] sm:$0xff] %v5813_v16  ;;  %7093 = vst [vmem:[#allocation72_spill] sm:$0xff] %v5816_v52  ;;  %v5838_v3 = vrot.slane %v1159_v17, %v5482_v44  ;;  %v5841_v19 = vrot.slane %v1160_v60, %v5482_v44  ;;  %v5845_v13 = vrot.slane %v1161_v6, %v5482_v44  ;;  %v536_v52 = vpop.f32.mrf.mxu0 }
 0x18c   :  { %7094 = vst [vmem:[#allocation73_spill] sm:$0xff] %v5819_v43  ;;  %v5848_v62 = vrot.slane %v1162_v8, %v5482_v44  ;;  %v5851_v16 = vrot.slane %v1023_v18, %v5478_v34  ;;  %v1032_v43 = vcombine.high %v1030_v38, %v1030_v38  ;;  %v5854_v17 = vrot.slane %v1030_v38, %v5478_v34 }
 0x18d   :  { %7095 = vst [vmem:[#allocation74_spill] sm:$0xff] %v5838_v3  ;;  %7096 = vst [vmem:[#allocation75_spill] sm:$0xff] %v5841_v19  ;;  %v5857_v60 = vrot.slane %v1031_v2, %v5478_v34  ;;  %v5860_v15 = vrot.slane %v4749_v41, %v5484_v47  ;;  %v719_v18 = vrot.slane %v705_v12, %v5484_v47  ;;  %v385_v3 = vpop.f32.mrf.mxu1 }
 0x18e   :  { %7097 = vst [vmem:[#allocation76_spill] sm:$0xff] %v5845_v13  ;;  %7098 = vst [vmem:[#allocation77_spill] sm:$0xff] %v5848_v62  ;;  %v1061_v6 = vcombine.high %v5851_v16, %v5851_v16  ;;  %v1261_v62 = vcombine.high %v4763_v14, %v4763_v14  ;;  %v5868_v19 = vrot.slane %v1032_v43, %v5478_v34 }
 0x18f   :  { %7099 = vst [vmem:[#allocation78_spill] sm:$0xff] %v5851_v16  ;;  %7100 = vst [vmem:[#allocation79_spill] sm:$0xff] %v5854_v17  ;;  %v1062_v38 = vcombine.high %v5854_v17, %v5854_v17  ;;  %v1063_v2 = vcombine.high %v5857_v60, %v5857_v60  ;;  %v1268_v12 = vrot.slane %v4763_v14, %v5478_v34 }
 0x190   :  { %7101 = vst [vmem:[#allocation80_spill] sm:$0xff] %v5857_v60  ;;  %7102 = vst [vmem:[#allocation81_spill] sm:$0xff] %v5868_v19  ;;  %v5877_v13 = vrot.slane %v1061_v6, %v5482_v44  ;;  %v1275_v43 = vrot.slane %v1261_v62, %v5478_v34  ;;  %v1064_v16 = vcombine.high %v5868_v19, %v5868_v19 }
 0x191   :  { %v5886_v25 = vrot.slane %v1063_v2, %v5482_v44  ;;  %v5891_v6 = vrot.slane %v1062_v38, %v5482_v44  ;;  %v1284_v14 = vrot.slane %v1268_v12, %v5478_v34  ;;  %v671_v60 = vcombine.high %v385_v3, %v385_v3 }
 0x192   :  { %7103 = vst [vmem:[#allocation82_spill] sm:$0xff] %v5877_v13  ;;  %v1276_v13 = vcombine.high %v1268_v12, %v1268_v12  ;;  %v1277_v8 = vcombine.high %v1275_v43, %v1275_v43  ;;  %v1291_v62 = vrot.slane %v1275_v43, %v5478_v34  ;;  %v5896_v17 = vrot.slane %v1064_v16, %v5482_v44 }
 0x193   :  { %7104 = vst [vmem:[#allocation83_spill] sm:$0xff] %v5886_v25  ;;  %7105 = vst [vmem:[#allocation84_spill] sm:$0xff] %v5891_v6  ;;  %v5899_v37 = vrot.slane %v385_v3, %v5484_v47  ;;  %v1163_v2 = vcombine.high %v536_v52, %v536_v52  ;;  %v1306_v38 = vcombine.high %v1284_v14, %v1284_v14 }
 0x194   :  { %7106 = vst [vmem:[#allocation85_spill] sm:$0xff] %v5896_v17  ;;  %v1298_v25 = vrot.slane %v1276_v13, %v5478_v34  ;;  %v1305_v41 = vrot.slane %v1277_v8, %v5478_v34  ;;  %v1307_v6 = vcombine.high %v1291_v62, %v1291_v62  ;;  %v1878_v19 = vrot.slane %v1284_v14, %v5482_v44 }
 0x195   :  { %v1894_v12 = vrot.slane %v1291_v62, %v5482_v44  ;;  %v5906_v43 = vrot.slane %v671_v60, %v5484_v47  ;;  %v5910_v16 = vcombine.high %v5899_v37, %v5899_v37  ;;  %v1886_v13 = vrot.slane %v1306_v38, %v5482_v44  ;;  %v4750_v62 = vpop.f32.mrf.mxu1 }
 0x196   :  { %v1308_v3 = vcombine.high %v1298_v25, %v1298_v25  ;;  %v1309_v17 = vcombine.high %v1305_v41, %v1305_v41  ;;  %v1882_v45 = vrot.slane %v1298_v25, %v5482_v44  ;;  %v1898_v8 = vrot.slane %v1305_v41, %v5482_v44 }
 0x197   :  { %v1902_v32 = vrot.slane %v1307_v6, %v5482_v44  ;;  %v2275_v14 = vadd.f32 %v1878_v19, %v719_v18  ;;  %v2279_v0 = vadd.f32 %v1894_v12, %v719_v18  ;;  %v2277_v11 = vadd.f32 %v1886_v13, %v719_v18  ;;  %v4764_v6 = vpop.f32.mrf.mxu0  ;;  %v388_v13 = vpop.f32.mrf.mxu1 }
 0x198   :  { %v1890_v60 = vrot.slane %v1308_v3, %v5482_v44  ;;  %v1906_v10 = vrot.slane %v1309_v17, %v5482_v44  ;;  %v2276_v49 = vadd.f32 %v1882_v45, %v719_v18  ;;  %v5918_v7 = vadd.f32 %v1898_v8, %v719_v18 }
 0x199   :  { %v5920_v27 = vadd.f32 %v1902_v32, %v719_v18  ;;  %v5923_v25 = vadd.f32 %v5630_v35, %v2275_v14  ;;  %v5926_v41 = vadd.f32 %v5630_v35, %v2279_v0  ;;  %v5936_v45 = vadd.f32 %v5630_v35, %v2277_v11 }
 0x19a   :  { %7107 = vst [vmem:[#allocation86_spill] sm:$0xff] %v5918_v7  ;;  %v5928_v19 = vadd.f32 %v1890_v60, %v719_v18  ;;  %v5930_v38 = vadd.f32 %v1906_v10, %v719_v18  ;;  %v5933_v12 = vadd.f32 %v5630_v35, %v2276_v49  ;;  %v5941_v17 = vcombine.high %v5906_v43, %v5906_v43 }
 0x19b   :  { %7108 = vst [vmem:[#allocation87_spill] sm:$0xff] %v5920_v27  ;;  %7109 = vst [vmem:[#allocation88_spill] sm:$0xff] %v5923_v25  ;;  %v1170_v0 = vrot.slane %v536_v52, %v5478_v34  ;;  %v1177_v3 = vrot.slane %v1163_v2, %v5478_v34  ;;  %v722_v8 = vcombine.high %v4750_v62, %v4750_v62 }
 0x19c   :  { %7110 = vst [vmem:[#allocation89_spill] sm:$0xff] %v5926_v41  ;;  %7111 = vst [vmem:[#allocation90_spill] sm:$0xff] %v5928_v19  ;;  %v5946_v10 = vrot.slane %v4750_v62, %v5484_v47  ;;  %v5948_v49 = vcombine.high %v719_v18, %v719_v18  ;;  %v1310_v14 = vcombine.high %v4764_v6, %v4764_v6 }
 0x19d   :  { %7112 = vst [vmem:[#allocation91_spill] sm:$0xff] %v5930_v38  ;;  %7113 = vst [vmem:[#allocation92_spill] sm:$0xff] %v5933_v12  ;;  %v1178_v11 = vcombine.high %v1170_v0, %v1170_v0  ;;  %v1179_v60 = vcombine.high %v1177_v3, %v1177_v3  ;;  %v1186_v32 = vrot.slane %v1170_v0, %v5478_v34 }
 0x19e   :  { %7114 = vst [vmem:[#allocation93_spill] sm:$0xff] %v5936_v45  ;;  %7115 = vst [vmem:[#allocation94_spill] sm:$0xff] %v5941_v17  ;;  %v1193_v25 = vrot.slane %v1177_v3, %v5478_v34  ;;  %v5953_v41 = vrot.slane %v722_v8, %v5484_v47  ;;  %v1317_v52 = vrot.slane %v4764_v6, %v5478_v34 }
 0x19f   :  { %v1324_v2 = vrot.slane %v1310_v14, %v5478_v34  ;;  %v688_v45 = vcombine.high %v388_v13, %v388_v13  ;;  %v1200_v62 = vrot.slane %v1178_v11, %v5478_v34  ;;  %v1207_v18 = vrot.slane %v1179_v60, %v5478_v34  ;;  %v539_v14 = vpop.f32.mrf.mxu0 }
 0x1a0   :  { %v1208_v12 = vcombine.high %v1186_v32, %v1186_v32  ;;  %v1209_v38 = vcombine.high %v1193_v25, %v1193_v25  ;;  %v1814_v27 = vrot.slane %v1186_v32, %v5482_v44  ;;  %v1830_v0 = vrot.slane %v1193_v25, %v5482_v44 }
 0x1a1   :  { %v1325_v7 = vcombine.high %v1317_v52, %v1317_v52  ;;  %v1326_v3 = vcombine.high %v1324_v2, %v1324_v2  ;;  %v1210_v35 = vcombine.high %v1200_v62, %v1200_v62  ;;  %v1211_v8 = vcombine.high %v1207_v18, %v1207_v18 }
 0x1a2   :  { %v1818_v19 = vrot.slane %v1200_v62, %v5482_v44  ;;  %v1822_v6 = vrot.slane %v1208_v12, %v5482_v44  ;;  %v1834_v17 = vrot.slane %v1207_v18, %v5482_v44  ;;  %v1838_v11 = vrot.slane %v1209_v38, %v5482_v44 }
 0x1a3   :  { %v2259_v60 = vadd.f32 %v1814_v27, %v5860_v15  ;;  %v2263_v26 = vadd.f32 %v1830_v0, %v5860_v15  ;;  %v1826_v32 = vrot.slane %v1210_v35, %v5482_v44  ;;  %v1842_v25 = vrot.slane %v1211_v8, %v5482_v44  ;;  %v4767_v0 = vpop.f32.mrf.mxu0 }
 0x1a4   :  { %v2260_v9 = vadd.f32 %v1818_v19, %v5860_v15  ;;  %v2261_v63 = vadd.f32 %v1822_v6, %v5860_v15  ;;  %v5972_v62 = vadd.f32 %v1834_v17, %v5860_v15  ;;  %v5975_v12 = vadd.f32 %v1838_v11, %v5860_v15 }
 0x1a5   :  { %v5978_v38 = vadd.f32 %v5618_v28, %v2259_v60  ;;  %v5981_v27 = vadd.f32 %v5618_v28, %v2263_v26  ;;  %v5984_v35 = vadd.f32 %v1826_v32, %v5860_v15  ;;  %v5987_v18 = vadd.f32 %v1842_v25, %v5860_v15 }
 0x1a6   :  { %7116 = vst [vmem:[#allocation95_spill] sm:$0xff] %v5972_v62  ;;  %7117 = vst [vmem:[#allocation96_spill] sm:$0xff] %v5975_v12  ;;  %v5990_v19 = vadd.f32 %v5618_v28, %v2260_v9  ;;  %v5993_v17 = vadd.f32 %v5618_v28, %v2261_v63  ;;  %v1333_v6 = vrot.slane %v1317_v52, %v5478_v34 }
 0x1a7   :  { %7118 = vst [vmem:[#allocation97_spill] sm:$0xff] %v5978_v38  ;;  %7119 = vst [vmem:[#allocation98_spill] sm:$0xff] %v5981_v27  ;;  %v1340_v26 = vrot.slane %v1324_v2, %v5478_v34  ;;  %v1347_v11 = vrot.slane %v1325_v7, %v5478_v34  ;;  %v1354_v60 = vrot.slane %v1326_v3, %v5478_v34  ;;  %v552_v27 = vpop.f32.mrf.mxu0 }
 0x1a8   :  { %7120 = vst [vmem:[#allocation99_spill] sm:$0xff] %v5984_v35  ;;  %7121 = vst [vmem:[#allocation100_spill] sm:$0xff] %v5987_v18  ;;  %v6001_v32 = vrot.slane %v388_v13, %v5484_v47  ;;  %v6004_v9 = vrot.slane %v688_v45, %v5484_v47  ;;  %v6008_v63 = vcombine.high %v5860_v15, %v5860_v15 }
 0x1a9   :  { %7122 = vst [vmem:[#allocation101_spill] sm:$0xff] %v5990_v19  ;;  %7123 = vst [vmem:[#allocation102_spill] sm:$0xff] %v5993_v17  ;;  %v1355_v25 = vcombine.high %v1333_v6, %v1333_v6  ;;  %v1356_v8 = vcombine.high %v1340_v26, %v1340_v26  ;;  %v1357_v38 = vcombine.high %v1347_v11, %v1347_v11 }
 0x1aa   :  { %7124 = vst [vmem:[#allocation103_spill] sm:$0xff] %v6004_v9  ;;  %v1910_v52 = vrot.slane %v1333_v6, %v5482_v44  ;;  %v1358_v2 = vcombine.high %v1354_v60, %v1354_v60  ;;  %v1914_v7 = vrot.slane %v1347_v11, %v5482_v44  ;;  %v1926_v3 = vrot.slane %v1340_v26, %v5482_v44 }
 0x1ab   :  { %v1930_v13 = vrot.slane %v1354_v60, %v5482_v44  ;;  %v1918_v45 = vrot.slane %v1355_v25, %v5482_v44  ;;  %v1922_v17 = vrot.slane %v1357_v38, %v5482_v44  ;;  %v1934_v15 = vrot.slane %v1356_v8, %v5482_v44 }
 0x1ac   :  { %v2283_v19 = vadd.f32 %v1910_v52, %v5948_v49  ;;  %v1938_v18 = vrot.slane %v1358_v2, %v5482_v44  ;;  %v2284_v6 = vadd.f32 %v1914_v7, %v5948_v49  ;;  %v2287_v12 = vadd.f32 %v1926_v3, %v5948_v49 }
 0x1ad   :  { %v6022_v11 = vadd.f32 %v1930_v13, %v5948_v49  ;;  %v2285_v26 = vadd.f32 %v1918_v45, %v5948_v49  ;;  %v6026_v60 = vadd.f32 %v1922_v17, %v5948_v49  ;;  %v6029_v38 = vadd.f32 %v1934_v15, %v5948_v49  ;;  %v6047_v17 = vpop.f32.mrf.mxu0 }
 0x1ae   :  { %v6032_v8 = vadd.f32 %v5633_v33, %v2283_v19  ;;  %v6035_v25 = vadd.f32 %v1938_v18, %v5948_v49  ;;  %v6038_v52 = vadd.f32 %v5633_v33, %v2284_v6  ;;  %v6041_v2 = vadd.f32 %v5633_v33, %v2287_v12 }
 0x1af   :  { %7125 = vst [vmem:[#allocation104_spill] sm:$0xff] %v6022_v11  ;;  %7126 = vst [vmem:[#allocation105_spill] sm:$0xff] %v6026_v60  ;;  %v6045_v7 = vcombine.high %v6001_v32, %v6001_v32  ;;  %v6050_v3 = vadd.f32 %v5633_v33, %v2285_v26  ;;  %v6055_v49 = vcombine.high %v6004_v9, %v6004_v9 }
 0x1b0   :  { %7127 = vst [vmem:[#allocation106_spill] sm:$0xff] %v6029_v38  ;;  %7128 = vst [vmem:[#allocation107_spill] sm:$0xff] %v6032_v8  ;;  %v1212_v18 = vcombine.high %v539_v14, %v539_v14  ;;  %v1219_v13 = vrot.slane %v539_v14, %v5478_v34  ;;  %v1457_v12 = vcombine.high %v4767_v0, %v4767_v0 }
 0x1b1   :  { %7129 = vst [vmem:[#allocation108_spill] sm:$0xff] %v6035_v25  ;;  %7130 = vst [vmem:[#allocation109_spill] sm:$0xff] %v6038_v52  ;;  %v1464_v45 = vrot.slane %v4767_v0, %v5478_v34  ;;  %v1359_v15 = vcombine.high %v552_v27, %v552_v27  ;;  %v6065_v26 = vcombine.high %v5953_v41, %v5953_v41 }
 0x1b2   :  { %7131 = vst [vmem:[#allocation110_spill] sm:$0xff] %v6041_v2  ;;  %7132 = vst [vmem:[#allocation111_spill] sm:$0xff] %v6050_v3  ;;  %v1226_v6 = vrot.slane %v1212_v18, %v5478_v34  ;;  %v6061_v2 = vrot.slane %v552_v27, %v5478_v34  ;;  %v1227_v8 = vcombine.high %v1219_v13, %v1219_v13 }
 0x1b3   :  { %7133 = vst [vmem:[#allocation112_spill] sm:$0xff] %v6055_v49  ;;  %v1235_v3 = vrot.slane %v1219_v13, %v5478_v34  ;;  %v1471_v14 = vrot.slane %v1457_v12, %v5478_v34  ;;  %v1472_v52 = vcombine.high %v1464_v45, %v1464_v45  ;;  %v1480_v18 = vrot.slane %v1464_v45, %v5478_v34 }
 0x1b4   :  { %v1228_v0 = vcombine.high %v1226_v6, %v1226_v6  ;;  %v1242_v25 = vrot.slane %v1226_v6, %v5478_v34  ;;  %v6074_v27 = vrot.slane %v1359_v15, %v5478_v34  ;;  %v1249_v38 = vrot.slane %v1227_v8, %v5478_v34 }
 0x1b5   :  { %v1257_v11 = vcombine.high %v1235_v3, %v1235_v3  ;;  %v1846_v33 = vrot.slane %v1235_v3, %v5482_v44  ;;  %v1473_v19 = vcombine.high %v1471_v14, %v1471_v14  ;;  %v1487_v62 = vrot.slane %v1471_v14, %v5478_v34 }
 0x1b6   :  { %v1256_v60 = vrot.slane %v1228_v0, %v5478_v34  ;;  %v1258_v13 = vcombine.high %v1242_v25, %v1242_v25  ;;  %v1862_v12 = vrot.slane %v1242_v25, %v5482_v44  ;;  %v1259_v28 = vcombine.high %v1249_v38, %v1249_v38 }
 0x1b7   :  { %v1850_v6 = vrot.slane %v1249_v38, %v5482_v44  ;;  %v1854_v45 = vrot.slane %v1257_v11, %v5482_v44  ;;  %v2267_v15 = vadd.f32 %v1846_v33, %v6008_v63 }
 0x1b8   :  { %v1260_v35 = vcombine.high %v1256_v60, %v1256_v60  ;;  %v1866_v8 = vrot.slane %v1256_v60, %v5482_v44  ;;  %v1870_v3 = vrot.slane %v1258_v13, %v5482_v44  ;;  %v2271_v49 = vadd.f32 %v1862_v12, %v6008_v63 }
 0x1b9   :  { %v1858_v0 = vrot.slane %v1259_v28, %v5482_v44  ;;  %v2268_v25 = vadd.f32 %v1850_v6, %v6008_v63  ;;  %v2269_v14 = vadd.f32 %v1854_v45, %v6008_v63  ;;  %v6091_v9 = vadd.f32 %v5621_v29, %v2267_v15 }
 0x1ba   :  { %v1874_v11 = vrot.slane %v1260_v35, %v5482_v44  ;;  %v6095_v33 = vadd.f32 %v1866_v8, %v6008_v63  ;;  %v6098_v60 = vadd.f32 %v1870_v3, %v6008_v63  ;;  %v6101_v38 = vadd.f32 %v5621_v29, %v2271_v49 }
 0x1bb   :  { %7134 = vst [vmem:[#allocation113_spill] sm:$0xff] %v6091_v9  ;;  %v6104_v28 = vadd.f32 %v1858_v0, %v6008_v63  ;;  %v6107_v13 = vadd.f32 %v5621_v29, %v2268_v25  ;;  %v6110_v12 = vadd.f32 %v5621_v29, %v2269_v14  ;;  %v1494_v45 = vrot.slane %v1472_v52, %v5478_v34 }
 0x1bc   :  { %7135 = vst [vmem:[#allocation114_spill] sm:$0xff] %v6101_v38  ;;  %v6114_v6 = vadd.f32 %v1874_v11, %v6008_v63  ;;  %v1501_v15 = vrot.slane %v1473_v19, %v5478_v34  ;;  %v1502_v49 = vcombine.high %v1480_v18, %v1480_v18  ;;  %v1503_v8 = vcombine.high %v1487_v62, %v1487_v62 }
 0x1bd   :  { %7136 = vst [vmem:[#allocation115_spill] sm:$0xff] %v6107_v13  ;;  %7137 = vst [vmem:[#allocation116_spill] sm:$0xff] %v6110_v12  ;;  %v2006_v3 = vrot.slane %v1480_v18, %v5482_v44  ;;  %v2022_v0 = vrot.slane %v1487_v62, %v5482_v44  ;;  %v1374_v25 = vcombine.high %v6061_v2, %v6061_v2 }
 0x1be   :  { %v1504_v14 = vcombine.high %v1494_v45, %v1494_v45  ;;  %v1505_v38 = vcombine.high %v1501_v15, %v1501_v15  ;;  %v2010_v35 = vrot.slane %v1494_v45, %v5482_v44  ;;  %v2014_v63 = vrot.slane %v1502_v49, %v5482_v44 }
 0x1bf   :  { %v2026_v11 = vrot.slane %v1501_v15, %v5482_v44  ;;  %v2030_v52 = vrot.slane %v1503_v8, %v5482_v44  ;;  %v2307_v19 = vadd.f32 %v2006_v3, %v5953_v41  ;;  %v2311_v9 = vadd.f32 %v2022_v0, %v5953_v41 }
 0x1c0   :  { %v2018_v18 = vrot.slane %v1504_v14, %v5482_v44  ;;  %v2034_v62 = vrot.slane %v1505_v38, %v5482_v44  ;;  %v2308_v12 = vadd.f32 %v2010_v35, %v5953_v41  ;;  %v2309_v13 = vadd.f32 %v2014_v63, %v5953_v41 }
 0x1c1   :  { %v6133_v45 = vadd.f32 %v2026_v11, %v5953_v41  ;;  %v6136_v49 = vadd.f32 %v2030_v52, %v5953_v41  ;;  %v6139_v15 = vadd.f32 %v5639_v48, %v2307_v19  ;;  %v6142_v8 = vadd.f32 %v5639_v48, %v2311_v9 }
 0x1c2   :  { %v6145_v3 = vadd.f32 %v2018_v18, %v5953_v41  ;;  %v6148_v38 = vadd.f32 %v2034_v62, %v5953_v41  ;;  %v6151_v35 = vadd.f32 %v5639_v48, %v2308_v12  ;;  %v6154_v0 = vadd.f32 %v5639_v48, %v2309_v13 }
 0x1c3   :  { %7138 = vst [vmem:[#allocation117_spill] sm:$0xff] %v6133_v45  ;;  %7139 = vst [vmem:[#allocation118_spill] sm:$0xff] %v6136_v49  ;;  %v1375_v63 = vcombine.high %v6074_v27, %v6074_v27  ;;  %v1382_v9 = vrot.slane %v6061_v2, %v5478_v34  ;;  %v1389_v11 = vrot.slane %v6074_v27, %v5478_v34 }
 0x1c4   :  { %7140 = vst [vmem:[#allocation119_spill] sm:$0xff] %v6139_v15  ;;  %7141 = vst [vmem:[#allocation120_spill] sm:$0xff] %v6142_v8  ;;  %v1396_v41 = vrot.slane %v1374_v25, %v5478_v34  ;;  %v1513_v12 = vrot.slane %v6047_v17, %v5478_v34  ;;  %v7146_v13 = vcombine.high %v6047_v17, %v6047_v17 }
 0x1c5   :  { %7142 = vst [vmem:[#allocation121_spill] sm:$0xff] %v6145_v3  ;;  %7143 = vst [vmem:[#allocation122_spill] sm:$0xff] %v6148_v38  ;;  %v6172_v19 = vcombine.high %v5946_v10, %v5946_v10  ;;  %v1403_v18 = vrot.slane %v1375_v63, %v5478_v34  ;;  %v1404_v2 = vcombine.high %v1382_v9, %v1382_v9 }
 0x1c6   :  { %7144 = vst [vmem:[#allocation123_spill] sm:$0xff] %v6151_v35  ;;  %7145 = vst [vmem:[#allocation124_spill] sm:$0xff] %v6154_v0  ;;  %v1520_v52 = vrot.slane %v7146_v13, %v5478_v34  ;;  %v1405_v62 = vcombine.high %v1389_v11, %v1389_v11  ;;  %v1942_v27 = vrot.slane %v1382_v9, %v5482_v44 }
 0x1c7   :  { %v1406_v14 = vcombine.high %v1396_v41, %v1396_v41  ;;  %v1946_v25 = vrot.slane %v1396_v41, %v5482_v44  ;;  %v1958_v15 = vrot.slane %v1389_v11, %v5482_v44  ;;  %v1521_v8 = vcombine.high %v1513_v12, %v1513_v12 }
 0x1c8   :  { %v1407_v0 = vcombine.high %v1403_v18, %v1403_v18  ;;  %v1950_v17 = vrot.slane %v1404_v2, %v5482_v44  ;;  %v1962_v13 = vrot.slane %v1403_v18, %v5482_v44  ;;  %v1966_v35 = vrot.slane %v1405_v62, %v5482_v44  ;;  %v555_v18 = vpop.f32.mrf.mxu0 }
 0x1c9   :  { %v1954_v38 = vrot.slane %v1406_v14, %v5482_v44  ;;  %v2291_v63 = vadd.f32 %v1942_v27, %v5946_v10  ;;  %v2292_v49 = vadd.f32 %v1946_v25, %v5946_v10  ;;  %v2295_v9 = vadd.f32 %v1958_v15, %v5946_v10 }
 0x1ca   :  { %v1970_v41 = vrot.slane %v1407_v0, %v5482_v44  ;;  %v2293_v11 = vadd.f32 %v1950_v17, %v5946_v10  ;;  %v6188_v45 = vadd.f32 %v1962_v13, %v5946_v10  ;;  %v6191_v2 = vadd.f32 %v1966_v35, %v5946_v10 }
 0x1cb   :  { %v6194_v62 = vadd.f32 %v1954_v38, %v5946_v10  ;;  %v6197_v14 = vadd.f32 %v5624_v31, %v2291_v63  ;;  %v6200_v27 = vadd.f32 %v5624_v31, %v2292_v49  ;;  %v6203_v15 = vadd.f32 %v5624_v31, %v2295_v9 }
 0x1cc   :  { %v6206_v0 = vadd.f32 %v1970_v41, %v5946_v10  ;;  %v6209_v25 = vadd.f32 %v5624_v31, %v2293_v11  ;;  %v1522_v35 = vcombine.high %v1520_v52, %v1520_v52  ;;  %v1529_v17 = vrot.slane %v1513_v12, %v5478_v34 }
 0x1cd   :  { %7147 = vst [vmem:[#allocation125_spill] sm:$0xff] %v6197_v14  ;;  %7148 = vst [vmem:[#allocation126_spill] sm:$0xff] %v6200_v27  ;;  %v1536_v13 = vrot.slane %v1520_v52, %v5478_v34  ;;  %v1543_v63 = vrot.slane %v1521_v8, %v5478_v34  ;;  %v1408_v49 = vcombine.high %v555_v18, %v555_v18 }
 0x1ce   :  { %7149 = vst [vmem:[#allocation127_spill] sm:$0xff] %v6203_v15  ;;  %7150 = vst [vmem:[#allocation128_spill] sm:$0xff] %v6209_v25  ;;  %v1550_v48 = vrot.slane %v1522_v35, %v5478_v34  ;;  %v1551_v9 = vcombine.high %v1529_v17, %v1529_v17  ;;  %v2038_v3 = vrot.slane %v1529_v17, %v5482_v44 }
 0x1cf   :  { %v1415_v10 = vrot.slane %v555_v18, %v5478_v34  ;;  %v1552_v41 = vcombine.high %v1536_v13, %v1536_v13  ;;  %v1553_v11 = vcombine.high %v1543_v63, %v1543_v63  ;;  %v2042_v15 = vrot.slane %v1543_v63, %v5482_v44 }
 0x1d0   :  { %v2054_v12 = vrot.slane %v1536_v13, %v5482_v44  ;;  %v1554_v25 = vcombine.high %v1550_v48, %v1550_v48  ;;  %v2046_v38 = vrot.slane %v1551_v9, %v5482_v44  ;;  %v2058_v52 = vrot.slane %v1550_v48, %v5482_v44 }
 0x1d1   :  { %v2315_v8 = vadd.f32 %v2038_v3, %v6065_v26  ;;  %v2050_v35 = vrot.slane %v1553_v11, %v5482_v44  ;;  %v2062_v14 = vrot.slane %v1552_v41, %v5482_v44  ;;  %v2316_v17 = vadd.f32 %v2042_v15, %v6065_v26 }
 0x1d2   :  { %v2319_v18 = vadd.f32 %v2054_v12, %v6065_v26  ;;  %v2066_v27 = vrot.slane %v1554_v25, %v5482_v44  ;;  %v2317_v63 = vadd.f32 %v2046_v38, %v6065_v26  ;;  %v6230_v13 = vadd.f32 %v2058_v52, %v6065_v26 }
 0x1d3   :  { %v6233_v9 = vadd.f32 %v5650_v55, %v2315_v8  ;;  %v6236_v48 = vadd.f32 %v2050_v35, %v6065_v26  ;;  %v6239_v3 = vadd.f32 %v2062_v14, %v6065_v26  ;;  %v6242_v15 = vadd.f32 %v5650_v55, %v2316_v17  ;;  %v4945_v17 = vld [vmem:[#allocation13 + $0x38] sm:$0xff]  }
 0x1d4   :  { %7151 = vst [vmem:[#allocation129_spill] sm:$0xff] %v6230_v13  ;;  %v6245_v41 = vadd.f32 %v5650_v55, %v2319_v18  ;;  %v6248_v25 = vadd.f32 %v2066_v27, %v6065_v26  ;;  %v6251_v38 = vadd.f32 %v5650_v55, %v2317_v63  ;;  %v1422_v12 = vrot.slane %v1408_v49, %v5478_v34  ;;  %v4946_v18 = vld [vmem:[#allocation13 + $0x30] sm:$0xff]  }
 0x1d5   :  { %7152 = vst [vmem:[#allocation130_spill] sm:$0xff] %v6233_v9  ;;  %7153 = vst [vmem:[#allocation131_spill] sm:$0xff] %v6239_v3  ;;  %v1423_v52 = vcombine.high %v1415_v10, %v1415_v10  ;;  %v1431_v14 = vrot.slane %v1415_v10, %v5478_v34  ;;  %v7158_v8 = vrot.slane %v5561_v30, %v5482_v44  ;;  %4817 = vmatprep.subr.bf16.mxu1 %v4945_v17 }
 0x1d6   :  { %7154 = vst [vmem:[#allocation132_spill] sm:$0xff] %v6242_v15  ;;  %7155 = vst [vmem:[#allocation133_spill] sm:$0xff] %v6245_v41  ;;  %v7159_v26 = vrot.slane %v5574_v40, %v5482_v44  ;;  %v1424_v63 = vcombine.high %v1422_v12, %v1422_v12  ;;  %v1438_v11 = vrot.slane %v1422_v12, %v5478_v34  ;;  %4818 = vmatpush3.bf16.msra.mxu1 %v4945_v17 }
 0x1d7   :  { %7156 = vst [vmem:[#allocation134_spill] sm:$0xff] %v6248_v25  ;;  %7157 = vst [vmem:[#allocation135_spill] sm:$0xff] %v6251_v38  ;;  %v2195_v35 = vadd.f32 %v7158_v8, %v5899_v37  ;;  %v2197_v49 = vadd.f32 %v5592_v51, %v5899_v37  ;;  %v2198_v10 = vadd.f32 %v5600_v57, %v5899_v37  ;;  %4819 = vmatprep.subr.bf16.mxu1 %v4946_v18 }
 0x1d8   :  { %v2196_v27 = vadd.f32 %v7159_v26, %v5899_v37  ;;  %v1445_v9 = vrot.slane %v1423_v52, %v5478_v34  ;;  %v1453_v30 = vcombine.high %v1431_v14, %v1431_v14  ;;  %v1974_v8 = vrot.slane %v1431_v14, %v5482_v44 }
 0x1d9   :  { %v7160_v40 = vrot.slane %v5571_v39, %v5482_v44  ;;  %v1452_v41 = vrot.slane %v1424_v63, %v5478_v34  ;;  %v1454_v12 = vcombine.high %v1438_v11, %v1438_v11  ;;  %v1990_v38 = vrot.slane %v1438_v11, %v5482_v44 }
 0x1da   :  { %v7161_v51 = vrot.slane %v5583_v46, %v5482_v44  ;;  %v1455_v52 = vcombine.high %v1445_v9, %v1445_v9  ;;  %v1978_v14 = vrot.slane %v1445_v9, %v5482_v44  ;;  %v1982_v15 = vrot.slane %v1453_v30, %v5482_v44  ;;  %4820 = vmatpush3.bf16.msra.mxu1 %v4946_v18 }
 0x1db   :  { %v2199_v26 = vadd.f32 %v7160_v40, %v5899_v37  ;;  %v2299_v39 = vadd.f32 %v1974_v8, %v6172_v19  ;;  %v4947_v40 = vld [vmem:[#allocation13 + $0x28] sm:$0xff]   ;;  %v1456_v25 = vcombine.high %v1452_v41, %v1452_v41  ;;  %v1994_v34 = vrot.slane %v1452_v41, %v5482_v44 }
 0x1dc   :  { %v2200_v57 = vadd.f32 %v7161_v51, %v5899_v37  ;;  %v1998_v11 = vrot.slane %v1454_v12, %v5482_v44  ;;  %v2303_v63 = vadd.f32 %v1990_v38, %v6172_v19  ;;  %v1986_v46 = vrot.slane %v1455_v52, %v5482_v44  ;;  %4821 = vmatprep.subr.bf16.mxu1 %v4947_v40 }
 0x1dd   :  { %v2300_v17 = vadd.f32 %v1978_v14, %v6172_v19  ;;  %v2301_v51 = vadd.f32 %v1982_v15, %v6172_v19  ;;  %v6291_v9 = vadd.f32 %v5636_v42, %v2299_v39  ;;  %v2002_v30 = vrot.slane %v1456_v25, %v5482_v44  ;;  %v4948_v14 = vld [vmem:[#allocation13 + $0x20] sm:$0xff]  }
 0x1de   :  { %v6295_v8 = vadd.f32 %v1994_v34, %v6172_v19  ;;  %v6298_v41 = vadd.f32 %v1998_v11, %v6172_v19  ;;  %v6301_v12 = vadd.f32 %v5636_v42, %v2303_v63  ;;  %v6304_v38 = vadd.f32 %v1986_v46, %v6172_v19  ;;  %4822 = vmatpush3.bf16.msra.mxu1 %v4947_v40 }
 0x1df   :  { %v6307_v15 = vadd.f32 %v5636_v42, %v2300_v17  ;;  %v6310_v52 = vadd.f32 %v5636_v42, %v2301_v51  ;;  %v6314_v39 = vadd.f32 %v2002_v30, %v6172_v19  ;;  %v2201_v34 = vadd.f32 %v5605_v59, %v5899_v37  ;;  %4823 = vmatprep.subr.bf16.mxu1 %v4948_v14 }
 0x1e0   :  { %v2202_v18 = vadd.f32 %v5611_v4, %v5899_v37  ;;  %v2403_v11 = vadd.f32 %v5496_v61, %v2195_v35  ;;  %v2404_v63 = vadd.f32 %v5496_v61, %v2196_v27  ;;  %v2405_v46 = vadd.f32 %v5496_v61, %v2197_v49  ;;  %v4949_v27 = vld [vmem:[#allocation13 + $0x18] sm:$0xff]  }
 0x1e1   :  { %v2406_v17 = vadd.f32 %v5496_v61, %v2198_v10  ;;  %v2407_v51 = vadd.f32 %v5496_v61, %v2199_v26  ;;  %v2408_v25 = vadd.f32 %v5496_v61, %v2200_v57  ;;  %v2409_v19 = vadd.f32 %v5496_v61, %v2201_v34 }
 0x1e2   :  { %v2410_v30 = vadd.f32 %v5496_v61, %v2202_v18  ;;  %v2531_v59 = vmax.f32 %v2403_v11, 0.0  ;;  %v2532_v3 = vmax.f32 %v2404_v63, 0.0  ;;  %v2533_v4 = vmax.f32 %v2405_v46, 0.0  ;;  %4824 = vmatpush3.bf16.msra.mxu1 %v4948_v14 }
 0x1e3   :  { %v2534_v37 = vmax.f32 %v2406_v17, 0.0  ;;  %v2535_v35 = vmax.f32 %v2407_v51, 0.0  ;;  %v2536_v13 = vmax.f32 %v2408_v25, 0.0  ;;  %v2537_v49 = vmax.f32 %v2409_v19, 0.0  ;;  %4825 = vmatprep.subr.bf16.mxu1 %v4949_v27 }
 0x1e4   :  { %v2538_v55 = vmax.f32 %v2410_v30, 0.0  ;;  %v7162_v10 = vrot.slane %v5683_v54, %v5482_v44  ;;  %v2803_v57 = vcombine.low %v2531_v59, %v2532_v3  ;;  %v7163_v61 = vrot.slane %v5689_v36, %v5482_v44 }
 0x1e5   :  { %v2804_v34 = vcombine.low %v2533_v4, %v2534_v37  ;;  %v2205_v18 = vadd.f32 %v5707_v20, %v5910_v16  ;;  %v2820_v11 = vcombine.low %v2535_v35, %v2536_v13  ;;  %v2206_v25 = vadd.f32 %v5714_v58, %v5910_v16 }
 0x1e6   :  { %v2203_v26 = vadd.f32 %v7162_v10, %v5910_v16  ;;  %v2204_v40 = vadd.f32 %v7163_v61, %v5910_v16  ;;  %v2821_v63 = vcombine.low %v2537_v49, %v2538_v55  ;;  %v7164_v54 = vrot.slane %v5686_v56, %v5482_v44  ;;  %4826 = vmatpush3.bf16.msra.mxu1 %v4949_v27 }
 0x1e7   :  { %v2811_v3 = vrot.slane %v2803_v57, %v5484_v47  ;;  %v2818_v17 = vrot.slane %v2804_v34, %v5484_v47  ;;  %v7165_v36 = vrot.slane %v5698_v22, %v5482_v44  ;;  %v2209_v55 = vadd.f32 %v5719_v50, %v5910_v16 }
 0x1e8   :  { %v2207_v46 = vadd.f32 %v7164_v54, %v5910_v16  ;;  %v2828_v58 = vrot.slane %v2820_v11, %v5484_v47  ;;  %v2835_v13 = vrot.slane %v2821_v63, %v5484_v47  ;;  %v2210_v56 = vadd.f32 %v5734_v23, %v5910_v16 }
 0x1e9   :  { %v2208_v20 = vadd.f32 %v7165_v36, %v5910_v16  ;;  %v2411_v14 = vadd.f32 %v5506_v5, %v2203_v26  ;;  %v2819_v51 = vcombine.low %v2811_v3, %v2818_v17  ;;  %v2412_v19 = vadd.f32 %v5506_v5, %v2204_v40 }
 0x1ea   :  { %v2413_v30 = vadd.f32 %v5506_v5, %v2205_v18  ;;  %v2414_v22 = vadd.f32 %v5506_v5, %v2206_v25  ;;  %v2836_v59 = vcombine.low %v2828_v58, %v2835_v13  ;;  %v2415_v50 = vadd.f32 %v5506_v5, %v2207_v46 }
 0x1eb   :  { %v2416_v4 = vadd.f32 %v5506_v5, %v2208_v20  ;;  %v2417_v37 = vadd.f32 %v5506_v5, %v2209_v55  ;;  %v2418_v35 = vadd.f32 %v5506_v5, %v2210_v56  ;;  %v2539_v23 = vmax.f32 %v2411_v14, 0.0  ;;  %v7172_v14 = vld [vmem:[#allocation39_spill] sm:$0xff] }
 0x1ec   :  { %v2540_v16 = vmax.f32 %v2412_v19, 0.0  ;;  %v2541_v49 = vmax.f32 %v2413_v30, 0.0  ;;  %v3379_v10 = vpack.c.bf16 %v2836_v59, %v2819_v51  ;;  %v2542_v26 = vmax.f32 %v2414_v22, 0.0  ;;  %v7174_v22 = vld [vmem:[#allocation32_spill] sm:$0xff] }
 0x1ed   :  { %v2543_v57 = vmax.f32 %v2415_v50, 0.0  ;;  %v2544_v34 = vmax.f32 %v2416_v4, 0.0  ;;  %v2545_v61 = vmax.f32 %v2417_v37, 0.0  ;;  %v2546_v40 = vmax.f32 %v2418_v35, 0.0 }
 0x1ee   :  { %v2837_v18 = vcombine.low %v2539_v23, %v2540_v16  ;;  %v7166_v11 = vrot.slane %v5490_v53, %v5482_v44  ;;  %4785 = vmatprep.mubr.bf16.mxu0 %v3379_v10  ;;  %v2838_v25 = vcombine.low %v2541_v49, %v2542_v26  ;;  %v7167_v5 = vrot.slane %v5502_v1, %v5482_v44  ;;  %v7168_v53 = vld [vmem:[#allocation31_spill] sm:$0xff]  ;;  %v7170_v1 = vld [vmem:[#allocation34_spill] sm:$0xff] }
 0x1ef   :  { %v2854_v27 = vcombine.low %v2543_v57, %v2544_v34  ;;  %v2213_v46 = vadd.f32 %v5542_v21, %v5906_v43  ;;  %v2855_v17 = vcombine.low %v2545_v61, %v2546_v40  ;;  %v2214_v36 = vadd.f32 %v5549_v24, %v5906_v43  ;;  %v7173_v24 = vld [vmem:[#allocation40_spill] sm:$0xff] }
 0x1f0   :  { %v2211_v63 = vadd.f32 %v7166_v11, %v5906_v43  ;;  %v2212_v54 = vadd.f32 %v7167_v5, %v5906_v43  ;;  %v2845_v3 = vrot.slane %v2837_v18, %v5484_v47  ;;  %v7169_v20 = vrot.slane %v7168_v53, %v5482_v44  ;;  %v7178_v53 = vld [vmem:[#allocation47_spill] sm:$0xff] }
 0x1f1   :  { %v2852_v58 = vrot.slane %v2838_v25, %v5484_v47  ;;  %v2862_v13 = vrot.slane %v2854_v27, %v5484_v47  ;;  %v7171_v56 = vrot.slane %v7170_v1, %v5482_v44  ;;  %v2217_v51 = vadd.f32 %v7172_v14, %v5906_v43  ;;  %v7181_v1 = vld [vmem:[#allocation52_spill] sm:$0xff] }
 0x1f2   :  { %v2215_v55 = vadd.f32 %v7169_v20, %v5906_v43  ;;  %v2869_v19 = vrot.slane %v2855_v17, %v5484_v47  ;;  %v2218_v30 = vadd.f32 %v7173_v24, %v5906_v43  ;;  %v2419_v59 = vadd.f32 %v7174_v22, %v2211_v63 }
 0x1f3   :  { %v2216_v21 = vadd.f32 %v7171_v56, %v5906_v43  ;;  %v2420_v50 = vadd.f32 %v7174_v22, %v2212_v54  ;;  %v2853_v4 = vcombine.low %v2845_v3, %v2852_v58  ;;  %v2421_v37 = vadd.f32 %v7174_v22, %v2213_v46  ;;  %v7175_v54 = vld [vmem:[#allocation94_spill] sm:$0xff]  ;;  %v7176_v46 = vld [vmem:[#allocation41_spill] sm:$0xff] }
 0x1f4   :  { %v2422_v35 = vadd.f32 %v7174_v22, %v2214_v36  ;;  %v2423_v23 = vadd.f32 %v7174_v22, %v2215_v55  ;;  %v2870_v16 = vcombine.low %v2862_v13, %v2869_v19  ;;  %v2425_v10 = vadd.f32 %v7174_v22, %v2217_v51  ;;  %v7180_v58 = vld [vmem:[#allocation50_spill] sm:$0xff]  ;;  %v7182_v19 = vld [vmem:[#allocation43_spill] sm:$0xff] }
 0x1f5   :  { %v2424_v49 = vadd.f32 %v7174_v22, %v2216_v21  ;;  %v2426_v26 = vadd.f32 %v7174_v22, %v2218_v30  ;;  %v2547_v57 = vmax.f32 %v2419_v59, 0.0  ;;  %v2548_v43 = vmax.f32 %v2420_v50, 0.0  ;;  %v7184_v59 = vld [vmem:[#allocation48_spill] sm:$0xff] }
 0x1f6   :  { %v2549_v34 = vmax.f32 %v2421_v37, 0.0  ;;  %v2550_v61 = vmax.f32 %v2422_v35, 0.0  ;;  %v3380_v40 = vpack.c.bf16 %v2870_v16, %v2853_v4  ;;  %v2551_v18 = vmax.f32 %v2423_v23, 0.0  ;;  %v7186_v37 = vld [vmem:[#allocation51_spill] sm:$0xff]  ;;  %v7187_v23 = vld [vmem:[#allocation53_spill] sm:$0xff] }
 0x1f7   :  { %v2552_v11 = vmax.f32 %v2424_v49, 0.0  ;;  %v2553_v63 = vmax.f32 %v2425_v10, 0.0  ;;  %v2554_v25 = vmax.f32 %v2426_v26, 0.0  ;;  %v2871_v27 = vcombine.low %v2547_v57, %v2548_v43  ;;  %v7188_v26 = vld [vmem:[#allocation35_spill] sm:$0xff] }
 0x1f8   :  { %v2872_v5 = vcombine.low %v2549_v34, %v2550_v61  ;;  %v7177_v3 = vrot.slane %v7176_v46, %v5482_v44  ;;  %4786 = vmatmul.mubr.bf16.vlgmr.msra.gmra.mxu0 %v3380_v40  ;;  %v7179_v20 = vrot.slane %v7178_v53, %v5482_v44  ;;  %v2221_v13 = vadd.f32 %v7180_v58, %v7175_v54 }
 0x1f9   :  { %v2888_v36 = vcombine.low %v2551_v18, %v2552_v11  ;;  %v2222_v56 = vadd.f32 %v7181_v1, %v7175_v54  ;;  %v2879_v21 = vrot.slane %v2871_v27, %v5484_v47  ;;  %v2889_v51 = vcombine.low %v2553_v63, %v2554_v25 }
 0x1fa   :  { %v2219_v17 = vadd.f32 %v7177_v3, %v7175_v54  ;;  %v2220_v55 = vadd.f32 %v7179_v20, %v7175_v54  ;;  %v2886_v14 = vrot.slane %v2872_v5, %v5484_v47  ;;  %v7183_v24 = vrot.slane %v7182_v19, %v5482_v44 }
 0x1fb   :  { %v2896_v22 = vrot.slane %v2888_v36, %v5484_v47  ;;  %v7185_v50 = vrot.slane %v7184_v59, %v5482_v44  ;;  %v2225_v35 = vadd.f32 %v7186_v37, %v7175_v54  ;;  %v2226_v16 = vadd.f32 %v7187_v23, %v7175_v54  ;;  %v7194_v59 = vld [vmem:[#allocation70_spill] sm:$0xff] }
 0x1fc   :  { %v2223_v30 = vadd.f32 %v7183_v24, %v7175_v54  ;;  %v2887_v49 = vcombine.low %v2879_v21, %v2886_v14  ;;  %v2903_v10 = vrot.slane %v2889_v51, %v5484_v47  ;;  %v2427_v57 = vadd.f32 %v7188_v26, %v2219_v17  ;;  %v7191_v21 = vld [vmem:[#allocation64_spill] sm:$0xff] }
 0x1fd   :  { %v2224_v4 = vadd.f32 %v7185_v50, %v7175_v54  ;;  %v2428_v43 = vadd.f32 %v7188_v26, %v2220_v55  ;;  %v2429_v34 = vadd.f32 %v7188_v26, %v2221_v13  ;;  %v2430_v61 = vadd.f32 %v7188_v26, %v2222_v56  ;;  %v7189_v13 = vld [vmem:[#allocation62_spill] sm:$0xff] }
 0x1fe   :  { %v2431_v40 = vadd.f32 %v7188_v26, %v2223_v30  ;;  %v2904_v11 = vcombine.low %v2896_v22, %v2903_v10  ;;  %v2433_v63 = vadd.f32 %v7188_v26, %v2225_v35  ;;  %v2434_v25 = vadd.f32 %v7188_v26, %v2226_v16  ;;  %v7193_v30 = vld [vmem:[#allocation66_spill] sm:$0xff]  ;;  %v7195_v35 = vld [vmem:[#allocation63_spill] sm:$0xff] }
 0x1ff   :  { %v2432_v18 = vadd.f32 %v7188_v26, %v2224_v4  ;;  %v2555_v27 = vmax.f32 %v2427_v57, 0.0  ;;  %v2556_v5 = vmax.f32 %v2428_v43, 0.0  ;;  %v2557_v54 = vmax.f32 %v2429_v34, 0.0  ;;  %v7199_v34 = vld [vmem:[#allocation67_spill] sm:$0xff] }
 0x200   :  { %v2558_v46 = vmax.f32 %v2430_v61, 0.0  ;;  %v2559_v3 = vmax.f32 %v2431_v40, 0.0  ;;  %v3381_v17 = vpack.c.bf16 %v2904_v11, %v2887_v49  ;;  %v2561_v53 = vmax.f32 %v2433_v63, 0.0  ;;  %v7197_v49 = vld [vmem:[#allocation65_spill] sm:$0xff]  ;;  %v7200_v40 = vld [vmem:[#allocation71_spill] sm:$0xff] }
 0x201   :  { %v2560_v36 = vmax.f32 %v2432_v18, 0.0  ;;  %v2562_v20 = vmax.f32 %v2434_v25, 0.0  ;;  %v2905_v55 = vcombine.low %v2555_v27, %v2556_v5  ;;  %v7190_v1 = vrot.slane %v7189_v13, %v5482_v44  ;;  %v7201_v63 = vld [vmem:[#allocation33_spill] sm:$0xff] }
 0x202   :  { %v2906_v58 = vcombine.low %v2557_v54, %v2558_v46  ;;  %v7192_v14 = vrot.slane %v7191_v21, %v5482_v44  ;;  %4789 = vmatprep.mubr.bf16.mxu0 %v3381_v17  ;;  %v2229_v22 = vadd.f32 %v7193_v30, %v6001_v32  ;;  %v2230_v50 = vadd.f32 %v7194_v59, %v6001_v32  ;;  %v7204_v59 = vld [vmem:[#allocation80_spill] sm:$0xff] }
 0x203   :  { %v2227_v56 = vadd.f32 %v7190_v1, %v6001_v32  ;;  %v2922_v19 = vcombine.low %v2559_v3, %v2560_v36  ;;  %v2923_v24 = vcombine.low %v2561_v53, %v2562_v20  ;;  %v2913_v4 = vrot.slane %v2905_v55, %v5484_v47 }
 0x204   :  { %v2228_v51 = vadd.f32 %v7192_v14, %v6001_v32  ;;  %v2920_v37 = vrot.slane %v2906_v58, %v5484_v47  ;;  %v7196_v23 = vrot.slane %v7195_v35, %v5482_v44  ;;  %v7198_v10 = vrot.slane %v7197_v49, %v5482_v44 }
 0x205   :  { %v2930_v57 = vrot.slane %v2922_v19, %v5484_v47  ;;  %v2937_v43 = vrot.slane %v2923_v24, %v5484_v47  ;;  %v2233_v61 = vadd.f32 %v7199_v34, %v6001_v32  ;;  %v2234_v18 = vadd.f32 %v7200_v40, %v6001_v32  ;;  %v7202_v24 = vld [vmem:[#allocation78_spill] sm:$0xff]  ;;  %v7210_v40 = vld [vmem:[#allocation81_spill] sm:$0xff] }
 0x206   :  { %v2231_v16 = vadd.f32 %v7196_v23, %v6001_v32  ;;  %v2232_v26 = vadd.f32 %v7198_v10, %v6001_v32  ;;  %v2921_v11 = vcombine.low %v2913_v4, %v2920_v37  ;;  %v2435_v25 = vadd.f32 %v7201_v63, %v2227_v56  ;;  %v7206_v37 = vld [vmem:[#allocation82_spill] sm:$0xff]  ;;  %v7207_v10 = vld [vmem:[#allocation83_spill] sm:$0xff] }
 0x207   :  { %v2436_v27 = vadd.f32 %v7201_v63, %v2228_v51  ;;  %v2437_v5 = vadd.f32 %v7201_v63, %v2229_v22  ;;  %v2938_v54 = vcombine.low %v2930_v57, %v2937_v43  ;;  %v2438_v46 = vadd.f32 %v7201_v63, %v2230_v50  ;;  %v7208_v43 = vld [vmem:[#allocation79_spill] sm:$0xff] }
 0x208   :  { %v2439_v3 = vadd.f32 %v7201_v63, %v2231_v16  ;;  %v2440_v17 = vadd.f32 %v7201_v63, %v2232_v26  ;;  %v2441_v36 = vadd.f32 %v7201_v63, %v2233_v61  ;;  %v2442_v53 = vadd.f32 %v7201_v63, %v2234_v18  ;;  %v7212_v63 = vld [vmem:[#allocation84_spill] sm:$0xff] }
 0x209   :  { %v2563_v20 = vmax.f32 %v2435_v25, 0.0  ;;  %v2564_v32 = vmax.f32 %v2436_v27, 0.0  ;;  %v3382_v55 = vpack.c.bf16 %v2938_v54, %v2921_v11  ;;  %v2565_v58 = vmax.f32 %v2437_v5, 0.0  ;;  %v7213_v54 = vld [vmem:[#allocation85_spill] sm:$0xff] }
 0x20a   :  { %v2566_v13 = vmax.f32 %v2438_v46, 0.0  ;;  %v2567_v1 = vmax.f32 %v2439_v3, 0.0  ;;  %v2568_v56 = vmax.f32 %v2440_v17, 0.0  ;;  %v2569_v21 = vmax.f32 %v2441_v36, 0.0  ;;  %v7214_v3 = vld [vmem:[#allocation36_spill] sm:$0xff] }
 0x20b   :  { %v2570_v14 = vmax.f32 %v2442_v53, 0.0  ;;  %v2939_v51 = vcombine.low %v2563_v20, %v2564_v32  ;;  %4790 = vmatmul.mubr.bf16.gmra.mxu0 %v3382_v55  ;;  %v7203_v30 = vrot.slane %v7202_v24, %v5482_v44  ;;  %v7205_v50 = vrot.slane %v7204_v59, %v5482_v44 }
 0x20c   :  { %v2940_v19 = vcombine.low %v2565_v58, %v2566_v13  ;;  %v2237_v35 = vadd.f32 %v7206_v37, %v6045_v7  ;;  %v2956_v16 = vcombine.low %v2567_v1, %v2568_v56  ;;  %v2238_v26 = vadd.f32 %v7207_v10, %v6045_v7  ;;  %v7216_v37 = vld [vmem:[#allocation54_spill] sm:$0xff]  ;;  %v7218_v10 = vld [vmem:[#allocation56_spill] sm:$0xff] }
 0x20d   :  { %v2235_v22 = vadd.f32 %v7203_v30, %v6045_v7  ;;  %v2236_v4 = vadd.f32 %v7205_v50, %v6045_v7  ;;  %v2947_v23 = vrot.slane %v2939_v51, %v5484_v47  ;;  %v2957_v49 = vcombine.low %v2569_v21, %v2570_v14 }
 0x20e   :  { %v2954_v57 = vrot.slane %v2940_v19, %v5484_v47  ;;  %v7209_v34 = vrot.slane %v7208_v43, %v5482_v44  ;;  %v7211_v18 = vrot.slane %v7210_v40, %v5482_v44  ;;  %v2241_v25 = vadd.f32 %v7212_v63, %v6045_v7  ;;  %v7220_v43 = vld [vmem:[#allocation58_spill] sm:$0xff]  ;;  %v7222_v63 = vld [vmem:[#allocation55_spill] sm:$0xff] }
 0x20f   :  { %v2964_v27 = vrot.slane %v2956_v16, %v5484_v47  ;;  %v2971_v5 = vrot.slane %v2957_v49, %v5484_v47  ;;  %v2242_v46 = vadd.f32 %v7213_v54, %v6045_v7  ;;  %v2443_v17 = vadd.f32 %v7214_v3, %v2235_v22 }
 0x210   :  { %v2239_v61 = vadd.f32 %v7209_v34, %v6045_v7  ;;  %v2240_v11 = vadd.f32 %v7211_v18, %v6045_v7  ;;  %v2955_v36 = vcombine.low %v2947_v23, %v2954_v57  ;;  %v2444_v53 = vadd.f32 %v7214_v3, %v2236_v4  ;;  %v7215_v4 = vld [vmem:[#allocation103_spill] sm:$0xff] }
 0x211   :  { %v2445_v20 = vadd.f32 %v7214_v3, %v2237_v35  ;;  %v2446_v32 = vadd.f32 %v7214_v3, %v2238_v26  ;;  %v2972_v55 = vcombine.low %v2964_v27, %v2971_v5  ;;  %v2449_v1 = vadd.f32 %v7214_v3, %v2241_v25  ;;  %v7221_v18 = vld [vmem:[#allocation59_spill] sm:$0xff] }
 0x212   :  { %v2447_v58 = vadd.f32 %v7214_v3, %v2239_v61  ;;  %v2448_v13 = vadd.f32 %v7214_v3, %v2240_v11  ;;  %v2450_v56 = vadd.f32 %v7214_v3, %v2242_v46  ;;  %v2571_v21 = vmax.f32 %v2443_v17, 0.0  ;;  %v7224_v46 = vld [vmem:[#allocation57_spill] sm:$0xff] }
 0x213   :  { %v2572_v7 = vmax.f32 %v2444_v53, 0.0  ;;  %v2573_v14 = vmax.f32 %v2445_v20, 0.0  ;;  %v3383_v51 = vpack.c.bf16 %v2972_v55, %v2955_v36  ;;  %v2574_v19 = vmax.f32 %v2446_v32, 0.0  ;;  %v7226_v36 = vld [vmem:[#allocation60_spill] sm:$0xff]  ;;  %v7227_v32 = vld [vmem:[#allocation61_spill] sm:$0xff] }
 0x214   :  { %v2575_v24 = vmax.f32 %v2447_v58, 0.0  ;;  %v2576_v30 = vmax.f32 %v2448_v13, 0.0  ;;  %v2577_v22 = vmax.f32 %v2449_v1, 0.0  ;;  %v2578_v59 = vmax.f32 %v2450_v56, 0.0  ;;  %v7228_v58 = vld [vmem:[#allocation37_spill] sm:$0xff] }
 0x215   :  { %v2973_v50 = vcombine.low %v2571_v21, %v2572_v7  ;;  %v7217_v35 = vrot.slane %v7216_v37, %v5482_v44  ;;  %4793 = vmatprep.mubr.bf16.mxu0 %v3383_v51  ;;  %v2974_v16 = vcombine.low %v2573_v14, %v2574_v19  ;;  %v7219_v26 = vrot.slane %v7218_v10, %v5482_v44 }
 0x216   :  { %v2990_v49 = vcombine.low %v2575_v24, %v2576_v30  ;;  %v2245_v34 = vadd.f32 %v7220_v43, %v7215_v4  ;;  %v2991_v40 = vcombine.low %v2577_v22, %v2578_v59  ;;  %v2246_v11 = vadd.f32 %v7221_v18, %v7215_v4  ;;  %v7230_v43 = vld [vmem:[#allocation68_spill] sm:$0xff] }
 0x217   :  { %v2243_v23 = vadd.f32 %v7217_v35, %v7215_v4  ;;  %v2244_v57 = vadd.f32 %v7219_v26, %v7215_v4  ;;  %v2981_v61 = vrot.slane %v2973_v50, %v5484_v47  ;;  %v7223_v25 = vrot.slane %v7222_v63, %v5482_v44  ;;  %v7232_v18 = vld [vmem:[#allocation72_spill] sm:$0xff] }
 0x218   :  { %v2988_v5 = vrot.slane %v2974_v16, %v5484_v47  ;;  %v2998_v54 = vrot.slane %v2990_v49, %v5484_v47  ;;  %v7225_v3 = vrot.slane %v7224_v46, %v5482_v44  ;;  %v2249_v53 = vadd.f32 %v7226_v36, %v7215_v4  ;;  %v7236_v36 = vld [vmem:[#allocation69_spill] sm:$0xff] }
 0x219   :  { %v2247_v27 = vadd.f32 %v7223_v25, %v7215_v4  ;;  %v3005_v20 = vrot.slane %v2991_v40, %v5484_v47  ;;  %v2250_v55 = vadd.f32 %v7227_v32, %v7215_v4  ;;  %v2451_v13 = vadd.f32 %v7228_v58, %v2243_v23  ;;  %v7234_v25 = vld [vmem:[#allocation74_spill] sm:$0xff] }
 0x21a   :  { %v2248_v17 = vadd.f32 %v7225_v3, %v7215_v4  ;;  %v2452_v1 = vadd.f32 %v7228_v58, %v2244_v57  ;;  %v2989_v56 = vcombine.low %v2981_v61, %v2988_v5  ;;  %v2453_v21 = vadd.f32 %v7228_v58, %v2245_v34  ;;  %v7229_v57 = vld [vmem:[#allocation112_spill] sm:$0xff] }
 0x21b   :  { %v2454_v7 = vadd.f32 %v7228_v58, %v2246_v11  ;;  %v2455_v14 = vadd.f32 %v7228_v58, %v2247_v27  ;;  %v3006_v51 = vcombine.low %v2998_v54, %v3005_v20  ;;  %v2457_v24 = vadd.f32 %v7228_v58, %v2249_v53  ;;  %v7235_v5 = vld [vmem:[#allocation76_spill] sm:$0xff] }
 0x21c   :  { %v2456_v19 = vadd.f32 %v7228_v58, %v2248_v17  ;;  %v2458_v30 = vadd.f32 %v7228_v58, %v2250_v55  ;;  %v2579_v22 = vmax.f32 %v2451_v13, 0.0  ;;  %v2580_v59 = vmax.f32 %v2452_v1, 0.0  ;;  %v7238_v55 = vld [vmem:[#allocation73_spill] sm:$0xff]  ;;  %v7240_v1 = vld [vmem:[#allocation75_spill] sm:$0xff] }
 0x21d   :  { %v2581_v50 = vmax.f32 %v2453_v21, 0.0  ;;  %v2582_v4 = vmax.f32 %v2454_v7, 0.0  ;;  %v3384_v37 = vpack.c.bf16 %v3006_v51, %v2989_v56  ;;  %v2583_v35 = vmax.f32 %v2455_v14, 0.0  ;;  %v7241_v21 = vld [vmem:[#allocation77_spill] sm:$0xff] }
 0x21e   :  { %v2584_v23 = vmax.f32 %v2456_v19, 0.0  ;;  %v2585_v16 = vmax.f32 %v2457_v24, 0.0  ;;  %v2586_v49 = vmax.f32 %v2458_v30, 0.0  ;;  %v3007_v10 = vcombine.low %v2579_v22, %v2580_v59  ;;  %v7242_v19 = vld [vmem:[#allocation38_spill] sm:$0xff] }
 0x21f   :  { %v3008_v26 = vcombine.low %v2581_v50, %v2582_v4  ;;  %v7231_v34 = vrot.slane %v7230_v43, %v5482_v44  ;;  %4794 = vmatmul.mubr.bf16.gmra.mxu0 %v3384_v37  ;;  %v7233_v11 = vrot.slane %v7232_v18, %v5482_v44  ;;  %v2253_v27 = vadd.f32 %v7234_v25, %v7229_v57 }
 0x220   :  { %v3024_v40 = vcombine.low %v2583_v35, %v2584_v23  ;;  %v2254_v54 = vadd.f32 %v7235_v5, %v7229_v57  ;;  %v3015_v46 = vrot.slane %v3007_v10, %v5484_v47  ;;  %v3025_v17 = vcombine.low %v2585_v16, %v2586_v49 }
 0x221   :  { %v2251_v61 = vadd.f32 %v7231_v34, %v7229_v57  ;;  %v2252_v63 = vadd.f32 %v7233_v11, %v7229_v57  ;;  %v3022_v3 = vrot.slane %v3008_v26, %v5484_v47  ;;  %v7237_v53 = vrot.slane %v7236_v36, %v5482_v44  ;;  %v7243_v11 = vld [vmem:[#allocation99_spill] sm:$0xff]  ;;  %v7247_v36 = vld [vmem:[#allocation100_spill] sm:$0xff] }
 0x222   :  { %v3032_v32 = vrot.slane %v3024_v40, %v5484_v47  ;;  %v7239_v58 = vrot.slane %v7238_v55, %v5482_v44  ;;  %v2257_v56 = vadd.f32 %v7240_v1, %v7229_v57  ;;  %v2258_v7 = vadd.f32 %v7241_v21, %v7229_v57  ;;  %v7248_v55 = vld [vmem:[#allocation101_spill] sm:$0xff] }
 0x223   :  { %v2255_v20 = vadd.f32 %v7237_v53, %v7229_v57  ;;  %v3023_v14 = vcombine.low %v3015_v46, %v3022_v3  ;;  %v3039_v51 = vrot.slane %v3025_v17, %v5484_v47  ;;  %v2459_v24 = vadd.f32 %v7242_v19, %v2251_v61  ;;  %v7246_v3 = vld [vmem:[#allocation96_spill] sm:$0xff] }
 0x224   :  { %v2256_v13 = vadd.f32 %v7239_v58, %v7229_v57  ;;  %v2460_v30 = vadd.f32 %v7242_v19, %v2252_v63  ;;  %v2461_v22 = vadd.f32 %v7242_v19, %v2253_v27  ;;  %v2462_v59 = vadd.f32 %v7242_v19, %v2254_v54  ;;  %v7244_v63 = vld [vmem:[#allocation42_spill] sm:$0xff]  ;;  %v7245_v27 = vld [vmem:[#allocation95_spill] sm:$0xff] }
 0x225   :  { %v2463_v44 = vadd.f32 %v7242_v19, %v2255_v20  ;;  %v3040_v4 = vcombine.low %v3032_v32, %v3039_v51  ;;  %v2465_v37 = vadd.f32 %v7242_v19, %v2257_v56  ;;  %v2466_v35 = vadd.f32 %v7242_v19, %v2258_v7 }
 0x226   :  { %v2464_v50 = vadd.f32 %v7242_v19, %v2256_v13  ;;  %v2587_v23 = vmax.f32 %v2459_v24, 0.0  ;;  %v2588_v16 = vmax.f32 %v2460_v30, 0.0  ;;  %v2589_v49 = vmax.f32 %v2461_v22, 0.0  ;;  %v7249_v13 = vld [vmem:[#allocation102_spill] sm:$0xff] }
 0x227   :  { %v2590_v10 = vmax.f32 %v2462_v59, 0.0  ;;  %v2591_v26 = vmax.f32 %v2463_v44, 0.0  ;;  %v3385_v57 = vpack.c.bf16 %v3040_v4, %v3023_v14  ;;  %v2593_v34 = vmax.f32 %v2465_v37, 0.0  ;;  %v7250_v14 = vld [vmem:[#allocation98_spill] sm:$0xff]  ;;  %v7251_v44 = vld [vmem:[#allocation97_spill] sm:$0xff] }
 0x228   :  { %v2592_v43 = vmax.f32 %v2464_v50, 0.0  ;;  %v2594_v61 = vmax.f32 %v2466_v35, 0.0  ;;  %v3041_v40 = vcombine.low %v2587_v23, %v2588_v16  ;;  %v2470_v25 = vadd.f32 %v7244_v63, %v7243_v11  ;;  %v7254_v11 = vld [vmem:[#allocation116_spill] sm:$0xff] }
 0x229   :  { %v3042_v18 = vcombine.low %v2589_v49, %v2590_v10  ;;  %v2472_v5 = vadd.f32 %v7244_v63, %v7245_v27  ;;  %4797 = vmatprep.mubr.bf16.mxu0 %v3385_v57  ;;  %v2473_v17 = vadd.f32 %v7244_v63, %v7246_v3  ;;  %v2474_v53 = vadd.f32 %v7244_v63, %v7247_v36 }
 0x22a   :  { %v3058_v54 = vcombine.low %v2591_v26, %v2592_v43  ;;  %v3059_v46 = vcombine.low %v2593_v34, %v2594_v61  ;;  %v3049_v20 = vrot.slane %v3041_v40, %v5484_v47  ;;  %v2596_v58 = vmax.f32 %v7248_v55, 0.0  ;;  %v7253_v40 = vld [vmem:[#allocation115_spill] sm:$0xff] }
 0x22b   :  { %v3056_v32 = vrot.slane %v3042_v18, %v5484_v47  ;;  %v2597_v1 = vmax.f32 %v7249_v13, 0.0  ;;  %v2598_v7 = vmax.f32 %v2470_v25, 0.0  ;;  %v2599_v51 = vmax.f32 %v7250_v14, 0.0 }
 0x22c   :  { %v3066_v56 = vrot.slane %v3058_v54, %v5484_v47  ;;  %v3073_v21 = vrot.slane %v3059_v46, %v5484_v47  ;;  %v2600_v24 = vmax.f32 %v2472_v5, 0.0  ;;  %v2601_v30 = vmax.f32 %v2473_v17, 0.0  ;;  %v7256_v17 = vld [vmem:[#allocation113_spill] sm:$0xff] }
 0x22d   :  { %v3057_v19 = vcombine.low %v3049_v20, %v3056_v32  ;;  %v2602_v22 = vmax.f32 %v2474_v53, 0.0  ;;  %v7252_v50 = vmax.f32 %v7251_v44, 0.0  ;;  %v3076_v37 = vcombine.low %v2597_v1, %v2598_v7  ;;  %v7258_v20 = vld [vmem:[#allocation90_spill] sm:$0xff]  ;;  %v7259_v32 = vld [vmem:[#allocation44_spill] sm:$0xff]  ;;  %v7261_v7 = vld [vmem:[#allocation87_spill] sm:$0xff] }
 0x22e   :  { %v3074_v59 = vcombine.low %v3066_v56, %v3073_v21  ;;  %v2478_v35 = vadd.f32 %v5621_v29, %v6104_v28  ;;  %v3092_v23 = vcombine.low %v2599_v51, %v2600_v24  ;;  %v2480_v49 = vadd.f32 %v5621_v29, %v6095_v33  ;;  %v7262_v24 = vld [vmem:[#allocation91_spill] sm:$0xff] }
 0x22f   :  { %v3075_v4 = vcombine.low %v7252_v50, %v2596_v58  ;;  %v3093_v16 = vcombine.low %v2601_v30, %v2602_v22  ;;  %v2481_v10 = vadd.f32 %v5621_v29, %v6098_v60  ;;  %v3090_v43 = vrot.slane %v3076_v37, %v5484_v47  ;;  %v7255_v60 = vld [vmem:[#allocation114_spill] sm:$0xff]  ;;  %v7263_v22 = vld [vmem:[#allocation92_spill] sm:$0xff]  ;;  %v7264_v50 = vld [vmem:[#allocation93_spill] sm:$0xff] }
 0x230   :  { %v3386_v26 = vpack.c.bf16 %v3074_v59, %v3057_v19  ;;  %v2482_v34 = vadd.f32 %v5621_v29, %v6114_v6  ;;  %v3100_v61 = vrot.slane %v3092_v23, %v5484_v47  ;;  %v2604_v18 = vmax.f32 %v7253_v40, 0.0  ;;  %v7260_v58 = vld [vmem:[#allocation86_spill] sm:$0xff]  ;;  %v7268_v40 = vld [vmem:[#allocation105_spill] sm:$0xff] }
 0x231   :  { %v3083_v57 = vrot.slane %v3075_v4, %v5484_v47  ;;  %v3107_v28 = vrot.slane %v3093_v16, %v5484_v47  ;;  %v2605_v63 = vmax.f32 %v7254_v11, 0.0  ;;  %v2606_v25 = vmax.f32 %v2478_v35, 0.0  ;;  %v7265_v35 = vld [vmem:[#allocation89_spill] sm:$0xff] }
 0x232   :  { %4798 = vmatmul.mubr.bf16.gmra.mxu0 %v3386_v26  ;;  %v2607_v27 = vmax.f32 %v7255_v60, 0.0  ;;  %v2608_v5 = vmax.f32 %v2480_v49, 0.0  ;;  %v2609_v46 = vmax.f32 %v2481_v10, 0.0  ;;  %v2610_v3 = vmax.f32 %v2482_v34, 0.0 }
 0x233   :  { %v3091_v33 = vcombine.low %v3083_v57, %v3090_v43  ;;  %v3108_v54 = vcombine.low %v3100_v61, %v3107_v28  ;;  %v7257_v36 = vmax.f32 %v7256_v17, 0.0  ;;  %v3110_v6 = vcombine.low %v2605_v63, %v2606_v25  ;;  %v7266_v43 = vld [vmem:[#allocation88_spill] sm:$0xff] }
 0x234   :  { %v3126_v53 = vcombine.low %v2607_v27, %v2608_v5  ;;  %v2486_v55 = vadd.f32 %v7259_v32, %v7258_v20  ;;  %v2488_v13 = vadd.f32 %v7259_v32, %v7260_v58  ;;  %v3127_v21 = vcombine.low %v2609_v46, %v2610_v3  ;;  %v7270_v25 = vld [vmem:[#allocation104_spill] sm:$0xff]  ;;  %v7271_v27 = vld [vmem:[#allocation106_spill] sm:$0xff] }
 0x235   :  { %v3109_v29 = vcombine.low %v7257_v36, %v2604_v18  ;;  %v3387_v1 = vpack.c.bf16 %v3108_v54, %v3091_v33  ;;  %v2489_v14 = vadd.f32 %v7259_v32, %v7261_v7  ;;  %v3124_v51 = vrot.slane %v3110_v6, %v5484_v47  ;;  %v7269_v18 = vld [vmem:[#allocation45_spill] sm:$0xff]  ;;  %v7272_v17 = vld [vmem:[#allocation108_spill] sm:$0xff] }
 0x236   :  { %v3134_v19 = vrot.slane %v3126_v53, %v5484_v47  ;;  %v2490_v30 = vadd.f32 %v7259_v32, %v7262_v24  ;;  %v2612_v59 = vmax.f32 %v7263_v22, 0.0  ;;  %v3141_v44 = vrot.slane %v3127_v21, %v5484_v47  ;;  %v7273_v53 = vld [vmem:[#allocation109_spill] sm:$0xff]  ;;  %v7274_v32 = vld [vmem:[#allocation111_spill] sm:$0xff] }
 0x237   :  { %v3117_v56 = vrot.slane %v3109_v29, %v5484_v47  ;;  %4801 = vmatprep.mubr.bf16.mxu0 %v3387_v1  ;;  %v2613_v4 = vmax.f32 %v7264_v50, 0.0  ;;  %v2614_v37 = vmax.f32 %v2486_v55, 0.0  ;;  %v2615_v23 = vmax.f32 %v7265_v35, 0.0  ;;  %v7275_v1 = vld [vmem:[#allocation110_spill] sm:$0xff] }
 0x238   :  { %v2616_v49 = vmax.f32 %v2488_v13, 0.0  ;;  %v2617_v10 = vmax.f32 %v2489_v14, 0.0  ;;  %v2618_v26 = vmax.f32 %v2490_v30, 0.0  ;;  %v3142_v57 = vcombine.low %v3134_v19, %v3141_v44  ;;  %v7276_v19 = vld [vmem:[#allocation107_spill] sm:$0xff] }
 0x239   :  { %v3125_v16 = vcombine.low %v3117_v56, %v3124_v51  ;;  %v7267_v34 = vmax.f32 %v7266_v43, 0.0  ;;  %v3144_v28 = vcombine.low %v2613_v4, %v2614_v37  ;;  %v2494_v11 = vadd.f32 %v7269_v18, %v7268_v40 }
 0x23a   :  { %v3160_v63 = vcombine.low %v2615_v23, %v2616_v49  ;;  %v3161_v33 = vcombine.low %v2617_v10, %v2618_v26  ;;  %v2496_v60 = vadd.f32 %v7269_v18, %v7270_v25  ;;  %v2497_v5 = vadd.f32 %v7269_v18, %v7271_v27  ;;  %v7278_v26 = vld [vmem:[#allocation126_spill] sm:$0xff]  ;;  %v7281_v25 = vld [vmem:[#allocation125_spill] sm:$0xff] }
 0x23b   :  { %v3143_v61 = vcombine.low %v7267_v34, %v2612_v59  ;;  %v3388_v54 = vpack.c.bf16 %v3142_v57, %v3125_v16  ;;  %v3158_v3 = vrot.slane %v3144_v28, %v5484_v47  ;;  %v2498_v36 = vadd.f32 %v7269_v18, %v7272_v17 }
 0x23c   :  { %v3168_v29 = vrot.slane %v3160_v63, %v5484_v47  ;;  %v3175_v6 = vrot.slane %v3161_v33, %v5484_v47  ;;  %v2620_v20 = vmax.f32 %v7273_v53, 0.0  ;;  %v2621_v55 = vmax.f32 %v7274_v32, 0.0  ;;  %v4950_v63 = vld [vmem:[#allocation13 + $0x10] sm:$0xff]  }
 0x23d   :  { %v3151_v46 = vrot.slane %v3143_v61, %v5484_v47  ;;  %4802 = vmatmul.mubr.bf16.gmra.mxu0 %v3388_v54  ;;  %v2622_v13 = vmax.f32 %v2494_v11, 0.0  ;;  %v2623_v56 = vmax.f32 %v7275_v1, 0.0  ;;  %v2624_v21 = vmax.f32 %v2496_v60, 0.0  ;;  %v7280_v61 = vld [vmem:[#allocation127_spill] sm:$0xff]  ;;  %4827 = vmatprep.subr.bf16.mxu1 %v4950_v63 }
 0x23e   :  { %v3176_v7 = vcombine.low %v3168_v29, %v3175_v6  ;;  %v2625_v14 = vmax.f32 %v2497_v5, 0.0  ;;  %v2626_v51 = vmax.f32 %v2498_v36, 0.0  ;;  %v7277_v24 = vmax.f32 %v7276_v19, 0.0  ;;  %4828 = vmatpush3.bf16.msra.mxu1 %v4950_v63  ;;  %v7285_v19 = vld [vmem:[#allocation46_spill] sm:$0xff]  ;;  %v7294_v63 = vld [vmem:[#allocation49_spill] sm:$0xff] }
 0x23f   :  { %v3159_v58 = vcombine.low %v3151_v46, %v3158_v3  ;;  %v3178_v22 = vcombine.low %v2621_v55, %v2622_v13  ;;  %v3194_v59 = vcombine.low %v2623_v56, %v2624_v21  ;;  %v2502_v44 = vadd.f32 %v5624_v31, %v6194_v62  ;;  %v4951_v21 = vld [vmem:[#allocation13 + $0x8] sm:$0xff]  }
 0x240   :  { %v3177_v30 = vcombine.low %v7277_v24, %v2620_v20  ;;  %v2504_v50 = vadd.f32 %v5624_v31, %v6188_v45  ;;  %v3195_v35 = vcombine.low %v2625_v14, %v2626_v51  ;;  %v2505_v23 = vadd.f32 %v5624_v31, %v6191_v2  ;;  %v7279_v45 = vld [vmem:[#allocation128_spill] sm:$0xff]  ;;  %v7284_v51 = vld [vmem:[#allocation121_spill] sm:$0xff]  ;;  %4829 = vmatprep.subr.bf16.mxu1 %v4951_v21 }
 0x241   :  { %v3389_v4 = vpack.c.bf16 %v3176_v7, %v3159_v58  ;;  %v3192_v16 = vrot.slane %v3178_v22, %v5484_v47  ;;  %v3202_v49 = vrot.slane %v3194_v59, %v5484_v47  ;;  %v2506_v10 = vadd.f32 %v5624_v31, %v6206_v0  ;;  %v7286_v24 = vld [vmem:[#allocation117_spill] sm:$0xff]  ;;  %v7287_v59 = vld [vmem:[#allocation118_spill] sm:$0xff] }
 0x242   :  { %v3185_v37 = vrot.slane %v3177_v30, %v5484_v47  ;;  %v2628_v57 = vmax.f32 %v7278_v26, 0.0  ;;  %v3209_v62 = vrot.slane %v3195_v35, %v5484_v47  ;;  %v2629_v43 = vmax.f32 %v7279_v45, 0.0  ;;  %v7289_v35 = vld [vmem:[#allocation123_spill] sm:$0xff]  ;;  %4830 = vmatpush3.bf16.msra.mxu1 %v4951_v21 }
 0x243   :  { %4805 = vmatprep.mubr.bf16.mxu0 %v3389_v4  ;;  %v2630_v34 = vmax.f32 %v2502_v44, 0.0  ;;  %v2631_v28 = vmax.f32 %v7280_v61, 0.0  ;;  %v2632_v18 = vmax.f32 %v2504_v50, 0.0  ;;  %v2633_v2 = vmax.f32 %v2505_v23, 0.0  ;;  %v7288_v4 = vld [vmem:[#allocation122_spill] sm:$0xff] }
 0x244   :  { %v3193_v40 = vcombine.low %v3185_v37, %v3192_v16  ;;  %v2634_v11 = vmax.f32 %v2506_v10, 0.0  ;;  %v3210_v33 = vcombine.low %v3202_v49, %v3209_v62  ;;  %v7282_v60 = vmax.f32 %v7281_v25, 0.0  ;;  %v7290_v49 = vld [vmem:[#allocation124_spill] sm:$0xff] }
 0x245   :  { %v3212_v31 = vcombine.low %v2629_v43, %v2630_v34  ;;  %v2510_v0 = vadd.f32 %v5636_v42, %v6304_v38  ;;  %v3228_v5 = vcombine.low %v2631_v28, %v2632_v18  ;;  %v2512_v46 = vadd.f32 %v5636_v42, %v6295_v8 }
 0x246   :  { %v3211_v27 = vcombine.low %v7282_v60, %v2628_v57  ;;  %v3229_v54 = vcombine.low %v2633_v2, %v2634_v11  ;;  %v2513_v3 = vadd.f32 %v5636_v42, %v6298_v41  ;;  %v3390_v17 = vpack.c.bf16 %v3210_v33, %v3193_v40  ;;  %v7291_v57 = vld [vmem:[#allocation120_spill] sm:$0xff]  ;;  %v7292_v40 = vld [vmem:[#allocation119_spill] sm:$0xff] }
 0x247   :  { %v3226_v29 = vrot.slane %v3212_v31, %v5484_v47  ;;  %v2514_v6 = vadd.f32 %v5636_v42, %v6314_v39  ;;  %v3236_v38 = vrot.slane %v3228_v5, %v5484_v47  ;;  %v2636_v20 = vmax.f32 %v6307_v15, 0.0 }
 0x248   :  { %v3219_v36 = vrot.slane %v3211_v27, %v5484_v47  ;;  %v3243_v53 = vrot.slane %v3229_v54, %v5484_v47  ;;  %v2637_v8 = vmax.f32 %v6310_v52, 0.0  ;;  %4806 = vmatmul.mubr.bf16.gmra.mxu0 %v3390_v17  ;;  %v2638_v32 = vmax.f32 %v2510_v0, 0.0  ;;  %v7295_v27 = vld [vmem:[#allocation129_spill] sm:$0xff]  ;;  %v7296_v0 = vld [vmem:[#allocation131_spill] sm:$0xff]  ;;  %v7297_v17 = vld [vmem:[#allocation134_spill] sm:$0xff] }
 0x249   :  { %v2639_v55 = vmax.f32 %v6301_v12, 0.0  ;;  %v2640_v58 = vmax.f32 %v2512_v46, 0.0  ;;  %v2641_v1 = vmax.f32 %v2513_v3, 0.0  ;;  %v2642_v56 = vmax.f32 %v2514_v6, 0.0  ;;  %v7298_v6 = vld [vmem:[#allocation132_spill] sm:$0xff] }
 0x24a   :  { %v3227_v41 = vcombine.low %v3219_v36, %v3226_v29  ;;  %v3244_v13 = vcombine.low %v3236_v38, %v3243_v53  ;;  %v7283_v42 = vmax.f32 %v6291_v9, 0.0  ;;  %v3246_v7 = vcombine.low %v2637_v8, %v2638_v32  ;;  %v7299_v53 = vld [vmem:[#allocation135_spill] sm:$0xff]  ;;  %v7300_v32 = vld [vmem:[#allocation133_spill] sm:$0xff] }
 0x24b   :  { %v3262_v14 = vcombine.low %v2639_v55, %v2640_v58  ;;  %v2518_v15 = vadd.f32 %v7285_v19, %v7284_v51  ;;  %v2520_v52 = vadd.f32 %v7285_v19, %v7286_v24  ;;  %v3263_v12 = vcombine.low %v2641_v1, %v2642_v56 }
 0x24c   :  { %v3245_v39 = vcombine.low %v7283_v42, %v2636_v20  ;;  %v3391_v30 = vpack.c.bf16 %v3244_v13, %v3227_v41  ;;  %v2521_v44 = vadd.f32 %v7285_v19, %v7287_v59  ;;  %v3260_v9 = vrot.slane %v3246_v7, %v5484_v47  ;;  %v7301_v42 = vld [vmem:[#allocation130_spill] sm:$0xff] }
 0x24d   :  { %v3270_v50 = vrot.slane %v3262_v14, %v5484_v47  ;;  %v2522_v37 = vadd.f32 %v7285_v19, %v7288_v4  ;;  %v2644_v23 = vmax.f32 %v7289_v35, 0.0  ;;  %v3277_v16 = vrot.slane %v3263_v12, %v5484_v47  ;;  %v4952_v7 = vld [vmem:[#allocation13] sm:$0xff]  }
 0x24e   :  { %v3253_v22 = vrot.slane %v3245_v39, %v5484_v47  ;;  %4809 = vmatprep.mubr.bf16.mxu0 %v3391_v30  ;;  %v2645_v10 = vmax.f32 %v7290_v49, 0.0  ;;  %v2646_v26 = vmax.f32 %v2518_v15, 0.0  ;;  %v2647_v62 = vmax.f32 %v7291_v57, 0.0  ;;  %4831 = vmatprep.subr.bf16.mxu1 %v4952_v7 }
 0x24f   :  { %v2648_v43 = vmax.f32 %v2520_v52, 0.0  ;;  %v2649_v34 = vmax.f32 %v2521_v44, 0.0  ;;  %v2650_v61 = vmax.f32 %v2522_v37, 0.0  ;;  %v3278_v28 = vcombine.low %v3270_v50, %v3277_v16  ;;  %4832 = vmatpush3.bf16.msra.mxu1 %v4952_v7  ;;  %v6723_v37 = vld [vmem:[#allocation11] ss:$0 sm:$0xff] }
 0x250   :  { %v3261_v45 = vcombine.low %v3253_v22, %v3260_v9  ;;  %v7293_v18 = vmax.f32 %v7292_v40, 0.0  ;;  %v3280_v11 = vcombine.low %v2645_v10, %v2646_v26  ;;  %v2526_v33 = vadd.f32 %v7294_v63, %v6236_v48 }
 0x251   :  { %v3296_v25 = vcombine.low %v2647_v62, %v2648_v43  ;;  %v3297_v60 = vcombine.low %v2649_v34, %v2650_v61  ;;  %v2528_v31 = vadd.f32 %v7294_v63, %v7295_v27  ;;  %v2529_v5 = vadd.f32 %v7294_v63, %v7296_v0 }
 0x252   :  { %v3279_v2 = vcombine.low %v7293_v18, %v2644_v23  ;;  %v3392_v54 = vpack.c.bf16 %v3278_v28, %v3261_v45  ;;  %v3294_v3 = vrot.slane %v3280_v11, %v5484_v47  ;;  %v2530_v36 = vadd.f32 %v7294_v63, %v7297_v17 }
 0x253   :  { %v3304_v29 = vrot.slane %v3296_v25, %v5484_v47  ;;  %v3311_v48 = vrot.slane %v3297_v60, %v5484_v47  ;;  %v2652_v38 = vmax.f32 %v7298_v6, 0.0  ;;  %v2653_v20 = vmax.f32 %v7299_v53, 0.0 }
 0x254   :  { %v3287_v46 = vrot.slane %v3279_v2, %v5484_v47  ;;  %4810 = vmatmul.mubr.bf16.gmra.mxu0 %v3392_v54  ;;  %v2654_v41 = vmax.f32 %v2526_v33, 0.0  ;;  %v2655_v55 = vmax.f32 %v7300_v32, 0.0  ;;  %v2656_v58 = vmax.f32 %v2528_v31, 0.0 }
 0x255   :  { %v3312_v13 = vcombine.low %v3304_v29, %v3311_v48  ;;  %v2657_v1 = vmax.f32 %v2529_v5, 0.0  ;;  %v2658_v56 = vmax.f32 %v2530_v36, 0.0  ;;  %v7302_v39 = vmax.f32 %v7301_v42, 0.0 }
 0x256   :  { %v3295_v8 = vcombine.low %v3287_v46, %v3294_v3  ;;  %v3314_v14 = vcombine.low %v2653_v20, %v2654_v41  ;;  %v3330_v51 = vcombine.low %v2655_v55, %v2656_v58  ;;  %v7303_v12 = vmov 0.0  }
 0x257   :  { %v3313_v21 = vcombine.low %v7302_v39, %v2652_v38  ;;  %v3331_v15 = vcombine.low %v2657_v1, %v2658_v56  ;;  %4873 = vmatprep.subr.bf16.mxu1 %v7303_v12 }
 0x258   :  { %v3393_v19 = vpack.c.bf16 %v3312_v13, %v3295_v8  ;;  %v3328_v52 = vrot.slane %v3314_v14, %v5484_v47  ;;  %v3338_v30 = vrot.slane %v3330_v51, %v5484_v47 }
 0x259   :  { %v3321_v24 = vrot.slane %v3313_v21, %v5484_v47  ;;  %v3345_v22 = vrot.slane %v3331_v15, %v5484_v47 }
 0x25a   :  { %4813 = vmatprep.mubr.bf16.mxu0 %v3393_v19 }
 0x25b   :  { %v3329_v59 = vcombine.low %v3321_v24, %v3328_v52  ;;  %v3346_v44 = vcombine.low %v3338_v30, %v3345_v22 }
 0x25d   :  { %v3394_v9 = vpack.c.bf16 %v3346_v44, %v3329_v59 }
 0x25f   :  { %4814 = vmatmul.mubr.bf16.gmra.mxu0 %v3394_v9 }
 0x260   :  { %4869 = vmatprep.mubr.msk.bf16.mxu0 %vm5254_vm0, %v7303_v12 }
 0x2b8   :  { %v4787_v50 = vpop.f32.mrf.mxu0 }
 0x2b9   :  { %v3493_v47 = vadd.f32 %v4787_v50, %v6723_v37 }
 0x2ba   :  { %v3484_v4 = vpop.f32.mrf.mxu0 }
 0x2bb   :  { %v3485_v23 = vadd.f32 %v6723_v37, %v3484_v4  ;;  %v3613_v45 = vmax.f32 %v3493_v47, 0.0 }
 0x2bc   :  { %v4788_v35 = vpop.f32.mrf.mxu0 }
 0x2bd   :  { %v3496_v16 = vadd.f32 %v4788_v35, %v6723_v37  ;;  %v3611_v57 = vmax.f32 %v3485_v23, 0.0 }
 0x2be   :  { %v3487_v49 = vpop.f32.mrf.mxu0 }
 0x2bf   :  { %v3488_v10 = vadd.f32 %v6723_v37, %v3487_v49  ;;  %v3614_v26 = vmax.f32 %v3496_v16, 0.0 }
 0x2c1   :  { %v3612_v62 = vmax.f32 %v3488_v10, 0.0  ;;  %v3660_v34 = vpack.c.bf16 %v3614_v26, %v3613_v45 }
 0x2c3   :  { %v3659_v43 = vpack.c.bf16 %v3612_v62, %v3611_v57 }
 0x2c5   :  { %4833 = vmatprep.mubr.bf16.mxu1 %v3659_v43 }
 0x2c6   :  { %4834 = vmatmul.mubr.bf16.vlgmr.msra.gmra.mxu1 %v3660_v34 }
 0x2cb   :  { %v4791_v61 = vpop.f32.mrf.mxu0 }
 0x2cc   :  { %v3509_v11 = vadd.f32 %v4791_v61, %v6723_v37 }
 0x2cd   :  { %v3500_v28 = vpop.f32.mrf.mxu0 }
 0x2ce   :  { %v3501_v18 = vadd.f32 %v6723_v37, %v3500_v28  ;;  %v3617_v31 = vmax.f32 %v3509_v11, 0.0 }
 0x2cf   :  { %v4792_v40 = vpop.f32.mrf.mxu0 }
 0x2d0   :  { %v3512_v2 = vadd.f32 %v4792_v40, %v6723_v37  ;;  %v3615_v60 = vmax.f32 %v3501_v18, 0.0 }
 0x2d1   :  { %v3503_v63 = vpop.f32.mrf.mxu0 }
 0x2d2   :  { %v3504_v33 = vadd.f32 %v6723_v37, %v3503_v63  ;;  %v3618_v25 = vmax.f32 %v3512_v2, 0.0 }
 0x2d4   :  { %v3616_v27 = vmax.f32 %v3504_v33, 0.0  ;;  %v3662_v5 = vpack.c.bf16 %v3618_v25, %v3617_v31 }
 0x2d6   :  { %v3661_v0 = vpack.c.bf16 %v3616_v27, %v3615_v60 }
 0x2d8   :  { %4837 = vmatprep.mubr.bf16.mxu1 %v3661_v0 }
 0x2d9   :  { %4838 = vmatmul.mubr.bf16.gmra.mxu1 %v3662_v5 }
 0x2df   :  { %v4795_v54 = vpop.f32.mrf.mxu0 }
 0x2e0   :  { %v3525_v29 = vadd.f32 %v4795_v54, %v6723_v37 }
 0x2e1   :  { %v3516_v46 = vpop.f32.mrf.mxu0 }
 0x2e2   :  { %v3517_v17 = vadd.f32 %v6723_v37, %v3516_v46  ;;  %v3621_v8 = vmax.f32 %v3525_v29, 0.0 }
 0x2e3   :  { %v4796_v3 = vpop.f32.mrf.mxu0 }
 0x2e4   :  { %v3528_v36 = vadd.f32 %v4796_v3, %v6723_v37  ;;  %v3619_v53 = vmax.f32 %v3517_v17, 0.0 }
 0x2e5   :  { %v3519_v48 = vpop.f32.mrf.mxu0 }
 0x2e6   :  { %v3520_v6 = vadd.f32 %v6723_v37, %v3519_v48  ;;  %v3622_v38 = vmax.f32 %v3528_v36, 0.0 }
 0x2e8   :  { %v3620_v20 = vmax.f32 %v3520_v6, 0.0  ;;  %v3664_v32 = vpack.c.bf16 %v3622_v38, %v3621_v8 }
 0x2ea   :  { %v3663_v41 = vpack.c.bf16 %v3620_v20, %v3619_v53 }
 0x2ec   :  { %4841 = vmatprep.mubr.bf16.mxu1 %v3663_v41 }
 0x2ed   :  { %4842 = vmatmul.mubr.bf16.gmra.mxu1 %v3664_v32 }
 0x2f2   :  { %v4799_v55 = vpop.f32.mrf.mxu0 }
 0x2f3   :  { %v3541_v42 = vadd.f32 %v4799_v55, %v6723_v37 }
 0x2f4   :  { %v3532_v58 = vpop.f32.mrf.mxu0 }
 0x2f5   :  { %v3533_v1 = vadd.f32 %v6723_v37, %v3532_v58  ;;  %v3625_v19 = vmax.f32 %v3541_v42, 0.0 }
 0x2f6   :  { %v4800_v13 = vpop.f32.mrf.mxu0 }
 0x2f7   :  { %v3544_v56 = vadd.f32 %v4800_v13, %v6723_v37  ;;  %v3623_v14 = vmax.f32 %v3533_v1, 0.0 }
 0x2f8   :  { %v3535_v39 = vpop.f32.mrf.mxu0 }
 0x2f9   :  { %v3536_v21 = vadd.f32 %v6723_v37, %v3535_v39  ;;  %v3626_v7 = vmax.f32 %v3544_v56, 0.0 }
 0x2fb   :  { %v3624_v51 = vmax.f32 %v3536_v21, 0.0  ;;  %v3666_v52 = vpack.c.bf16 %v3626_v7, %v3625_v19 }
 0x2fd   :  { %v3665_v15 = vpack.c.bf16 %v3624_v51, %v3623_v14  ;;  %v4803_v24 = vpop.f32.mrf.mxu0  ;;  %v6759_v14 = vld [vmem:[#allocation14] ss:$0 sm:$0xff] }
 0x2fe   :  { %v3557_v9 = vadd.f32 %v4803_v24, %v6723_v37 }
 0x2ff   :  { %v3548_v30 = vpop.f32.mrf.mxu0  ;;  %4845 = vmatprep.mubr.bf16.mxu1 %v3665_v15 }
 0x300   :  { %4846 = vmatmul.mubr.bf16.gmra.mxu1 %v3666_v52  ;;  %v3549_v59 = vadd.f32 %v6723_v37, %v3548_v30  ;;  %v3629_v47 = vmax.f32 %v3557_v9, 0.0 }
 0x301   :  { %v4804_v22 = vpop.f32.mrf.mxu0 }
 0x302   :  { %v3560_v44 = vadd.f32 %v4804_v22, %v6723_v37  ;;  %v3627_v23 = vmax.f32 %v3549_v59, 0.0 }
 0x303   :  { %v3551_v50 = vpop.f32.mrf.mxu0 }
 0x304   :  { %v3552_v4 = vadd.f32 %v6723_v37, %v3551_v50  ;;  %v3630_v35 = vmax.f32 %v3560_v44, 0.0 }
 0x306   :  { %v3628_v16 = vmax.f32 %v3552_v4, 0.0  ;;  %v3668_v26 = vpack.c.bf16 %v3630_v35, %v3629_v47 }
 0x308   :  { %v3667_v49 = vpack.c.bf16 %v3628_v16, %v3627_v23  ;;  %v4807_v10 = vpop.f32.mrf.mxu0 }
 0x309   :  { %v3573_v34 = vadd.f32 %v4807_v10, %v6723_v37 }
 0x30a   :  { %v3564_v57 = vpop.f32.mrf.mxu0  ;;  %4849 = vmatprep.mubr.bf16.mxu1 %v3667_v49 }
 0x30b   :  { %4850 = vmatmul.mubr.bf16.gmra.mxu1 %v3668_v26  ;;  %v3565_v45 = vadd.f32 %v6723_v37, %v3564_v57  ;;  %v3633_v11 = vmax.f32 %v3573_v34, 0.0 }
 0x30c   :  { %v4808_v62 = vpop.f32.mrf.mxu0 }
 0x30d   :  { %v3576_v43 = vadd.f32 %v4808_v62, %v6723_v37  ;;  %v3631_v18 = vmax.f32 %v3565_v45, 0.0 }
 0x30e   :  { %v3567_v61 = vpop.f32.mrf.mxu0 }
 0x30f   :  { %v3568_v28 = vadd.f32 %v6723_v37, %v3567_v61  ;;  %v3634_v40 = vmax.f32 %v3576_v43, 0.0 }
 0x311   :  { %v3632_v2 = vmax.f32 %v3568_v28, 0.0  ;;  %v3670_v25 = vpack.c.bf16 %v3634_v40, %v3633_v11 }
 0x313   :  { %v3669_v63 = vpack.c.bf16 %v3632_v2, %v3631_v18 }
 0x314   :  { %v4811_v33 = vpop.f32.mrf.mxu0 }
 0x315   :  { %4853 = vmatprep.mubr.bf16.mxu1 %v3669_v63  ;;  %v3589_v5 = vadd.f32 %v4811_v33, %v6723_v37 }
 0x316   :  { %v3580_v60 = vpop.f32.mrf.mxu0  ;;  %4854 = vmatmul.mubr.bf16.gmra.mxu1 %v3670_v25 }
 0x317   :  { %v3581_v31 = vadd.f32 %v6723_v37, %v3580_v60  ;;  %v3637_v29 = vmax.f32 %v3589_v5, 0.0 }
 0x318   :  { %v4812_v27 = vpop.f32.mrf.mxu0 }
 0x319   :  { %v3592_v0 = vadd.f32 %v4812_v27, %v6723_v37  ;;  %v3635_v17 = vmax.f32 %v3581_v31, 0.0 }
 0x31a   :  { %v3583_v54 = vpop.f32.mrf.mxu0 }
 0x31b   :  { %v3584_v46 = vadd.f32 %v6723_v37, %v3583_v54  ;;  %v3638_v3 = vmax.f32 %v3592_v0, 0.0 }
 0x31d   :  { %v3636_v36 = vmax.f32 %v3584_v46, 0.0  ;;  %v3672_v38 = vpack.c.bf16 %v3638_v3, %v3637_v29 }
 0x31f   :  { %v3671_v48 = vpack.c.bf16 %v3636_v36, %v3635_v17  ;;  %v4815_v6 = vpop.f32.mrf.mxu0 }
 0x320   :  { %v3605_v32 = vadd.f32 %v4815_v6, %v6723_v37 }
 0x321   :  { %v3596_v53 = vpop.f32.mrf.mxu0  ;;  %4857 = vmatprep.mubr.bf16.mxu1 %v3671_v48 }
 0x322   :  { %4858 = vmatmul.mubr.bf16.gmra.mxu1 %v3672_v38  ;;  %v3597_v8 = vadd.f32 %v6723_v37, %v3596_v53  ;;  %v3641_v42 = vmax.f32 %v3605_v32, 0.0 }
 0x323   :  { %v4816_v20 = vpop.f32.mrf.mxu0 }
 0x324   :  { %v3608_v41 = vadd.f32 %v4816_v20, %v6723_v37  ;;  %v3639_v1 = vmax.f32 %v3597_v8, 0.0 }
 0x325   :  { %v3599_v55 = vpop.f32.mrf.mxu0 }
 0x326   :  { %v3600_v58 = vadd.f32 %v6723_v37, %v3599_v55  ;;  %v3642_v13 = vmax.f32 %v3608_v41, 0.0 }
 0x328   :  { %v3640_v56 = vmax.f32 %v3600_v58, 0.0  ;;  %v3674_v21 = vpack.c.bf16 %v3642_v13, %v3641_v42 }
 0x32a   :  { %v3673_v39 = vpack.c.bf16 %v3640_v56, %v3639_v1 }
 0x32c   :  { %4861 = vmatprep.mubr.bf16.mxu1 %v3673_v39 }
 0x32d   :  { %4862 = vmatmul.mubr.bf16.gmra.mxu1 %v3674_v21 }
 0x32e   :  { %4881 = vmatprep.mubr.msk.bf16.mxu1 %vm5254_vm0, %v7303_v12 }
 0x386   :  { %v4835_v7 = vpop.f32.mrf.mxu1 }
 0x387   :  { %v3773_v19 = vadd.f32 %v4835_v7, %v6759_v14 }
 0x388   :  { %v3764_v51 = vpop.f32.mrf.mxu1 }
 0x389   :  { %v3765_v37 = vadd.f32 %v6759_v14, %v3764_v51  ;;  %v3893_v30 = vmax.f32 %v3773_v19, 0.0 }
 0x38a   :  { %v4836_v15 = vpop.f32.mrf.mxu1 }
 0x38b   :  { %v3776_v24 = vadd.f32 %v4836_v15, %v6759_v14  ;;  %v3891_v44 = vmax.f32 %v3765_v37, 0.0 }
 0x38c   :  { %v3767_v52 = vpop.f32.mrf.mxu1 }
 0x38d   :  { %v3894_v22 = vmax.f32 %v3776_v24, 0.0  ;;  %v3768_v59 = vadd.f32 %v6759_v14, %v3767_v52 }
 0x38f   :  { %v3930_v9 = vadd.f32 %v3894_v22, %v3893_v30  ;;  %v3892_v50 = vmax.f32 %v3768_v59, 0.0 }
 0x391   :  { %v3931_v4 = vrot.slane %v3930_v9, 4  ;;  %v3923_v35 = vadd.f32 %v3892_v50, %v3891_v44 }
 0x393   :  { %v3932_v23 = vadd.f32 %v3931_v4, %v3930_v9  ;;  %v3924_v16 = vrot.slane %v3923_v35, 4 }
 0x395   :  { %v3933_v47 = vrot.slane %v3932_v23, 2  ;;  %v3925_v10 = vadd.f32 %v3924_v16, %v3923_v35 }
 0x397   :  { %v3934_v49 = vadd.f32 %v3933_v47, %v3932_v23  ;;  %v3926_v43 = vrot.slane %v3925_v10, 2 }
 0x399   :  { %v4839_v26 = vpop.f32.mrf.mxu1  ;;  %v3935_v57 = vrot.slane %v3934_v49, 1  ;;  %v3927_v33 = vadd.f32 %v3926_v43, %v3925_v10 }
 0x39a   :  { %v3789_v45 = vadd.f32 %v4839_v26, %v6759_v14 }
 0x39b   :  { %v3780_v62 = vpop.f32.mrf.mxu1  ;;  %v6766_v61 = vadd.f32 %v3935_v57, %v3934_v49  ;;  %v3928_v5 = vrot.slane %v3927_v33, 1 }
 0x39c   :  { %v3781_v28 = vadd.f32 %v6759_v14, %v3780_v62  ;;  %v3897_v2 = vmax.f32 %v3789_v45, 0.0 }
 0x39d   :  { %v4840_v34 = vpop.f32.mrf.mxu1  ;;  %4053 = vrot.lane.b32.xlu0 %v6766_v61, %s5257_s6  ;;  %v6777_v36 = vadd.f32 %v3928_v5, %v3927_v33 }
 0x39e   :  { %v3792_v40 = vadd.f32 %v4840_v34, %v6759_v14  ;;  %v3895_v25 = vmax.f32 %v3781_v28, 0.0 }
 0x39f   :  { %v3783_v18 = vpop.f32.mrf.mxu1 }
 0x3a0   :  { %v3898_v11 = vmax.f32 %v3792_v40, 0.0  ;;  %v3784_v63 = vadd.f32 %v6759_v14, %v3783_v18 }
 0x3a1   :  { %4117 = vrot.lane.b32.xlu0 %v6766_v61, %s5241_s29 }
 0x3a2   :  { %v3944_v60 = vadd.f32 %v3898_v11, %v3897_v2  ;;  %v3896_v27 = vmax.f32 %v3784_v63, 0.0 }
 0x3a4   :  { %v3945_v31 = vrot.slane %v3944_v60, 4  ;;  %v3937_v0 = vadd.f32 %v3896_v27, %v3895_v25 }
 0x3a5   :  { %4181 = vrot.lane.b32.xlu0 %v6766_v61, %s5258_s7 }
 0x3a6   :  { %v3946_v54 = vadd.f32 %v3945_v31, %v3944_v60  ;;  %v3938_v46 = vrot.slane %v3937_v0, 4 }
 0x3a8   :  { %v3947_v3 = vrot.slane %v3946_v54, 2  ;;  %v3939_v17 = vadd.f32 %v3938_v46, %v3937_v0 }
 0x3a9   :  { %4051 = vrot.lane.b32.xlu0 %v6777_v36, %s5257_s6 }
 0x3aa   :  { %v3948_v29 = vadd.f32 %v3947_v3, %v3946_v54  ;;  %v3940_v48 = vrot.slane %v3939_v17, 2 }
 0x3ac   :  { %v3949_v38 = vrot.slane %v3948_v29, 1  ;;  %v3941_v53 = vadd.f32 %v3940_v48, %v3939_v17 }
 0x3ad   :  { %v4843_v6 = vpop.f32.mrf.mxu1  ;;  %4115 = vrot.lane.b32.xlu0 %v6777_v36, %s5241_s29 }
 0x3ae   :  { %v3805_v8 = vadd.f32 %v4843_v6, %v6759_v14  ;;  %v6782_v41 = vadd.f32 %v3949_v38, %v3948_v29  ;;  %v3942_v13 = vrot.slane %v3941_v53, 1 }
 0x3af   :  { %v3796_v20 = vpop.f32.mrf.mxu1 }
 0x3b0   :  { %v3797_v55 = vadd.f32 %v6759_v14, %v3796_v20  ;;  %4057 = vrot.lane.b32.xlu1 %v6782_v41, %s5257_s6  ;;  %v3901_v56 = vmax.f32 %v3805_v8, 0.0  ;;  %v6795_v19 = vadd.f32 %v3942_v13, %v3941_v53 }
 0x3b1   :  { %v4844_v32 = vpop.f32.mrf.mxu1  ;;  %4179 = vrot.lane.b32.xlu0 %v6777_v36, %s5258_s7 }
 0x3b2   :  { %v3808_v58 = vadd.f32 %v4844_v32, %v6759_v14  ;;  %v3899_v21 = vmax.f32 %v3797_v55, 0.0 }
 0x3b3   :  { %v3799_v1 = vpop.f32.mrf.mxu1 }
 0x3b4   :  { %v3902_v42 = vmax.f32 %v3808_v58, 0.0  ;;  %v3800_v39 = vadd.f32 %v6759_v14, %v3799_v1  ;;  %4121 = vrot.lane.b32.xlu1 %v6782_v41, %s5241_s29 }
 0x3b5   :  { %4119 = vrot.lane.b32.xlu0 %v6795_v19, %s5241_s29 }
 0x3b6   :  { %v3958_v7 = vadd.f32 %v3902_v42, %v3901_v56  ;;  %v3900_v51 = vmax.f32 %v3800_v39, 0.0 }
 0x3b8   :  { %v3959_v15 = vrot.slane %v3958_v7, 4  ;;  %v3951_v37 = vadd.f32 %v3900_v51, %v3899_v21  ;;  %4185 = vrot.lane.b32.xlu1 %v6782_v41, %s5258_s7 }
 0x3b9   :  { %4183 = vrot.lane.b32.xlu0 %v6795_v19, %s5258_s7 }
 0x3ba   :  { %v3960_v24 = vadd.f32 %v3959_v15, %v3958_v7  ;;  %v3952_v52 = vrot.slane %v3951_v37, 4 }
 0x3bc   :  { %v3961_v30 = vrot.slane %v3960_v24, 2  ;;  %v3953_v59 = vadd.f32 %v3952_v52, %v3951_v37  ;;  %4055 = vrot.lane.b32.xlu1 %v6795_v19, %s5257_s6 }
 0x3be   :  { %v3962_v22 = vadd.f32 %v3961_v30, %v3960_v24  ;;  %v3954_v35 = vrot.slane %v3953_v59, 2 }
 0x3c0   :  { %v4847_v44 = vpop.f32.mrf.mxu1  ;;  %v3963_v9 = vrot.slane %v3962_v22, 1  ;;  %v3955_v45 = vadd.f32 %v3954_v35, %v3953_v59 }
 0x3c1   :  { %v3821_v4 = vadd.f32 %v4847_v44, %v6759_v14 }
 0x3c2   :  { %v3812_v50 = vpop.f32.mrf.mxu1  ;;  %v6806_v16 = vadd.f32 %v3963_v9, %v3962_v22  ;;  %v3956_v2 = vrot.slane %v3955_v45, 1 }
 0x3c3   :  { %v3813_v49 = vadd.f32 %v6759_v14, %v3812_v50  ;;  %v3905_v26 = vmax.f32 %v3821_v4, 0.0 }
 0x3c4   :  { %v4848_v23 = vpop.f32.mrf.mxu1  ;;  %4061 = vrot.lane.b32.xlu0 %v6806_v16, %s5257_s6  ;;  %v6819_v5 = vadd.f32 %v3956_v2, %v3955_v45 }
 0x3c5   :  { %v3824_v47 = vadd.f32 %v4848_v23, %v6759_v14  ;;  %v3903_v28 = vmax.f32 %v3813_v49, 0.0 }
 0x3c6   :  { %v3815_v10 = vpop.f32.mrf.mxu1 }
 0x3c7   :  { %v3906_v57 = vmax.f32 %v3824_v47, 0.0  ;;  %v3816_v62 = vadd.f32 %v6759_v14, %v3815_v10 }
 0x3c8   :  { %4125 = vrot.lane.b32.xlu0 %v6806_v16, %s5241_s29 }
 0x3c9   :  { %v3972_v43 = vadd.f32 %v3906_v57, %v3905_v26  ;;  %v3904_v34 = vmax.f32 %v3816_v62, 0.0 }
 0x3cb   :  { %v3973_v40 = vrot.slane %v3972_v43, 4  ;;  %v4851_v18 = vpop.f32.mrf.mxu1  ;;  %v3965_v11 = vadd.f32 %v3904_v34, %v3903_v28 }
 0x3cc   :  { %v3837_v25 = vadd.f32 %v4851_v18, %v6759_v14  ;;  %4189 = vrot.lane.b32.xlu0 %v6806_v16, %s5258_s7 }
 0x3cd   :  { %v3974_v63 = vadd.f32 %v3973_v40, %v3972_v43  ;;  %v3828_v33 = vpop.f32.mrf.mxu1  ;;  %v3966_v31 = vrot.slane %v3965_v11, 4 }
 0x3ce   :  { %v3909_v46 = vmax.f32 %v3837_v25, 0.0  ;;  %v3829_v38 = vadd.f32 %v6759_v14, %v3828_v33 }
 0x3cf   :  { %v4852_v60 = vpop.f32.mrf.mxu1  ;;  %v3975_v27 = vrot.slane %v3974_v63, 2  ;;  %v3967_v29 = vadd.f32 %v3966_v31, %v3965_v11 }
 0x3d0   :  { %v3840_v0 = vadd.f32 %v4852_v60, %v6759_v14  ;;  %4059 = vrot.lane.b32.xlu0 %v6819_v5, %s5257_s6  ;;  %v3907_v56 = vmax.f32 %v3829_v38, 0.0 }
 0x3d1   :  { %v3831_v54 = vpop.f32.mrf.mxu1  ;;  %v3976_v17 = vadd.f32 %v3975_v27, %v3974_v63  ;;  %v3968_v32 = vrot.slane %v3967_v29, 2 }
 0x3d2   :  { %v3910_v3 = vmax.f32 %v3840_v0, 0.0  ;;  %v3832_v6 = vadd.f32 %v6759_v14, %v3831_v54 }
 0x3d3   :  { %v3977_v8 = vrot.slane %v3976_v17, 1  ;;  %v3969_v51 = vadd.f32 %v3968_v32, %v3967_v29 }
 0x3d4   :  { %v3986_v48 = vadd.f32 %v3910_v3, %v3909_v46  ;;  %4123 = vrot.lane.b32.xlu0 %v6819_v5, %s5241_s29  ;;  %v3908_v58 = vmax.f32 %v3832_v6, 0.0 }
 0x3d5   :  { %v6832_v52 = vadd.f32 %v3977_v8, %v3976_v17  ;;  %v3970_v35 = vrot.slane %v3969_v51, 1  ;;  %v4953_v17 = vld [vmem:[#allocation16 + $0x8] sm:$0xff]  }
 0x3d6   :  { %v3987_v53 = vrot.slane %v3986_v48, 4  ;;  %v4855_v20 = vpop.f32.mrf.mxu1  ;;  %v3979_v37 = vadd.f32 %v3908_v58, %v3907_v56  ;;  %4866 = vmatpush3.bf16.msra.mxu0 %v4953_v17 }
 0x3d7   :  { %v3853_v1 = vadd.f32 %v4855_v20, %v6759_v14  ;;  %v6843_v34 = vadd.f32 %v3970_v35, %v3969_v51  ;;  %4867 = vmatprep.subr.bf16.mxu0 %v7303_v12 }
 0x3d8   :  { %v3988_v55 = vadd.f32 %v3987_v53, %v3986_v48  ;;  %v3844_v13 = vpop.f32.mrf.mxu1  ;;  %4187 = vrot.lane.b32.xlu0 %v6819_v5, %s5258_s7  ;;  %v3980_v23 = vrot.slane %v3979_v37, 4 }
 0x3d9   :  { %v3845_v21 = vadd.f32 %v6759_v14, %v3844_v13  ;;  %v3913_v30 = vmax.f32 %v3853_v1, 0.0 }
 0x3da   :  { %v3989_v42 = vrot.slane %v3988_v55, 2  ;;  %v4856_v39 = vpop.f32.mrf.mxu1  ;;  %v3981_v43 = vadd.f32 %v3980_v23, %v3979_v37 }
 0x3db   :  { %v3856_v7 = vadd.f32 %v4856_v39, %v6759_v14  ;;  %v3911_v9 = vmax.f32 %v3845_v21, 0.0 }
 0x3dc   :  { %v3990_v15 = vadd.f32 %v3989_v42, %v3988_v55  ;;  %v3847_v24 = vpop.f32.mrf.mxu1  ;;  %4065 = vrot.lane.b32.xlu0 %v6832_v52, %s5257_s6  ;;  %v3982_v33 = vrot.slane %v3981_v43, 2 }
 0x3dd   :  { %v3914_v22 = vmax.f32 %v3856_v7, 0.0  ;;  %v3848_v59 = vadd.f32 %v6759_v14, %v3847_v24 }
 0x3de   :  { %v3991_v44 = vrot.slane %v3990_v15, 1  ;;  %v3983_v46 = vadd.f32 %v3982_v33, %v3981_v43 }
 0x3df   :  { %v4000_v50 = vadd.f32 %v3914_v22, %v3913_v30  ;;  %v3912_v4 = vmax.f32 %v3848_v59, 0.0 }
 0x3e0   :  { %v6837_v47 = vadd.f32 %v3991_v44, %v3990_v15  ;;  %4129 = vrot.lane.b32.xlu0 %v6832_v52, %s5241_s29  ;;  %v3984_v38 = vrot.slane %v3983_v46, 1 }
 0x3e1   :  { %v4001_v49 = vrot.slane %v4000_v50, 4  ;;  %v3993_v10 = vadd.f32 %v3912_v4, %v3911_v9 }
 0x3e2   :  { %v4859_v26 = vpop.f32.mrf.mxu1  ;;  %4133 = vrot.lane.b32.xlu1 %v6837_v47, %s5241_s29  ;;  %v6866_v13 = vadd.f32 %v3984_v38, %v3983_v46 }
 0x3e3   :  { %v4002_v57 = vadd.f32 %v4001_v49, %v4000_v50  ;;  %v3994_v62 = vrot.slane %v3993_v10, 4  ;;  %v3869_v40 = vadd.f32 %v4859_v26, %v6759_v14 }
 0x3e4   :  { %v3860_v45 = vpop.f32.mrf.mxu1  ;;  %4063 = vrot.lane.b32.xlu0 %v6843_v34, %s5257_s6 }
 0x3e5   :  { %v4003_v28 = vrot.slane %v4002_v57, 2  ;;  %v3995_v63 = vadd.f32 %v3994_v62, %v3993_v10  ;;  %v3917_v27 = vmax.f32 %v3869_v40, 0.0  ;;  %v3861_v20 = vadd.f32 %v6759_v14, %v3860_v45 }
 0x3e6   :  { %v4860_v18 = vpop.f32.mrf.mxu1  ;;  %4197 = vrot.lane.b32.xlu1 %v6837_v47, %s5258_s7 }
 0x3e7   :  { %v3872_v2 = vadd.f32 %v4860_v18, %v6759_v14  ;;  %v4004_v11 = vadd.f32 %v4003_v28, %v4002_v57  ;;  %v3996_v31 = vrot.slane %v3995_v63, 2  ;;  %v3915_v1 = vmax.f32 %v3861_v20, 0.0 }
 0x3e8   :  { %4127 = vrot.lane.b32.xlu0 %v6843_v34, %s5241_s29  ;;  %v3863_v3 = vpop.f32.mrf.mxu1 }
 0x3e9   :  { %v3918_v25 = vmax.f32 %v3872_v2, 0.0  ;;  %v4005_v60 = vrot.slane %v4004_v11, 1  ;;  %v3997_v29 = vadd.f32 %v3996_v31, %v3995_v63  ;;  %v3864_v6 = vadd.f32 %v6759_v14, %v3863_v3 }
 0x3eb   :  { %v4014_v0 = vadd.f32 %v3918_v25, %v3917_v27  ;;  %v6853_v54 = vadd.f32 %v4005_v60, %v4004_v11  ;;  %v3998_v8 = vrot.slane %v3997_v29, 1  ;;  %v3916_v55 = vmax.f32 %v3864_v6, 0.0 }
 0x3ec   :  { %4191 = vrot.lane.b32.xlu0 %v6843_v34, %s5258_s7 }
 0x3ed   :  { %4073 = vrot.lane.b32.xlu1 %v6853_v54, %s5257_s6  ;;  %v4015_v48 = vrot.slane %v4014_v0, 4  ;;  %v4863_v53 = vpop.f32.mrf.mxu1  ;;  %v4007_v42 = vadd.f32 %v3916_v55, %v3915_v1  ;;  %v6872_v39 = vadd.f32 %v3998_v8, %v3997_v29 }
 0x3ee   :  { %v3885_v37 = vadd.f32 %v4863_v53, %v6759_v14 }
 0x3ef   :  { %v4016_v32 = vadd.f32 %v4015_v48, %v4014_v0  ;;  %v3876_v58 = vpop.f32.mrf.mxu1  ;;  %v4008_v51 = vrot.slane %v4007_v42, 4 }
 0x3f0   :  { %4069 = vrot.lane.b32.xlu0 %v6837_v47, %s5257_s6  ;;  %v3921_v44 = vmax.f32 %v3885_v37, 0.0  ;;  %v3877_v23 = vadd.f32 %v6759_v14, %v3876_v58 }
 0x3f1   :  { %4137 = vrot.lane.b32.xlu1 %v6853_v54, %s5241_s29  ;;  %v4017_v56 = vrot.slane %v4016_v32, 2  ;;  %v4864_v21 = vpop.f32.mrf.mxu1  ;;  %v4009_v30 = vadd.f32 %v4008_v51, %v4007_v42 }
 0x3f2   :  { %v3888_v15 = vadd.f32 %v4864_v21, %v6759_v14  ;;  %v3919_v57 = vmax.f32 %v3877_v23, 0.0 }
 0x3f3   :  { %v4018_v7 = vadd.f32 %v4017_v56, %v4016_v32  ;;  %v3879_v59 = vpop.f32.mrf.mxu1  ;;  %v4010_v9 = vrot.slane %v4009_v30, 2 }
 0x3f4   :  { %4067 = vrot.lane.b32.xlu0 %v6866_v13, %s5257_s6  ;;  %v3922_v22 = vmax.f32 %v3888_v15, 0.0  ;;  %v3880_v4 = vadd.f32 %v6759_v14, %v3879_v59  ;;  %v4954_v14 = vld [vmem:[#allocation16] sm:$0xff]  }
 0x3f5   :  { %4201 = vrot.lane.b32.xlu1 %v6853_v54, %s5258_s7  ;;  %v4019_v24 = vrot.slane %v4018_v7, 1  ;;  %v4011_v49 = vadd.f32 %v4010_v9, %v4009_v30  ;;  %4868 = vmatpush3.bf16.msra.mxu0 %v4954_v14 }
 0x3f6   :  { %v4028_v50 = vadd.f32 %v3922_v22, %v3921_v44  ;;  %v3920_v26 = vmax.f32 %v3880_v4, 0.0  ;;  %4885 = vmatprep.subr.bf16.mxu0 %v7303_v12 }
 0x3f7   :  { %v6889_v35 = vadd.f32 %v4019_v24, %v4018_v7  ;;  %v4012_v62 = vrot.slane %v4011_v49, 1  ;;  %v4955_v24 = vld [vmem:[#allocation19 + $0x18] sm:$0xff]  }
 0x3f8   :  { %4131 = vrot.lane.b32.xlu0 %v6866_v13, %s5241_s29  ;;  %v4029_v10 = vrot.slane %v4028_v50, 4  ;;  %v4021_v43 = vadd.f32 %v3920_v26, %v3919_v57  ;;  %4874 = vmatpush3.bf16.msra.mxu1 %v4955_v24  ;;  %v4958_v26 = vld [vmem:[#allocation19] sm:$0xff]  }
 0x3f9   :  { %4071 = vrot.lane.b32.xlu1 %v6872_v39, %s5257_s6  ;;  %v6898_v18 = vadd.f32 %v4012_v62, %v4011_v49  ;;  %4875 = vmatprep.subr.bf16.mxu1 %v7303_v12 }
 0x3fa   :  { %v4030_v45 = vadd.f32 %v4029_v10, %v4028_v50  ;;  %v4022_v40 = vrot.slane %v4021_v43, 4  ;;  %v4957_v50 = vld [vmem:[#allocation19 + $0x8] sm:$0xff]  }
 0x3fc   :  { %4195 = vrot.lane.b32.xlu0 %v6866_v13, %s5258_s7  ;;  %v4031_v28 = vrot.slane %v4030_v45, 2  ;;  %v4023_v11 = vadd.f32 %v4022_v40, %v4021_v43 }
 0x3fd   :  { %4135 = vrot.lane.b32.xlu1 %v6872_v39, %s5241_s29 }
 0x3fe   :  { %v4032_v2 = vadd.f32 %v4031_v28, %v4030_v45  ;;  %v4024_v25 = vrot.slane %v4023_v11, 2 }
 0x400   :  { %4193 = vrot.lane.b32.xlu0 %v6832_v52, %s5258_s7  ;;  %v4033_v33 = vrot.slane %v4032_v2, 1  ;;  %v4025_v0 = vadd.f32 %v4024_v25, %v4023_v11 }
 0x401   :  { %4199 = vrot.lane.b32.xlu1 %v6872_v39, %s5258_s7 }
 0x402   :  { %v6908_v46 = vadd.f32 %v4033_v33, %v4032_v2  ;;  %v4026_v29 = vrot.slane %v4025_v0, 1 }
 0x404   :  { %v6914_v6 = vadd.f32 %v4026_v29, %v4025_v0 }
 0x405   :  { %4077 = vrot.lane.b32.xlu1 %v6889_v35, %s5257_s6 }
 0x409   :  { %4141 = vrot.lane.b32.xlu1 %v6889_v35, %s5241_s29 }
 0x40d   :  { %4205 = vrot.lane.b32.xlu1 %v6889_v35, %s5258_s7 }
 0x40f   :  { %v4054_v63 = vpop.permute.xlu0 %4053 }
 0x410   :  { %v4100_v60 = vadd.f32 %v4054_v63, %v6766_v61 }
 0x411   :  { %4075 = vrot.lane.b32.xlu1 %v6898_v18, %s5257_s6 }
 0x413   :  { %v4118_v27 = vpop.permute.xlu0 %4117 }
 0x414   :  { %v4164_v31 = vadd.f32 %v4118_v27, %v4100_v60 }
 0x415   :  { %4139 = vrot.lane.b32.xlu1 %v6898_v18, %s5241_s29 }
 0x417   :  { %v4182_v3 = vpop.permute.xlu0 %4181 }
 0x418   :  { %v4228_v17 = vadd.f32 %v4182_v3, %v4164_v31 }
 0x419   :  { %4203 = vrot.lane.b32.xlu1 %v6898_v18, %s5258_s7 }
 0x41a   :  { %v4267_v53 = vpack.c.bf16 %v4228_v17, %v4228_v17 }
 0x41b   :  { %v4052_v48 = vpop.permute.xlu0 %4051 }
 0x41c   :  { %v4099_v61 = vadd.f32 %v4052_v48, %v6777_v36  ;;  %v4305_v58 = vunpack.c.l.b16 %v4267_v53 }
 0x41d   :  { %4081 = vrot.lane.b32.xlu1 %v6908_v46, %s5257_s6 }
 0x41e   :  { %v4320_v7 = vrot.slane %v4305_v58, 7 }
 0x41f   :  { %v4116_v38 = vpop.permute.xlu0 %4115 }
 0x420   :  { %v4163_v8 = vadd.f32 %v4116_v38, %v4099_v61 }
 0x421   :  { %4145 = vrot.lane.b32.xlu1 %v6908_v46, %s5241_s29 }
 0x422   :  { %v4058_v20 = vpop.permute.xlu1 %4057 }
 0x423   :  { %v4102_v32 = vadd.f32 %v4058_v20, %v6782_v41  ;;  %v4180_v55 = vpop.permute.xlu0 %4179  ;;  %v4956_v41 = vld [vmem:[#allocation19 + $0x10] sm:$0xff]  }
 0x424   :  { %v4227_v56 = vadd.f32 %v4180_v55, %v4163_v8  ;;  %4876 = vmatpush3.bf16.msra.mxu1 %v4956_v41 }
 0x425   :  { %4079 = vrot.lane.b32.xlu1 %v6914_v6, %s5257_s6  ;;  %4877 = vmatprep.subr.bf16.mxu1 %v7303_v12 }
 0x426   :  { %v4122_v1 = vpop.permute.xlu1 %4121  ;;  %v4266_v21 = vpack.c.bf16 %v4227_v56, %v4227_v56 }
 0x427   :  { %v4166_v42 = vadd.f32 %v4122_v1, %v4102_v32  ;;  %v4120_v36 = vpop.permute.xlu0 %4119 }
 0x428   :  { %v4304_v15 = vunpack.c.l.b16 %v4266_v21  ;;  %4878 = vmatpush3.bf16.msra.mxu1 %v4957_v50 }
 0x429   :  { %4143 = vrot.lane.b32.xlu1 %v6914_v6, %s5241_s29  ;;  %4879 = vmatprep.subr.bf16.mxu1 %v7303_v12 }
 0x42a   :  { %v4186_v51 = vpop.permute.xlu1 %4185  ;;  %v4322_v30 = vsel %vm4321_vm3, %v4320_v7, %v4304_v15 }
 0x42b   :  { %v4230_v37 = vadd.f32 %v4186_v51, %v4166_v42  ;;  %v4184_v59 = vpop.permute.xlu0 %4183 }
 0x42c   :  { %4880 = vmatpush3.bf16.msra.mxu1 %v4958_v26 }
 0x42d   :  { %4207 = vrot.lane.b32.xlu1 %v6914_v6, %s5258_s7  ;;  %v4269_v4 = vpack.c.bf16 %v4230_v37, %v4230_v37 }
 0x42e   :  { %v4056_v22 = vpop.permute.xlu1 %4055 }
 0x42f   :  { %v4101_v44 = vadd.f32 %v4056_v22, %v6795_v19  ;;  %v4307_v57 = vunpack.c.l.b16 %v4269_v4 }
 0x431   :  { %4209 = vrot.lane.b32.xlu1 %v6908_v46, %s5258_s7  ;;  %v4165_v9 = vadd.f32 %v4120_v36, %v4101_v44  ;;  %v4326_v19 = vrot.slane %v4307_v57, 5 }
 0x433   :  { %v4229_v23 = vadd.f32 %v4184_v59, %v4165_v9 }
 0x435   :  { %v4268_v10 = vpack.c.bf16 %v4229_v23, %v4229_v23 }
 0x436   :  { %v4062_v49 = vpop.permute.xlu0 %4061 }
 0x437   :  { %v4306_v62 = vunpack.c.l.b16 %v4268_v10 }
 0x439   :  { %v4323_v43 = vrot.slane %v4306_v62, 6 }
 0x43a   :  { %v4126_v45 = vpop.permute.xlu0 %4125 }
 0x43b   :  { %v4325_v28 = vsel %vm4324_vm4, %v4323_v43, %v4322_v30 }
 0x43c   :  { %v6933_v14 = vsel %vm4327_vm5, %v4326_v19, %v4325_v28 }
 0x43e   :  { %v4190_v40 = vpop.permute.xlu0 %4189 }
 0x442   :  { %v4060_v2 = vpop.permute.xlu0 %4059 }
 0x443   :  { %v4103_v59 = vadd.f32 %v4060_v2, %v6819_v5 }
 0x446   :  { %v4124_v11 = vpop.permute.xlu0 %4123 }
 0x447   :  { %v4167_v23 = vadd.f32 %v4124_v11, %v4103_v59 }
 0x44a   :  { %v4188_v63 = vpop.permute.xlu0 %4187 }
 0x44e   :  { %v4066_v33 = vpop.permute.xlu0 %4065 }
 0x44f   :  { %v4106_v43 = vadd.f32 %v4066_v33, %v6832_v52 }
 0x452   :  { %v4130_v60 = vpop.permute.xlu0 %4129 }
 0x454   :  { %v4134_v25 = vpop.permute.xlu1 %4133 }
 0x456   :  { %v4064_v27 = vpop.permute.xlu0 %4063 }
 0x458   :  { %v4198_v31 = vpop.permute.xlu1 %4197 }
 0x45a   :  { %v4128_v0 = vpop.permute.xlu0 %4127 }
 0x45e   :  { %v4192_v17 = vpop.permute.xlu0 %4191 }
 0x45f   :  { %v4074_v3 = vpop.permute.xlu1 %4073 }
 0x460   :  { %v4110_v22 = vadd.f32 %v4074_v3, %v6853_v54  ;;  %v4105_v54 = vadd.f32 %v4064_v27, %v6843_v34  ;;  %v4170_v3 = vadd.f32 %v4130_v60, %v4106_v43 }
 0x462   :  { %v4070_v48 = vpop.permute.xlu0 %4069 }
 0x463   :  { %v4138_v29 = vpop.permute.xlu1 %4137  ;;  %v4108_v61 = vadd.f32 %v4070_v48, %v6837_v47 }
 0x464   :  { %v4174_v4 = vadd.f32 %v4138_v29, %v4110_v22  ;;  %v4169_v29 = vadd.f32 %v4128_v0, %v4105_v54 }
 0x465   :  { %v4172_v53 = vadd.f32 %v4134_v25, %v4108_v61 }
 0x466   :  { %v4068_v21 = vpop.permute.xlu0 %4067  ;;  %v4233_v52 = vadd.f32 %v4192_v17, %v4169_v29 }
 0x467   :  { %v4202_v38 = vpop.permute.xlu1 %4201  ;;  %v4236_v20 = vadd.f32 %v4198_v31, %v4172_v53  ;;  %v4107_v15 = vadd.f32 %v4068_v21, %v6866_v13  ;;  %v4104_v13 = vadd.f32 %v4062_v49, %v6806_v16 }
 0x468   :  { %v4238_v57 = vadd.f32 %v4202_v38, %v4174_v4 }
 0x469   :  { %v4275_v10 = vpack.c.bf16 %v4236_v20, %v4236_v20  ;;  %v4168_v2 = vadd.f32 %v4126_v45, %v4104_v13 }
 0x46a   :  { %v4132_v7 = vpop.permute.xlu0 %4131  ;;  %v4277_v16 = vpack.c.bf16 %v4238_v57, %v4238_v57 }
 0x46b   :  { %v4072_v8 = vpop.permute.xlu1 %4071  ;;  %v4171_v30 = vadd.f32 %v4132_v7, %v4107_v15  ;;  %v4313_v31 = vunpack.c.l.b16 %v4275_v10  ;;  %v4232_v48 = vadd.f32 %v4190_v40, %v4168_v2 }
 0x46c   :  { %v4109_v37 = vadd.f32 %v4072_v8, %v6872_v39  ;;  %v4231_v39 = vadd.f32 %v4188_v63, %v4167_v23  ;;  %v4315_v8 = vunpack.c.l.b16 %v4277_v16 }
 0x46d   :  { %v4341_v27 = vrot.slane %v4313_v31, 7  ;;  %v4639_v31 = vld [vmem:[#allocation17] ss:$0 sm:$0xff] }
 0x46e   :  { %v4196_v24 = vpop.permute.xlu0 %4195  ;;  %v4270_v61 = vpack.c.bf16 %v4231_v39, %v4231_v39  ;;  %v4345_v7 = vrot.slane %v4315_v8, 5 }
 0x46f   :  { %v4136_v32 = vpop.permute.xlu1 %4135  ;;  %v4235_v44 = vadd.f32 %v4196_v24, %v4171_v30 }
 0x470   :  { %v4173_v41 = vadd.f32 %v4136_v32, %v4109_v37  ;;  %v4308_v32 = vunpack.c.l.b16 %v4270_v61 }
 0x471   :  { %v4274_v62 = vpack.c.bf16 %v4235_v44, %v4235_v44 }
 0x472   :  { %v4194_v11 = vpop.permute.xlu0 %4193  ;;  %v4329_v37 = vrot.slane %v4308_v32, 4 }
 0x473   :  { %v4200_v55 = vpop.permute.xlu1 %4199  ;;  %v4312_v63 = vunpack.c.l.b16 %v4274_v62  ;;  %v4234_v33 = vadd.f32 %v4194_v11, %v4170_v3 }
 0x474   :  { %v4237_v9 = vadd.f32 %v4200_v55, %v4173_v41  ;;  %v4272_v55 = vpack.c.bf16 %v4233_v52, %v4233_v52  ;;  %v4961_v52 = vld [vmem:[%s6993_s15 + $0x8] sm:$0xff]  }
 0x475   :  { %v4342_v60 = vsel %vm4321_vm3, %v4341_v27, %v4312_v63 }
 0x476   :  { %v4276_v19 = vpack.c.bf16 %v4237_v9, %v4237_v9  ;;  %v4310_v24 = vunpack.c.l.b16 %v4272_v55 }
 0x477   :  { %v4078_v58 = vpop.permute.xlu1 %4077 }
 0x478   :  { %v4112_v25 = vadd.f32 %v4078_v58, %v6889_v35  ;;  %v4314_v38 = vunpack.c.l.b16 %v4276_v19  ;;  %v4271_v35 = vpack.c.bf16 %v4232_v48, %v4232_v48  ;;  %v4273_v58 = vpack.c.bf16 %v4234_v33, %v4234_v33  ;;  %v4962_v33 = vld [vmem:[%s6993_s15] sm:$0xff]  }
 0x479   :  { %v4335_v23 = vrot.slane %v4310_v24, 2 }
 0x47a   :  { %v4343_v40 = vrot.slane %v4314_v38, 6  ;;  %v4309_v15 = vunpack.c.l.b16 %v4271_v35  ;;  %v4311_v30 = vunpack.c.l.b16 %v4273_v58  ;;  %v4960_v38 = vld [vmem:[%s6993_s15 + $0x10] sm:$0xff]  }
 0x47b   :  { %v4142_v1 = vpop.permute.xlu1 %4141 }
 0x47c   :  { %v4176_v49 = vadd.f32 %v4142_v1, %v4112_v25  ;;  %v4338_v57 = vrot.slane %v4311_v30, 1 }
 0x47f   :  { %v4206_v56 = vpop.permute.xlu1 %4205 }
 0x480   :  { %v4240_v34 = vadd.f32 %v4206_v56, %v4176_v49  ;;  %v4344_v56 = vsel %vm4324_vm4, %v4343_v40, %v4342_v60  ;;  %v4649_v40 = vld [vmem:[%s6994_s16] ss:$0 sm:$0xff] }
 0x481   :  { %v4346_v59 = vsel %vm4327_vm5, %v4345_v7, %v4344_v56 }
 0x483   :  { %v4076_v42 = vpop.permute.xlu1 %4075 }
 0x484   :  { %v4111_v26 = vadd.f32 %v4076_v42, %v6898_v18  ;;  %v4279_v42 = vpack.c.bf16 %v4240_v34, %v4240_v34 }
 0x486   :  { %v4317_v22 = vunpack.c.l.b16 %v4279_v42 }
 0x487   :  { %v4140_v36 = vpop.permute.xlu1 %4139 }
 0x488   :  { %v4175_v28 = vadd.f32 %v4140_v36, %v4111_v26  ;;  %v4332_v26 = vrot.slane %v4309_v15, 3  ;;  %v4349_v13 = vrot.slane %v4317_v22, 3 }
 0x48b   :  { %v4204_v51 = vpop.permute.xlu1 %4203 }
 0x48c   :  { %v4239_v18 = vadd.f32 %v4204_v51, %v4175_v28 }
 0x48e   :  { %v4278_v20 = vpack.c.bf16 %v4239_v18, %v4239_v18 }
 0x48f   :  { %v4082_v47 = vpop.permute.xlu1 %4081 }
 0x490   :  { %v4114_v17 = vadd.f32 %v4082_v47, %v6908_v46  ;;  %v4316_v36 = vunpack.c.l.b16 %v4278_v20  ;;  %v4331_v47 = vsel %vm4330_vm6, %v4329_v37, %v6933_v14  ;;  %v4959_v14 = vld [vmem:[%s6993_s15 + $0x18] sm:$0xff]   ;;  %s5259_s15 = smov [#allocation22]  }
 0x491   :  { %v4334_v62 = vsel %vm4333_vm7, %v4332_v26, %v4331_v47  ;;  %s4574_s12 = sshll.u32 %s5259_s15, 4  ;;  %s4575_s12 = int_to_ptr.vmem [resolvable:$true] %s4574_s12 }
 0x492   :  { %v4347_v4 = vrot.slane %v4316_v36, 4  ;;  %v4337_v54 = vsel %vm4336_vm8, %v4335_v23, %v4334_v62  ;;  %s5203_s18 = scalar_lea.vmem %s4575_s12, 256  ;;  %p5208_p5 = scmp.lt.s32.totalorder %s4575_s12, %s4575_s12 }
 0x493   :  { %v4146_v50 = vpop.permute.xlu1 %4145  ;;  %p5204_p4 = scmp.ne.s32.totalorder %s4575_s12, %s5203_s18  ;;  %p5209_p6 = scmp.lt.s32.totalorder %s5203_s18, %s5203_s18 }
 0x495   :  { %p5210_p7 = por %p5209_p6, %p5208_p5 }
 0x497   :  { %v4080_v5 = vpop.permute.xlu1 %4079  ;;  %p5211_p8 = pnand %p5210_p7, %p5204_p4 }
 0x498   :  { %v4113_v45 = vadd.f32 %v4080_v5, %v6914_v6  ;;  %v4178_v6 = vadd.f32 %v4146_v50, %v4114_v17  ;;  %v4348_v50 = vsel %vm4330_vm6, %v4347_v4, %v4346_v59  ;;  %v4340_v5 = vsel %vm4339_vm9, %v4338_v57, %v4337_v54 }
 0x499   :  { %v4350_v43 = vsel %vm4333_vm7, %v4349_v13, %v4348_v50 }
 0x49b   :  { %v4144_v53 = vpop.permute.xlu1 %4143 }
 0x49c   :  { %v4177_v0 = vadd.f32 %v4144_v53, %v4113_v45  ;;  %v4643_v53 = vld [vmem:[#allocation20] ss:$0 sm:$0xff] }
 0x49f   :  { %v4208_v1 = vpop.permute.xlu1 %4207 }
 0x4a0   :  { %v4241_v21 = vadd.f32 %v4208_v1, %v4177_v0 }
 0x4a2   :  { %v4280_v51 = vpack.c.bf16 %v4241_v21, %v4241_v21 }
 0x4a3   :  { %v4210_v41 = vpop.permute.xlu1 %4209 }
 0x4a4   :  { %v4318_v44 = vunpack.c.l.b16 %v4280_v51  ;;  %v4242_v9 = vadd.f32 %v4210_v41, %v4178_v6 }
 0x4a6   :  { %v4281_v46 = vpack.c.bf16 %v4242_v9, %v4242_v9  ;;  %v4351_v10 = vrot.slane %v4318_v44, 2 }
 0x4a8   :  { %v4319_v39 = vunpack.c.l.b16 %v4281_v46  ;;  %v4352_v28 = vsel %vm4336_vm8, %v4351_v10, %v4350_v43 }
 0x4aa   :  { %v4353_v19 = vrot.slane %v4319_v39, 1 }
 0x4ac   :  { %v4354_v2 = vsel %vm4339_vm9, %v4353_v19, %v4352_v28 }
 0x4ad   :  { %v4355_v25 = vpack.c.b16 %v4354_v2, %v4340_v5 }
 0x4af   :  { %4870 = vmatmul.mubr.msk.bf16.vlgmr.msra.gmra.mxu0 %vm4368_vm10, %v4355_v25 }
 0x4b0   :  { %4893 = vmatprep.mubr.msk.bf16.mxu0 %vm5254_vm0, %v7303_v12  ;;  %4886 = vmatpush3.bf16.msra.mxu0 %v4959_v14 }
 0x4b1   :  { %4887 = vmatprep.subr.bf16.mxu0 %v7303_v12 }
 0x4b4   :  { %4888 = vmatpush3.bf16.msra.mxu0 %v4960_v38 }
 0x4b5   :  { %4889 = vmatprep.subr.bf16.mxu0 %v7303_v12 }
 0x4b8   :  { %4890 = vmatpush3.bf16.msra.mxu0 %v4961_v52 }
 0x4b9   :  { %4891 = vmatprep.subr.bf16.mxu0 %v7303_v12 }
 0x4bc   :  { %4892 = vmatpush3.bf16.msra.mxu0 %v4962_v33 }
 0x56f   :  { %v4406_v11 = vpop.f32.mrf.mxu0 }
 0x570   :  { %v4407_v29 = vadd.f32 %v4639_v31, %v4406_v11 }
 0x571   :  { %v4871_v3 = vpop.f32.mrf.mxu0 }
 0x572   :  { %v4413_v49 = vmax.f32 %v4407_v29, 0.0 }
 0x573   :  { %v4409_v18 = vpop.f32.mrf.mxu0 }
 0x574   :  { %v4410_v48 = vadd.f32 %v4639_v31, %v4409_v18 }
 0x575   :  { %v4872_v16 = vpop.f32.mrf.mxu0 }
 0x576   :  { %v4414_v63 = vmax.f32 %v4410_v48, 0.0 }
 0x578   :  { %v4415_v61 = vpack.c.bf16 %v4414_v63, %v4413_v49 }
 0x57a   :  { %4882 = vmatmul.mubr.msk.bf16.vlgmr.msra.gmra.mxu1 %vm344_vm2, %v4415_v61 }
 0x63a   :  { %v4483_v34 = vpop.f32.mrf.mxu1 }
 0x63b   :  { %v4484_v45 = vadd.f32 %v4643_v53, %v4483_v34 }
 0x63c   :  { %v4883_v27 = vpop.f32.mrf.mxu1 }
 0x63d   :  { %v4490_v60 = vmax.f32 %v4484_v45, 0.0 }
 0x63e   :  { %v4486_v20 = vpop.f32.mrf.mxu1 }
 0x63f   :  { %v4487_v35 = vadd.f32 %v4643_v53, %v4486_v20 }
 0x640   :  { %v4884_v8 = vpop.f32.mrf.mxu1 }
 0x641   :  { %v4491_v0 = vmax.f32 %v4487_v35, 0.0 }
 0x643   :  { %v4492_v32 = vpack.c.bf16 %v4491_v0, %v4490_v60 }
 0x645   :  { %4894 = vmatmul.mubr.msk.bf16.vlgmr.msra.gmra.mxu0 %vm344_vm2, %v4492_v32 }
 0x705   :  { %v4560_v55 = vpop.f32.mrf.mxu0 }
 0x706   :  { %v4561_v58 = vadd.f32 %v4649_v40, %v4560_v55 }
 0x707   :  { %v4895_v12 = vpop.f32.mrf.mxu0 }
 0x708   :  { %4567 = vst [vmem:[#allocation22] sm:$0xff] %v4561_v58 }
 0x709   :  { %v4563_v1 = vpop.f32.mrf.mxu0 }
 0x70a   :  { %v4564_v42 = vadd.f32 %v4649_v40, %v4563_v1 }
 0x70b   :  { %v4896_v17 = vpop.f32.mrf.mxu0 }
 0x70c   :  { %4568 = vst [vmem:[#allocation22 + $0x8] sm:$0xff] %v4564_v42 }
 0x70d   :  { %5214 = shalt.err (!%p5211_p8)
}
 0x70e   :  { %s5260_s11 = smov 128   ;;  %s5261_s16 = smov 8  }
 0x70f   :  { %4580 = dma.vmem_to_hbm [thread:$0]  %s4575_s12, 256, %s6995_s17, [#allocation4], %s5260_s11, %s5260_s11, %s5261_s16  }
 0x710   :  { %5237 = dma.done.wait [#allocation4], 256  }
 0x711   :  { %5238 = vsyncadd [#allocation4], 4294967040 }
 0x712   :  { %4584 = vsyncpa [#allocation3], 1 }
 0x713   :  { %4585 = vsyncpa [#allocation6], 1 }
 0x714   :  { %4586 = vsyncpa [#allocation9], 1 }
 0x715   :  { %4587 = vsyncpa [#allocation12], 1 }
 0x716   :  { %4588 = vsyncpa [#allocation15], 1 }
 0x717   :  { %4589 = vsyncpa [#allocation18], 1 }
 0x718   :  { %4590 = vsyncpa [#allocation21], 1 }
 0x719   :  { %4591 = vsyncpa [#allocation4], 1 }

</bundles_post_ra>
